<compile_context>
chip_gen: v6e
topology: v6e:2x2x1
jax: 0.10.0
libtpu: 0.0.40
codegen_flags: <defaults>
</compile_context>

<pallas_src>
import functools

import jax
import jax.numpy as jnp
from jax import lax
from jax.experimental import pallas as pl
from jax.experimental.pallas import tpu as pltpu


def _round_up(x, m):
    return ((x + m - 1) // m) * m


def _pick_tt(t):
    """Largest divisor of T among {32,16,8,4,2,1} -> timesteps per grid step."""
    for cand in (32, 16, 8, 4, 2, 1):
        if t % cand == 0:
            return cand
    return 1


# ----------------------------------------------------------------------------
# Recurrent kernel: per grid step, consume TT precomputed gate blocks and run the
# serial GRU recurrence. Hidden state carried in VMEM scratch across grid steps.
# ----------------------------------------------------------------------------
def _gru_recurrent_kernel(gi_ref, whh_ref, bhh_ref, out_ref, h_scratch, *,
                          tt, hp, last_only):
    """
    gi_ref    : (TT, Bp, 3Hp) precomputed x-projection (+ folded biases), gate-lane-aligned
    whh_ref   : (Hp, 3Hp)     hidden->hidden weights (transposed, gate-lane-aligned, zero-padded)
    bhh_ref   : (1, 3Hp)      hidden bias, only the n-gate slab is non-zero
    out_ref   : (TT, Bp, Hp)  per-timestep hidden output     [last_only=False]
                (Bp, Hp)      ReLU(last hidden state)        [last_only=True]
    h_scratch : (Bp, Hp)      recurrent state, persists across grid steps
    """
    step = pl.program_id(0)

    @pl.when(step == 0)
    def _():
        h_scratch[...] = jnp.zeros_like(h_scratch)

    bp = h_scratch.shape[0]
    whh = whh_ref[...]                                        # (Hp, 3Hp), hoisted
    bhh = jnp.broadcast_to(bhh_ref[...], (bp, 3 * hp))        # hoisted broadcast

    def body(i, h_prev):
        gi_t = gi_ref[i]                                      # (Bp, 3Hp)
        gh = jnp.dot(h_prev, whh,
                     preferred_element_type=jnp.float32) + bhh
        r = jax.nn.sigmoid(gi_t[:, :hp] + gh[:, :hp])
        z = jax.nn.sigmoid(gi_t[:, hp:2 * hp] + gh[:, hp:2 * hp])
        n = jnp.tanh(gi_t[:, 2 * hp:] + r * gh[:, 2 * hp:])
        h_new = (1.0 - z) * n + z * h_prev
        if not last_only:
            out_ref[i] = h_new.astype(out_ref.dtype)
        return h_new

    h_final = lax.fori_loop(0, tt, body, h_scratch[...], unroll=True)
    h_scratch[...] = h_final

    if last_only:
        @pl.when(step == pl.num_programs(0) - 1)
        def _():
            # Fused ReLU on the last hidden state only.
            out_ref[...] = jnp.maximum(h_final, 0.0).astype(out_ref.dtype)


def _gru_recurrent_layer(gi, whh_p, bhh_p, hp, *, last_only):
    """Run the serial recurrence over a full sequence of precomputed gate inputs.

    gi : (T, Bp, 3Hp) time-major precomputed input projection.
    returns (T, Bp, Hp) [last_only=False]  or  (Bp, Hp) ReLU'd [last_only=True].
    """
    T, Bp, G3 = gi.shape
    tt = _pick_tt(T)
    grid = (T // tt,)

    if last_only:
        out_shape = jax.ShapeDtypeStruct((Bp, hp), jnp.float32)
        out_spec = pl.BlockSpec((Bp, hp), lambda t: (0, 0))
    else:
        out_shape = jax.ShapeDtypeStruct((T, Bp, hp), jnp.float32)
        out_spec = pl.BlockSpec((tt, Bp, hp), lambda t: (t, 0, 0))

    kernel = functools.partial(_gru_recurrent_kernel,
                               tt=tt, hp=hp, last_only=last_only)

    return pl.pallas_call(
        kernel,
        out_shape=out_shape,
        grid_spec=pltpu.PrefetchScalarGridSpec(
            num_scalar_prefetch=0,
            grid=grid,
            in_specs=[
                pl.BlockSpec((tt, Bp, 3 * hp), lambda t: (t, 0, 0)),
                pl.BlockSpec((hp, 3 * hp), lambda t: (0, 0)),
                pl.BlockSpec((1, 3 * hp), lambda t: (0, 0)),
            ],
            out_specs=out_spec,
            scratch_shapes=[pltpu.VMEM((Bp, hp), jnp.float32)],
        ),
        compiler_params=pltpu.CompilerParams(
            dimension_semantics=("arbitrary",)),  # recurrence: sequential grid
    )(gi, whh_p, bhh_p)


# ----------------------------------------------------------------------------
# Parameter preparation (padding / transposition / bias folding)
# ----------------------------------------------------------------------------
def _prep_layer_params(w_ih, w_hh, b_ih, b_hh, hp, in_pad):
    """PyTorch (3H, Din)/(3H, H)/(3H,) params -> lane-aligned kernel layout."""
    H = w_hh.shape[1]
    d_in = w_ih.shape[1]

    wih_p = jnp.zeros((in_pad, 3 * hp), jnp.float32)   # (Din_pad, 3Hp), transposed
    whh_p = jnp.zeros((hp, 3 * hp), jnp.float32)       # (Hp, 3Hp), transposed
    bi_p = jnp.zeros((3 * hp,), jnp.float32)           # folded into hoisted projection
    bhh_p = jnp.zeros((1, 3 * hp), jnp.float32)        # only n-gate slab non-zero

    for g in range(3):
        wih_p = wih_p.at[:d_in, g * hp:g * hp + H].set(
            w_ih[g * H:(g + 1) * H, :].T.astype(jnp.float32))
        whh_p = whh_p.at[:H, g * hp:g * hp + H].set(
            w_hh[g * H:(g + 1) * H, :].T.astype(jnp.float32))

    # r/z gates: b_ih + b_hh both enter the sigmoid additively -> pre-sum them.
    bi_p = bi_p.at[0 * hp:0 * hp + H].set((b_ih[:H] + b_hh[:H]).astype(jnp.float32))
    bi_p = bi_p.at[1 * hp:1 * hp + H].set((b_ih[H:2 * H] + b_hh[H:2 * H]).astype(jnp.float32))
    # n gate: b_ih_n goes into the projection, b_hh_n stays inside (multiplied by r).
    bi_p = bi_p.at[2 * hp:2 * hp + H].set(b_ih[2 * H:3 * H].astype(jnp.float32))
    bhh_p = bhh_p.at[0, 2 * hp:2 * hp + H].set(b_hh[2 * H:3 * H].astype(jnp.float32))
    return wih_p, whh_p, bi_p, bhh_p


def prepare_params_for_kernel(params, hidden_size):
    hp = _round_up(hidden_size, 128)
    prepped = []
    for layer, (w_ih, w_hh, b_ih, b_hh) in enumerate(params):
        in_pad = w_ih.shape[1] if layer == 0 else hp   # later layers consume Hp-wide h
        prepped.append(_prep_layer_params(w_ih, w_hh, b_ih, b_hh, hp, in_pad))
    return prepped


def init_gru_params(key, input_size, hidden_size, num_layers):
    """Deterministic init mimicking PyTorch nn.GRU: U(-1/sqrt(H), 1/sqrt(H))."""
    bound = 1.0 / jnp.sqrt(jnp.asarray(hidden_size, jnp.float32))
    params = []
    for layer in range(num_layers):
        in_dim = input_size if layer == 0 else hidden_size
        k = jax.random.fold_in(key, layer)
        k1, k2, k3, k4 = jax.random.split(k, 4)
        w_ih = jax.random.uniform(k1, (3 * hidden_size, in_dim),
                                  jnp.float32, -bound, bound)
        w_hh = jax.random.uniform(k2, (3 * hidden_size, hidden_size),
                                  jnp.float32, -bound, bound)
        b_ih = jax.random.uniform(k3, (3 * hidden_size,),
                                  jnp.float32, -bound, bound)
        b_hh = jax.random.uniform(k4, (3 * hidden_size,),
                                  jnp.float32, -bound, bound)
        params.append((w_ih, w_hh, b_ih, b_hh))
    return params


# ----------------------------------------------------------------------------
# Forward pass
# ----------------------------------------------------------------------------
@functools.partial(jax.jit, static_argnames=("hidden_size", "keep_seq"))
def gru_forward(x, kernel_params, hidden_size, keep_seq=False):
    """Equivalent of GRU.forward({'x': x})['emb'].

    x             : (1, B, T, D) -- leading dim is squeezed, batch_first GRU input.
    kernel_params : output of prepare_params_for_kernel.
    returns (B, H) after ReLU [keep_seq=False] or (B, T, H) [keep_seq=True].
    """
    x = jnp.squeeze(x, axis=0)                        # (B, T, D)
    B, T, D = x.shape
    H = hidden_size
    hp = _round_up(H, 128)
    bp = _round_up(B, 8)

    xp = jnp.pad(x.astype(jnp.float32), ((0, bp - B), (0, 0), (0, 0)))  # (Bp, T, D)

    num_layers = len(kernel_params)
    cur = xp                                          # layer 0: (Bp, T, D) batch-major
    for l, (wih_p, whh_p, bi_p, bhh_p) in enumerate(kernel_params):
        # Hoisted time-parallel input projection as ONE big matmul; for layer 0 the
        # time-major transpose is fused into the einsum output layout.
        if l == 0:
            gi = jnp.einsum('btd,dg->tbg', cur, wih_p) + bi_p       # (T, Bp, 3Hp)
        else:
            gi = jnp.einsum('tbh,hg->tbg', cur, wih_p) + bi_p       # (T, Bp, 3Hp)
        last_only = (l == num_layers - 1) and (not keep_seq)
        cur = _gru_recurrent_layer(gi, whh_p, bhh_p, hp, last_only=last_only)

    if keep_seq:
        emb = jnp.transpose(cur, (1, 0, 2))[:B, :, :H]   # (B, T, H)
        return jax.nn.relu(emb)
    # cur is (Bp, Hp) with ReLU already fused in the kernel's final write.
    return cur[:B, :H]


# ----------------------------------------------------------------------------
# Pure-JAX reference (PyTorch-layout params) for a sanity check.
# ----------------------------------------------------------------------------
def _reference_gru(x, params):
    x = jnp.squeeze(x, axis=0)            # (B, T, D)
    B, T, _ = x.shape
    h_seq = x
    for (w_ih, w_hh, b_ih, b_hh) in params:
        H = w_hh.shape[1]
        h = jnp.zeros((B, H), jnp.float32)
        outs = []
        for t in range(T):
            gi = h_seq[:, t, :] @ w_ih.T + b_ih
            gh = h @ w_hh.T + b_hh
            r = jax.nn.sigmoid(gi[:, :H] + gh[:, :H])
            z = jax.nn.sigmoid(gi[:, H:2 * H] + gh[:, H:2 * H])
            n = jnp.tanh(gi[:, 2 * H:] + r * gh[:, 2 * H:])
            h = (1.0 - z) * n + z * h
            outs.append(h)
        h_seq = jnp.stack(outs, axis=1)
    return jax.nn.relu(h_seq[:, -1, :])


if __name__ == "__main__":
    # Small shapes consistent with the module's forward contract.
    B, T, D, H, L = 4, 8, 16, 32, 2

    key = jax.random.PRNGKey(0)
    kx, kp = jax.random.split(key)
    x = jax.random.normal(kx, (1, B, T, D), jnp.float32)   # batch['x']
    params = init_gru_params(kp, input_size=D, hidden_size=H, num_layers=L)
    kparams = prepare_params_for_kernel(params, hidden_size=H)

    emb = gru_forward(x, kparams, hidden_size=H)
    emb = jax.block_until_ready(emb)

    ref = _reference_gru(x, params)
    assert emb.shape == (B, H)
    assert jnp.allclose(emb, ref, atol=1e-5, rtol=1e-5), \
        float(jnp.max(jnp.abs(emb - ref)))

    print("KERNEL_OK")
</pallas_src>

<mosaic_0001>
module attributes {stable_mosaic.version = 11 : i64} {
  func.func @_gru_recurrent_kernel(%arg0: i32, %arg1: memref<8x8x384xf32, #tpu.memory_space<vmem>>, %arg2: memref<128x384xf32, #tpu.memory_space<vmem>>, %arg3: memref<1x384xf32, #tpu.memory_space<vmem>>, %arg4: memref<8x8x128xf32, #tpu.memory_space<vmem>>, %arg5: memref<8x128xf32, #tpu.memory_space<vmem>>) attributes {dimension_semantics = [#tpu.dimension_semantics<arbitrary>], iteration_bounds = array<i64: 1>, scalar_prefetch = 0 : i64, scratch_operands = 1 : i64, tpu.core_type = #tpu.core_type<tc>, window_params = [{transform_indices = @transform_0, window_bounds = array<i64: 8, 8, 384>}, {pipeline_mode = #tpu.pipeline_mode<synchronous>, transform_indices = @transform_1, window_bounds = array<i64: 128, 384>}, {pipeline_mode = #tpu.pipeline_mode<synchronous>, transform_indices = @transform_2, window_bounds = array<i64: 1, 384>}, {transform_indices = @transform_3, window_bounds = array<i64: 8, 8, 128>}]} {
    %c0_i32 = arith.constant 0 : i32
    %0 = arith.cmpi eq, %arg0, %c0_i32 : i32
    %1 = arith.extui %0 : i1 to i32
    %c0_i32_0 = arith.constant 0 : i32
    %2 = arith.cmpi ne, %1, %c0_i32_0 : i32
    scf.if %2 {
      %cst_72 = arith.constant 0.000000e+00 : f32
      %289 = vector.broadcast %cst_72 : f32 to vector<8x128xf32>
      %c0_73 = arith.constant 0 : index
      %c0_74 = arith.constant 0 : index
      %290 = vector.load %arg5[%c0_73, %c0_74] : memref<8x128xf32, #tpu.memory_space<vmem>>, vector<8x128xf32>
      tpu.vector_store %arg5[%c0_73, %c0_74], %289 {strides = array<i32>} : memref<8x128xf32, #tpu.memory_space<vmem>>, vector<8x128xf32>,
    } else {
    }
    %c0 = arith.constant 0 : index
    %c0_1 = arith.constant 0 : index
    %3 = vector.load %arg2[%c0, %c0_1] : memref<128x384xf32, #tpu.memory_space<vmem>>, vector<128x384xf32>
    %c0_2 = arith.constant 0 : index
    %c0_3 = arith.constant 0 : index
    %4 = vector.load %arg3[%c0_2, %c0_3] : memref<1x384xf32, #tpu.memory_space<vmem>>, vector<1x384xf32>
    %5 = vector.shape_cast %4 : vector<1x384xf32> to vector<1x384xf32>
    %6 = vector.broadcast %5 : vector<1x384xf32> to vector<8x384xf32>
    %c0_4 = arith.constant 0 : index
    %c0_5 = arith.constant 0 : index
    %7 = vector.load %arg5[%c0_4, %c0_5] : memref<8x128xf32, #tpu.memory_space<vmem>>, vector<8x128xf32>
    %c0_i32_6 = arith.constant 0 : i32
    %8 = arith.index_cast %c0_i32_6 : i32 to index
    %c0_7 = arith.constant 0 : index
    %c0_8 = arith.constant 0 : index
    %9 = vector.load %arg1[%8, %c0_7, %c0_8] : memref<8x8x384xf32, #tpu.memory_space<vmem>>, vector<1x8x384xf32>
    %10 = vector.shape_cast %9 : vector<1x8x384xf32> to vector<8x384xf32>
    %cst = arith.constant dense<0.000000e+00> : vector<8x384xf32>
    %11 = tpu.matmul %7, %3, %cst {dimension_numbers = #tpu.dot_dimension_numbers<[1], [0], [0], [1], [0, 0, 1, 1], [], []>} : vector<8x128xf32>, vector<128x384xf32>, vector<8x384xf32> -> vector<8x384xf32>
    %12 = arith.addf %11, %6 : vector<8x384xf32>
    %13 = vector.extract_strided_slice %10 {offsets = [0, 0], sizes = [8, 128], strides = [1, 1]} : vector<8x384xf32> to vector<8x128xf32>
    %14 = vector.extract_strided_slice %12 {offsets = [0, 0], sizes = [8, 128], strides = [1, 1]} : vector<8x384xf32> to vector<8x128xf32>
    %15 = arith.addf %13, %14 : vector<8x128xf32>
    %16 = arith.negf %15 : vector<8x128xf32>
    %17 = math.exp %16 : vector<8x128xf32>
    %cst_9 = arith.constant 1.000000e+00 : f32
    %18 = vector.broadcast %cst_9 : f32 to vector<8x128xf32>
    %19 = arith.addf %18, %17 : vector<8x128xf32>
    %20 = arith.divf %18, %19 : vector<8x128xf32>
    %21 = vector.extract_strided_slice %10 {offsets = [0, 128], sizes = [8, 128], strides = [1, 1]} : vector<8x384xf32> to vector<8x128xf32>
    %22 = vector.extract_strided_slice %12 {offsets = [0, 128], sizes = [8, 128], strides = [1, 1]} : vector<8x384xf32> to vector<8x128xf32>
    %23 = arith.addf %21, %22 : vector<8x128xf32>
    %24 = arith.negf %23 : vector<8x128xf32>
    %25 = math.exp %24 : vector<8x128xf32>
    %cst_10 = arith.constant 1.000000e+00 : f32
    %26 = vector.broadcast %cst_10 : f32 to vector<8x128xf32>
    %27 = arith.addf %26, %25 : vector<8x128xf32>
    %28 = arith.divf %26, %27 : vector<8x128xf32>
    %29 = vector.extract_strided_slice %10 {offsets = [0, 256], sizes = [8, 128], strides = [1, 1]} : vector<8x384xf32> to vector<8x128xf32>
    %30 = vector.extract_strided_slice %12 {offsets = [0, 256], sizes = [8, 128], strides = [1, 1]} : vector<8x384xf32> to vector<8x128xf32>
    %31 = arith.mulf %20, %30 : vector<8x128xf32>
    %32 = arith.addf %29, %31 : vector<8x128xf32>
    %33 = math.tanh %32 : vector<8x128xf32>
    %cst_11 = arith.constant 1.000000e+00 : f32
    %34 = vector.broadcast %cst_11 : f32 to vector<8x128xf32>
    %35 = arith.subf %34, %28 : vector<8x128xf32>
    %36 = arith.mulf %35, %33 : vector<8x128xf32>
    %37 = arith.mulf %28, %7 : vector<8x128xf32>
    %38 = arith.addf %36, %37 : vector<8x128xf32>
    %39 = arith.index_cast %c0_i32_6 : i32 to index
    %c0_12 = arith.constant 0 : index
    %c0_13 = arith.constant 0 : index
    %40 = vector.load %arg4[%39, %c0_12, %c0_13] : memref<8x8x128xf32, #tpu.memory_space<vmem>>, vector<1x8x128xf32>
    %41 = vector.shape_cast %40 : vector<1x8x128xf32> to vector<8x128xf32>
    %42 = vector.shape_cast %38 : vector<8x128xf32> to vector<1x8x128xf32>
    tpu.vector_store %arg4[%39, %c0_12, %c0_13], %42 {strides = array<i32>} : memref<8x8x128xf32, #tpu.memory_space<vmem>>, vector<1x8x128xf32>,
    %c1_i32 = arith.constant 1 : i32
    %43 = arith.index_cast %c1_i32 : i32 to index
    %c0_14 = arith.constant 0 : index
    %c0_15 = arith.constant 0 : index
    %44 = vector.load %arg1[%43, %c0_14, %c0_15] : memref<8x8x384xf32, #tpu.memory_space<vmem>>, vector<1x8x384xf32>
    %45 = vector.shape_cast %44 : vector<1x8x384xf32> to vector<8x384xf32>
    %cst_16 = arith.constant dense<0.000000e+00> : vector<8x384xf32>
    %46 = tpu.matmul %38, %3, %cst_16 {dimension_numbers = #tpu.dot_dimension_numbers<[1], [0], [0], [1], [0, 0, 1, 1], [], []>} : vector<8x128xf32>, vector<128x384xf32>, vector<8x384xf32> -> vector<8x384xf32>
    %47 = arith.addf %46, %6 : vector<8x384xf32>
    %48 = vector.extract_strided_slice %45 {offsets = [0, 0], sizes = [8, 128], strides = [1, 1]} : vector<8x384xf32> to vector<8x128xf32>
    %49 = vector.extract_strided_slice %47 {offsets = [0, 0], sizes = [8, 128], strides = [1, 1]} : vector<8x384xf32> to vector<8x128xf32>
    %50 = arith.addf %48, %49 : vector<8x128xf32>
    %51 = arith.negf %50 : vector<8x128xf32>
    %52 = math.exp %51 : vector<8x128xf32>
    %cst_17 = arith.constant 1.000000e+00 : f32
    %53 = vector.broadcast %cst_17 : f32 to vector<8x128xf32>
    %54 = arith.addf %53, %52 : vector<8x128xf32>
    %55 = arith.divf %53, %54 : vector<8x128xf32>
    %56 = vector.extract_strided_slice %45 {offsets = [0, 128], sizes = [8, 128], strides = [1, 1]} : vector<8x384xf32> to vector<8x128xf32>
    %57 = vector.extract_strided_slice %47 {offsets = [0, 128], sizes = [8, 128], strides = [1, 1]} : vector<8x384xf32> to vector<8x128xf32>
    %58 = arith.addf %56, %57 : vector<8x128xf32>
    %59 = arith.negf %58 : vector<8x128xf32>
    %60 = math.exp %59 : vector<8x128xf32>
    %cst_18 = arith.constant 1.000000e+00 : f32
    %61 = vector.broadcast %cst_18 : f32 to vector<8x128xf32>
    %62 = arith.addf %61, %60 : vector<8x128xf32>
    %63 = arith.divf %61, %62 : vector<8x128xf32>
    %64 = vector.extract_strided_slice %45 {offsets = [0, 256], sizes = [8, 128], strides = [1, 1]} : vector<8x384xf32> to vector<8x128xf32>
    %65 = vector.extract_strided_slice %47 {offsets = [0, 256], sizes = [8, 128], strides = [1, 1]} : vector<8x384xf32> to vector<8x128xf32>
    %66 = arith.mulf %55, %65 : vector<8x128xf32>
    %67 = arith.addf %64, %66 : vector<8x128xf32>
    %68 = math.tanh %67 : vector<8x128xf32>
    %cst_19 = arith.constant 1.000000e+00 : f32
    %69 = vector.broadcast %cst_19 : f32 to vector<8x128xf32>
    %70 = arith.subf %69, %63 : vector<8x128xf32>
    %71 = arith.mulf %70, %68 : vector<8x128xf32>
    %72 = arith.mulf %63, %38 : vector<8x128xf32>
    %73 = arith.addf %71, %72 : vector<8x128xf32>
    %74 = arith.index_cast %c1_i32 : i32 to index
    %c0_20 = arith.constant 0 : index
    %c0_21 = arith.constant 0 : index
    %75 = vector.load %arg4[%74, %c0_20, %c0_21] : memref<8x8x128xf32, #tpu.memory_space<vmem>>, vector<1x8x128xf32>
    %76 = vector.shape_cast %75 : vector<1x8x128xf32> to vector<8x128xf32>
    %77 = vector.shape_cast %73 : vector<8x128xf32> to vector<1x8x128xf32>
    tpu.vector_store %arg4[%74, %c0_20, %c0_21], %77 {strides = array<i32>} : memref<8x8x128xf32, #tpu.memory_space<vmem>>, vector<1x8x128xf32>,
    %c2_i32 = arith.constant 2 : i32
    %78 = arith.index_cast %c2_i32 : i32 to index
    %c0_22 = arith.constant 0 : index
    %c0_23 = arith.constant 0 : index
    %79 = vector.load %arg1[%78, %c0_22, %c0_23] : memref<8x8x384xf32, #tpu.memory_space<vmem>>, vector<1x8x384xf32>
    %80 = vector.shape_cast %79 : vector<1x8x384xf32> to vector<8x384xf32>
    %cst_24 = arith.constant dense<0.000000e+00> : vector<8x384xf32>
    %81 = tpu.matmul %73, %3, %cst_24 {dimension_numbers = #tpu.dot_dimension_numbers<[1], [0], [0], [1], [0, 0, 1, 1], [], []>} : vector<8x128xf32>, vector<128x384xf32>, vector<8x384xf32> -> vector<8x384xf32>
    %82 = arith.addf %81, %6 : vector<8x384xf32>
    %83 = vector.extract_strided_slice %80 {offsets = [0, 0], sizes = [8, 128], strides = [1, 1]} : vector<8x384xf32> to vector<8x128xf32>
    %84 = vector.extract_strided_slice %82 {offsets = [0, 0], sizes = [8, 128], strides = [1, 1]} : vector<8x384xf32> to vector<8x128xf32>
    %85 = arith.addf %83, %84 : vector<8x128xf32>
    %86 = arith.negf %85 : vector<8x128xf32>
    %87 = math.exp %86 : vector<8x128xf32>
    %cst_25 = arith.constant 1.000000e+00 : f32
    %88 = vector.broadcast %cst_25 : f32 to vector<8x128xf32>
    %89 = arith.addf %88, %87 : vector<8x128xf32>
    %90 = arith.divf %88, %89 : vector<8x128xf32>
    %91 = vector.extract_strided_slice %80 {offsets = [0, 128], sizes = [8, 128], strides = [1, 1]} : vector<8x384xf32> to vector<8x128xf32>
    %92 = vector.extract_strided_slice %82 {offsets = [0, 128], sizes = [8, 128], strides = [1, 1]} : vector<8x384xf32> to vector<8x128xf32>
    %93 = arith.addf %91, %92 : vector<8x128xf32>
    %94 = arith.negf %93 : vector<8x128xf32>
    %95 = math.exp %94 : vector<8x128xf32>
    %cst_26 = arith.constant 1.000000e+00 : f32
    %96 = vector.broadcast %cst_26 : f32 to vector<8x128xf32>
    %97 = arith.addf %96, %95 : vector<8x128xf32>
    %98 = arith.divf %96, %97 : vector<8x128xf32>
    %99 = vector.extract_strided_slice %80 {offsets = [0, 256], sizes = [8, 128], strides = [1, 1]} : vector<8x384xf32> to vector<8x128xf32>
    %100 = vector.extract_strided_slice %82 {offsets = [0, 256], sizes = [8, 128], strides = [1, 1]} : vector<8x384xf32> to vector<8x128xf32>
    %101 = arith.mulf %90, %100 : vector<8x128xf32>
    %102 = arith.addf %99, %101 : vector<8x128xf32>
    %103 = math.tanh %102 : vector<8x128xf32>
    %cst_27 = arith.constant 1.000000e+00 : f32
    %104 = vector.broadcast %cst_27 : f32 to vector<8x128xf32>
    %105 = arith.subf %104, %98 : vector<8x128xf32>
    %106 = arith.mulf %105, %103 : vector<8x128xf32>
    %107 = arith.mulf %98, %73 : vector<8x128xf32>
    %108 = arith.addf %106, %107 : vector<8x128xf32>
    %109 = arith.index_cast %c2_i32 : i32 to index
    %c0_28 = arith.constant 0 : index
    %c0_29 = arith.constant 0 : index
    %110 = vector.load %arg4[%109, %c0_28, %c0_29] : memref<8x8x128xf32, #tpu.memory_space<vmem>>, vector<1x8x128xf32>
    %111 = vector.shape_cast %110 : vector<1x8x128xf32> to vector<8x128xf32>
    %112 = vector.shape_cast %108 : vector<8x128xf32> to vector<1x8x128xf32>
    tpu.vector_store %arg4[%109, %c0_28, %c0_29], %112 {strides = array<i32>} : memref<8x8x128xf32, #tpu.memory_space<vmem>>, vector<1x8x128xf32>,
    %c3_i32 = arith.constant 3 : i32
    %113 = arith.index_cast %c3_i32 : i32 to index
    %c0_30 = arith.constant 0 : index
    %c0_31 = arith.constant 0 : index
    %114 = vector.load %arg1[%113, %c0_30, %c0_31] : memref<8x8x384xf32, #tpu.memory_space<vmem>>, vector<1x8x384xf32>
    %115 = vector.shape_cast %114 : vector<1x8x384xf32> to vector<8x384xf32>
    %cst_32 = arith.constant dense<0.000000e+00> : vector<8x384xf32>
    %116 = tpu.matmul %108, %3, %cst_32 {dimension_numbers = #tpu.dot_dimension_numbers<[1], [0], [0], [1], [0, 0, 1, 1], [], []>} : vector<8x128xf32>, vector<128x384xf32>, vector<8x384xf32> -> vector<8x384xf32>
    %117 = arith.addf %116, %6 : vector<8x384xf32>
    %118 = vector.extract_strided_slice %115 {offsets = [0, 0], sizes = [8, 128], strides = [1, 1]} : vector<8x384xf32> to vector<8x128xf32>
    %119 = vector.extract_strided_slice %117 {offsets = [0, 0], sizes = [8, 128], strides = [1, 1]} : vector<8x384xf32> to vector<8x128xf32>
    %120 = arith.addf %118, %119 : vector<8x128xf32>
    %121 = arith.negf %120 : vector<8x128xf32>
    %122 = math.exp %121 : vector<8x128xf32>
    %cst_33 = arith.constant 1.000000e+00 : f32
    %123 = vector.broadcast %cst_33 : f32 to vector<8x128xf32>
    %124 = arith.addf %123, %122 : vector<8x128xf32>
    %125 = arith.divf %123, %124 : vector<8x128xf32>
    %126 = vector.extract_strided_slice %115 {offsets = [0, 128], sizes = [8, 128], strides = [1, 1]} : vector<8x384xf32> to vector<8x128xf32>
    %127 = vector.extract_strided_slice %117 {offsets = [0, 128], sizes = [8, 128], strides = [1, 1]} : vector<8x384xf32> to vector<8x128xf32>
    %128 = arith.addf %126, %127 : vector<8x128xf32>
    %129 = arith.negf %128 : vector<8x128xf32>
    %130 = math.exp %129 : vector<8x128xf32>
    %cst_34 = arith.constant 1.000000e+00 : f32
    %131 = vector.broadcast %cst_34 : f32 to vector<8x128xf32>
    %132 = arith.addf %131, %130 : vector<8x128xf32>
    %133 = arith.divf %131, %132 : vector<8x128xf32>
    %134 = vector.extract_strided_slice %115 {offsets = [0, 256], sizes = [8, 128], strides = [1, 1]} : vector<8x384xf32> to vector<8x128xf32>
    %135 = vector.extract_strided_slice %117 {offsets = [0, 256], sizes = [8, 128], strides = [1, 1]} : vector<8x384xf32> to vector<8x128xf32>
    %136 = arith.mulf %125, %135 : vector<8x128xf32>
    %137 = arith.addf %134, %136 : vector<8x128xf32>
    %138 = math.tanh %137 : vector<8x128xf32>
    %cst_35 = arith.constant 1.000000e+00 : f32
    %139 = vector.broadcast %cst_35 : f32 to vector<8x128xf32>
    %140 = arith.subf %139, %133 : vector<8x128xf32>
    %141 = arith.mulf %140, %138 : vector<8x128xf32>
    %142 = arith.mulf %133, %108 : vector<8x128xf32>
    %143 = arith.addf %141, %142 : vector<8x128xf32>
    %144 = arith.index_cast %c3_i32 : i32 to index
    %c0_36 = arith.constant 0 : index
    %c0_37 = arith.constant 0 : index
    %145 = vector.load %arg4[%144, %c0_36, %c0_37] : memref<8x8x128xf32, #tpu.memory_space<vmem>>, vector<1x8x128xf32>
    %146 = vector.shape_cast %145 : vector<1x8x128xf32> to vector<8x128xf32>
    %147 = vector.shape_cast %143 : vector<8x128xf32> to vector<1x8x128xf32>
    tpu.vector_store %arg4[%144, %c0_36, %c0_37], %147 {strides = array<i32>} : memref<8x8x128xf32, #tpu.memory_space<vmem>>, vector<1x8x128xf32>,
    %c4_i32 = arith.constant 4 : i32
    %148 = arith.index_cast %c4_i32 : i32 to index
    %c0_38 = arith.constant 0 : index
    %c0_39 = arith.constant 0 : index
    %149 = vector.load %arg1[%148, %c0_38, %c0_39] : memref<8x8x384xf32, #tpu.memory_space<vmem>>, vector<1x8x384xf32>
    %150 = vector.shape_cast %149 : vector<1x8x384xf32> to vector<8x384xf32>
    %cst_40 = arith.constant dense<0.000000e+00> : vector<8x384xf32>
    %151 = tpu.matmul %143, %3, %cst_40 {dimension_numbers = #tpu.dot_dimension_numbers<[1], [0], [0], [1], [0, 0, 1, 1], [], []>} : vector<8x128xf32>, vector<128x384xf32>, vector<8x384xf32> -> vector<8x384xf32>
    %152 = arith.addf %151, %6 : vector<8x384xf32>
    %153 = vector.extract_strided_slice %150 {offsets = [0, 0], sizes = [8, 128], strides = [1, 1]} : vector<8x384xf32> to vector<8x128xf32>
    %154 = vector.extract_strided_slice %152 {offsets = [0, 0], sizes = [8, 128], strides = [1, 1]} : vector<8x384xf32> to vector<8x128xf32>
    %155 = arith.addf %153, %154 : vector<8x128xf32>
    %156 = arith.negf %155 : vector<8x128xf32>
    %157 = math.exp %156 : vector<8x128xf32>
    %cst_41 = arith.constant 1.000000e+00 : f32
    %158 = vector.broadcast %cst_41 : f32 to vector<8x128xf32>
    %159 = arith.addf %158, %157 : vector<8x128xf32>
    %160 = arith.divf %158, %159 : vector<8x128xf32>
    %161 = vector.extract_strided_slice %150 {offsets = [0, 128], sizes = [8, 128], strides = [1, 1]} : vector<8x384xf32> to vector<8x128xf32>
    %162 = vector.extract_strided_slice %152 {offsets = [0, 128], sizes = [8, 128], strides = [1, 1]} : vector<8x384xf32> to vector<8x128xf32>
    %163 = arith.addf %161, %162 : vector<8x128xf32>
    %164 = arith.negf %163 : vector<8x128xf32>
    %165 = math.exp %164 : vector<8x128xf32>
    %cst_42 = arith.constant 1.000000e+00 : f32
    %166 = vector.broadcast %cst_42 : f32 to vector<8x128xf32>
    %167 = arith.addf %166, %165 : vector<8x128xf32>
    %168 = arith.divf %166, %167 : vector<8x128xf32>
    %169 = vector.extract_strided_slice %150 {offsets = [0, 256], sizes = [8, 128], strides = [1, 1]} : vector<8x384xf32> to vector<8x128xf32>
    %170 = vector.extract_strided_slice %152 {offsets = [0, 256], sizes = [8, 128], strides = [1, 1]} : vector<8x384xf32> to vector<8x128xf32>
    %171 = arith.mulf %160, %170 : vector<8x128xf32>
    %172 = arith.addf %169, %171 : vector<8x128xf32>
    %173 = math.tanh %172 : vector<8x128xf32>
    %cst_43 = arith.constant 1.000000e+00 : f32
    %174 = vector.broadcast %cst_43 : f32 to vector<8x128xf32>
    %175 = arith.subf %174, %168 : vector<8x128xf32>
    %176 = arith.mulf %175, %173 : vector<8x128xf32>
    %177 = arith.mulf %168, %143 : vector<8x128xf32>
    %178 = arith.addf %176, %177 : vector<8x128xf32>
    %179 = arith.index_cast %c4_i32 : i32 to index
    %c0_44 = arith.constant 0 : index
    %c0_45 = arith.constant 0 : index
    %180 = vector.load %arg4[%179, %c0_44, %c0_45] : memref<8x8x128xf32, #tpu.memory_space<vmem>>, vector<1x8x128xf32>
    %181 = vector.shape_cast %180 : vector<1x8x128xf32> to vector<8x128xf32>
    %182 = vector.shape_cast %178 : vector<8x128xf32> to vector<1x8x128xf32>
    tpu.vector_store %arg4[%179, %c0_44, %c0_45], %182 {strides = array<i32>} : memref<8x8x128xf32, #tpu.memory_space<vmem>>, vector<1x8x128xf32>,
    %c5_i32 = arith.constant 5 : i32
    %183 = arith.index_cast %c5_i32 : i32 to index
    %c0_46 = arith.constant 0 : index
    %c0_47 = arith.constant 0 : index
    %184 = vector.load %arg1[%183, %c0_46, %c0_47] : memref<8x8x384xf32, #tpu.memory_space<vmem>>, vector<1x8x384xf32>
    %185 = vector.shape_cast %184 : vector<1x8x384xf32> to vector<8x384xf32>
    %cst_48 = arith.constant dense<0.000000e+00> : vector<8x384xf32>
    %186 = tpu.matmul %178, %3, %cst_48 {dimension_numbers = #tpu.dot_dimension_numbers<[1], [0], [0], [1], [0, 0, 1, 1], [], []>} : vector<8x128xf32>, vector<128x384xf32>, vector<8x384xf32> -> vector<8x384xf32>
    %187 = arith.addf %186, %6 : vector<8x384xf32>
    %188 = vector.extract_strided_slice %185 {offsets = [0, 0], sizes = [8, 128], strides = [1, 1]} : vector<8x384xf32> to vector<8x128xf32>
    %189 = vector.extract_strided_slice %187 {offsets = [0, 0], sizes = [8, 128], strides = [1, 1]} : vector<8x384xf32> to vector<8x128xf32>
    %190 = arith.addf %188, %189 : vector<8x128xf32>
    %191 = arith.negf %190 : vector<8x128xf32>
    %192 = math.exp %191 : vector<8x128xf32>
    %cst_49 = arith.constant 1.000000e+00 : f32
    %193 = vector.broadcast %cst_49 : f32 to vector<8x128xf32>
    %194 = arith.addf %193, %192 : vector<8x128xf32>
    %195 = arith.divf %193, %194 : vector<8x128xf32>
    %196 = vector.extract_strided_slice %185 {offsets = [0, 128], sizes = [8, 128], strides = [1, 1]} : vector<8x384xf32> to vector<8x128xf32>
    %197 = vector.extract_strided_slice %187 {offsets = [0, 128], sizes = [8, 128], strides = [1, 1]} : vector<8x384xf32> to vector<8x128xf32>
    %198 = arith.addf %196, %197 : vector<8x128xf32>
    %199 = arith.negf %198 : vector<8x128xf32>
    %200 = math.exp %199 : vector<8x128xf32>
    %cst_50 = arith.constant 1.000000e+00 : f32
    %201 = vector.broadcast %cst_50 : f32 to vector<8x128xf32>
    %202 = arith.addf %201, %200 : vector<8x128xf32>
    %203 = arith.divf %201, %202 : vector<8x128xf32>
    %204 = vector.extract_strided_slice %185 {offsets = [0, 256], sizes = [8, 128], strides = [1, 1]} : vector<8x384xf32> to vector<8x128xf32>
    %205 = vector.extract_strided_slice %187 {offsets = [0, 256], sizes = [8, 128], strides = [1, 1]} : vector<8x384xf32> to vector<8x128xf32>
    %206 = arith.mulf %195, %205 : vector<8x128xf32>
    %207 = arith.addf %204, %206 : vector<8x128xf32>
    %208 = math.tanh %207 : vector<8x128xf32>
    %cst_51 = arith.constant 1.000000e+00 : f32
    %209 = vector.broadcast %cst_51 : f32 to vector<8x128xf32>
    %210 = arith.subf %209, %203 : vector<8x128xf32>
    %211 = arith.mulf %210, %208 : vector<8x128xf32>
    %212 = arith.mulf %203, %178 : vector<8x128xf32>
    %213 = arith.addf %211, %212 : vector<8x128xf32>
    %214 = arith.index_cast %c5_i32 : i32 to index
    %c0_52 = arith.constant 0 : index
    %c0_53 = arith.constant 0 : index
    %215 = vector.load %arg4[%214, %c0_52, %c0_53] : memref<8x8x128xf32, #tpu.memory_space<vmem>>, vector<1x8x128xf32>
    %216 = vector.shape_cast %215 : vector<1x8x128xf32> to vector<8x128xf32>
    %217 = vector.shape_cast %213 : vector<8x128xf32> to vector<1x8x128xf32>
    tpu.vector_store %arg4[%214, %c0_52, %c0_53], %217 {strides = array<i32>} : memref<8x8x128xf32, #tpu.memory_space<vmem>>, vector<1x8x128xf32>,
    %c6_i32 = arith.constant 6 : i32
    %218 = arith.index_cast %c6_i32 : i32 to index
    %c0_54 = arith.constant 0 : index
    %c0_55 = arith.constant 0 : index
    %219 = vector.load %arg1[%218, %c0_54, %c0_55] : memref<8x8x384xf32, #tpu.memory_space<vmem>>, vector<1x8x384xf32>
    %220 = vector.shape_cast %219 : vector<1x8x384xf32> to vector<8x384xf32>
    %cst_56 = arith.constant dense<0.000000e+00> : vector<8x384xf32>
    %221 = tpu.matmul %213, %3, %cst_56 {dimension_numbers = #tpu.dot_dimension_numbers<[1], [0], [0], [1], [0, 0, 1, 1], [], []>} : vector<8x128xf32>, vector<128x384xf32>, vector<8x384xf32> -> vector<8x384xf32>
    %222 = arith.addf %221, %6 : vector<8x384xf32>
    %223 = vector.extract_strided_slice %220 {offsets = [0, 0], sizes = [8, 128], strides = [1, 1]} : vector<8x384xf32> to vector<8x128xf32>
    %224 = vector.extract_strided_slice %222 {offsets = [0, 0], sizes = [8, 128], strides = [1, 1]} : vector<8x384xf32> to vector<8x128xf32>
    %225 = arith.addf %223, %224 : vector<8x128xf32>
    %226 = arith.negf %225 : vector<8x128xf32>
    %227 = math.exp %226 : vector<8x128xf32>
    %cst_57 = arith.constant 1.000000e+00 : f32
    %228 = vector.broadcast %cst_57 : f32 to vector<8x128xf32>
    %229 = arith.addf %228, %227 : vector<8x128xf32>
    %230 = arith.divf %228, %229 : vector<8x128xf32>
    %231 = vector.extract_strided_slice %220 {offsets = [0, 128], sizes = [8, 128], strides = [1, 1]} : vector<8x384xf32> to vector<8x128xf32>
    %232 = vector.extract_strided_slice %222 {offsets = [0, 128], sizes = [8, 128], strides = [1, 1]} : vector<8x384xf32> to vector<8x128xf32>
    %233 = arith.addf %231, %232 : vector<8x128xf32>
    %234 = arith.negf %233 : vector<8x128xf32>
    %235 = math.exp %234 : vector<8x128xf32>
    %cst_58 = arith.constant 1.000000e+00 : f32
    %236 = vector.broadcast %cst_58 : f32 to vector<8x128xf32>
    %237 = arith.addf %236, %235 : vector<8x128xf32>
    %238 = arith.divf %236, %237 : vector<8x128xf32>
    %239 = vector.extract_strided_slice %220 {offsets = [0, 256], sizes = [8, 128], strides = [1, 1]} : vector<8x384xf32> to vector<8x128xf32>
    %240 = vector.extract_strided_slice %222 {offsets = [0, 256], sizes = [8, 128], strides = [1, 1]} : vector<8x384xf32> to vector<8x128xf32>
    %241 = arith.mulf %230, %240 : vector<8x128xf32>
    %242 = arith.addf %239, %241 : vector<8x128xf32>
    %243 = math.tanh %242 : vector<8x128xf32>
    %cst_59 = arith.constant 1.000000e+00 : f32
    %244 = vector.broadcast %cst_59 : f32 to vector<8x128xf32>
    %245 = arith.subf %244, %238 : vector<8x128xf32>
    %246 = arith.mulf %245, %243 : vector<8x128xf32>
    %247 = arith.mulf %238, %213 : vector<8x128xf32>
    %248 = arith.addf %246, %247 : vector<8x128xf32>
    %249 = arith.index_cast %c6_i32 : i32 to index
    %c0_60 = arith.constant 0 : index
    %c0_61 = arith.constant 0 : index
    %250 = vector.load %arg4[%249, %c0_60, %c0_61] : memref<8x8x128xf32, #tpu.memory_space<vmem>>, vector<1x8x128xf32>
    %251 = vector.shape_cast %250 : vector<1x8x128xf32> to vector<8x128xf32>
    %252 = vector.shape_cast %248 : vector<8x128xf32> to vector<1x8x128xf32>
    tpu.vector_store %arg4[%249, %c0_60, %c0_61], %252 {strides = array<i32>} : memref<8x8x128xf32, #tpu.memory_space<vmem>>, vector<1x8x128xf32>,
    %c7_i32 = arith.constant 7 : i32
    %253 = arith.index_cast %c7_i32 : i32 to index
    %c0_62 = arith.constant 0 : index
    %c0_63 = arith.constant 0 : index
    %254 = vector.load %arg1[%253, %c0_62, %c0_63] : memref<8x8x384xf32, #tpu.memory_space<vmem>>, vector<1x8x384xf32>
    %255 = vector.shape_cast %254 : vector<1x8x384xf32> to vector<8x384xf32>
    %cst_64 = arith.constant dense<0.000000e+00> : vector<8x384xf32>
    %256 = tpu.matmul %248, %3, %cst_64 {dimension_numbers = #tpu.dot_dimension_numbers<[1], [0], [0], [1], [0, 0, 1, 1], [], []>} : vector<8x128xf32>, vector<128x384xf32>, vector<8x384xf32> -> vector<8x384xf32>
    %257 = arith.addf %256, %6 : vector<8x384xf32>
    %258 = vector.extract_strided_slice %255 {offsets = [0, 0], sizes = [8, 128], strides = [1, 1]} : vector<8x384xf32> to vector<8x128xf32>
    %259 = vector.extract_strided_slice %257 {offsets = [0, 0], sizes = [8, 128], strides = [1, 1]} : vector<8x384xf32> to vector<8x128xf32>
    %260 = arith.addf %258, %259 : vector<8x128xf32>
    %261 = arith.negf %260 : vector<8x128xf32>
    %262 = math.exp %261 : vector<8x128xf32>
    %cst_65 = arith.constant 1.000000e+00 : f32
    %263 = vector.broadcast %cst_65 : f32 to vector<8x128xf32>
    %264 = arith.addf %263, %262 : vector<8x128xf32>
    %265 = arith.divf %263, %264 : vector<8x128xf32>
    %266 = vector.extract_strided_slice %255 {offsets = [0, 128], sizes = [8, 128], strides = [1, 1]} : vector<8x384xf32> to vector<8x128xf32>
    %267 = vector.extract_strided_slice %257 {offsets = [0, 128], sizes = [8, 128], strides = [1, 1]} : vector<8x384xf32> to vector<8x128xf32>
    %268 = arith.addf %266, %267 : vector<8x128xf32>
    %269 = arith.negf %268 : vector<8x128xf32>
    %270 = math.exp %269 : vector<8x128xf32>
    %cst_66 = arith.constant 1.000000e+00 : f32
    %271 = vector.broadcast %cst_66 : f32 to vector<8x128xf32>
    %272 = arith.addf %271, %270 : vector<8x128xf32>
    %273 = arith.divf %271, %272 : vector<8x128xf32>
    %274 = vector.extract_strided_slice %255 {offsets = [0, 256], sizes = [8, 128], strides = [1, 1]} : vector<8x384xf32> to vector<8x128xf32>
    %275 = vector.extract_strided_slice %257 {offsets = [0, 256], sizes = [8, 128], strides = [1, 1]} : vector<8x384xf32> to vector<8x128xf32>
    %276 = arith.mulf %265, %275 : vector<8x128xf32>
    %277 = arith.addf %274, %276 : vector<8x128xf32>
    %278 = math.tanh %277 : vector<8x128xf32>
    %cst_67 = arith.constant 1.000000e+00 : f32
    %279 = vector.broadcast %cst_67 : f32 to vector<8x128xf32>
    %280 = arith.subf %279, %273 : vector<8x128xf32>
    %281 = arith.mulf %280, %278 : vector<8x128xf32>
    %282 = arith.mulf %273, %248 : vector<8x128xf32>
    %283 = arith.addf %281, %282 : vector<8x128xf32>
    %284 = arith.index_cast %c7_i32 : i32 to index
    %c0_68 = arith.constant 0 : index
    %c0_69 = arith.constant 0 : index
    %285 = vector.load %arg4[%284, %c0_68, %c0_69] : memref<8x8x128xf32, #tpu.memory_space<vmem>>, vector<1x8x128xf32>
    %286 = vector.shape_cast %285 : vector<1x8x128xf32> to vector<8x128xf32>
    %287 = vector.shape_cast %283 : vector<8x128xf32> to vector<1x8x128xf32>
    tpu.vector_store %arg4[%284, %c0_68, %c0_69], %287 {strides = array<i32>} : memref<8x8x128xf32, #tpu.memory_space<vmem>>, vector<1x8x128xf32>,
    %c8_i32 = arith.constant 8 : i32
    %c0_70 = arith.constant 0 : index
    %c0_71 = arith.constant 0 : index
    %288 = vector.load %arg5[%c0_70, %c0_71] : memref<8x128xf32, #tpu.memory_space<vmem>>, vector<8x128xf32>
    tpu.vector_store %arg5[%c0_70, %c0_71], %283 {strides = array<i32>} : memref<8x128xf32, #tpu.memory_space<vmem>>, vector<8x128xf32>,
    return
  }
  func.func @transform_0(%arg0: i32) -> (i32, i32, i32) {
    %c0_i32 = arith.constant 0 : i32
    %c0_i32_0 = arith.constant 0 : i32
    %c0_i32_1 = arith.constant 0 : i32
    return %arg0, %c0_i32, %c0_i32_0 : i32, i32, i32
  }
  func.func @transform_1(%arg0: i32) -> (i32, i32) {
    %c0_i32 = arith.constant 0 : i32
    %c0_i32_0 = arith.constant 0 : i32
    %c0_i32_1 = arith.constant 0 : i32
    return %c0_i32, %c0_i32_0 : i32, i32
  }
  func.func @transform_2(%arg0: i32) -> (i32, i32) {
    %c0_i32 = arith.constant 0 : i32
    %c0_i32_0 = arith.constant 0 : i32
    %c0_i32_1 = arith.constant 0 : i32
    return %c0_i32, %c0_i32_0 : i32, i32
  }
  func.func @transform_3(%arg0: i32) -> (i32, i32, i32) {
    %c0_i32 = arith.constant 0 : i32
    %c0_i32_0 = arith.constant 0 : i32
    %c0_i32_1 = arith.constant 0 : i32
    return %arg0, %c0_i32, %c0_i32_0 : i32, i32, i32
  }
}

module attributes {stable_mosaic.version = 11 : i64} {
  func.func @_gru_recurrent_kernel(%arg0: i32, %arg1: memref<8x8x384xf32, #tpu.memory_space<vmem>>, %arg2: memref<128x384xf32, #tpu.memory_space<vmem>>, %arg3: memref<1x384xf32, #tpu.memory_space<vmem>>, %arg4: memref<8x128xf32, #tpu.memory_space<vmem>>, %arg5: memref<8x128xf32, #tpu.memory_space<vmem>>) attributes {dimension_semantics = [#tpu.dimension_semantics<arbitrary>], iteration_bounds = array<i64: 1>, scalar_prefetch = 0 : i64, scratch_operands = 1 : i64, tpu.core_type = #tpu.core_type<tc>, window_params = [{transform_indices = @transform_0, window_bounds = array<i64: 8, 8, 384>}, {pipeline_mode = #tpu.pipeline_mode<synchronous>, transform_indices = @transform_1, window_bounds = array<i64: 128, 384>}, {pipeline_mode = #tpu.pipeline_mode<synchronous>, transform_indices = @transform_2, window_bounds = array<i64: 1, 384>}, {pipeline_mode = #tpu.pipeline_mode<synchronous>, transform_indices = @transform_3, window_bounds = array<i64: 8, 128>}]} {
    %c0_i32 = arith.constant 0 : i32
    %0 = arith.cmpi eq, %arg0, %c0_i32 : i32
    %1 = arith.extui %0 : i1 to i32
    %c0_i32_0 = arith.constant 0 : i32
    %2 = arith.cmpi ne, %1, %c0_i32_0 : i32
    scf.if %2 {
      %cst_58 = arith.constant 0.000000e+00 : f32
      %260 = vector.broadcast %cst_58 : f32 to vector<8x128xf32>
      %c0_59 = arith.constant 0 : index
      %c0_60 = arith.constant 0 : index
      %261 = vector.load %arg5[%c0_59, %c0_60] : memref<8x128xf32, #tpu.memory_space<vmem>>, vector<8x128xf32>
      tpu.vector_store %arg5[%c0_59, %c0_60], %260 {strides = array<i32>} : memref<8x128xf32, #tpu.memory_space<vmem>>, vector<8x128xf32>,
    } else {
    }
    %c0 = arith.constant 0 : index
    %c0_1 = arith.constant 0 : index
    %3 = vector.load %arg2[%c0, %c0_1] : memref<128x384xf32, #tpu.memory_space<vmem>>, vector<128x384xf32>
    %c0_2 = arith.constant 0 : index
    %c0_3 = arith.constant 0 : index
    %4 = vector.load %arg3[%c0_2, %c0_3] : memref<1x384xf32, #tpu.memory_space<vmem>>, vector<1x384xf32>
    %5 = vector.shape_cast %4 : vector<1x384xf32> to vector<1x384xf32>
    %6 = vector.broadcast %5 : vector<1x384xf32> to vector<8x384xf32>
    %c0_4 = arith.constant 0 : index
    %c0_5 = arith.constant 0 : index
    %7 = vector.load %arg5[%c0_4, %c0_5] : memref<8x128xf32, #tpu.memory_space<vmem>>, vector<8x128xf32>
    %c0_i32_6 = arith.constant 0 : i32
    %8 = arith.index_cast %c0_i32_6 : i32 to index
    %c0_7 = arith.constant 0 : index
    %c0_8 = arith.constant 0 : index
    %9 = vector.load %arg1[%8, %c0_7, %c0_8] : memref<8x8x384xf32, #tpu.memory_space<vmem>>, vector<1x8x384xf32>
    %10 = vector.shape_cast %9 : vector<1x8x384xf32> to vector<8x384xf32>
    %cst = arith.constant dense<0.000000e+00> : vector<8x384xf32>
    %11 = tpu.matmul %7, %3, %cst {dimension_numbers = #tpu.dot_dimension_numbers<[1], [0], [0], [1], [0, 0, 1, 1], [], []>} : vector<8x128xf32>, vector<128x384xf32>, vector<8x384xf32> -> vector<8x384xf32>
    %12 = arith.addf %11, %6 : vector<8x384xf32>
    %13 = vector.extract_strided_slice %10 {offsets = [0, 0], sizes = [8, 128], strides = [1, 1]} : vector<8x384xf32> to vector<8x128xf32>
    %14 = vector.extract_strided_slice %12 {offsets = [0, 0], sizes = [8, 128], strides = [1, 1]} : vector<8x384xf32> to vector<8x128xf32>
    %15 = arith.addf %13, %14 : vector<8x128xf32>
    %16 = arith.negf %15 : vector<8x128xf32>
    %17 = math.exp %16 : vector<8x128xf32>
    %cst_9 = arith.constant 1.000000e+00 : f32
    %18 = vector.broadcast %cst_9 : f32 to vector<8x128xf32>
    %19 = arith.addf %18, %17 : vector<8x128xf32>
    %20 = arith.divf %18, %19 : vector<8x128xf32>
    %21 = vector.extract_strided_slice %10 {offsets = [0, 128], sizes = [8, 128], strides = [1, 1]} : vector<8x384xf32> to vector<8x128xf32>
    %22 = vector.extract_strided_slice %12 {offsets = [0, 128], sizes = [8, 128], strides = [1, 1]} : vector<8x384xf32> to vector<8x128xf32>
    %23 = arith.addf %21, %22 : vector<8x128xf32>
    %24 = arith.negf %23 : vector<8x128xf32>
    %25 = math.exp %24 : vector<8x128xf32>
    %cst_10 = arith.constant 1.000000e+00 : f32
    %26 = vector.broadcast %cst_10 : f32 to vector<8x128xf32>
    %27 = arith.addf %26, %25 : vector<8x128xf32>
    %28 = arith.divf %26, %27 : vector<8x128xf32>
    %29 = vector.extract_strided_slice %10 {offsets = [0, 256], sizes = [8, 128], strides = [1, 1]} : vector<8x384xf32> to vector<8x128xf32>
    %30 = vector.extract_strided_slice %12 {offsets = [0, 256], sizes = [8, 128], strides = [1, 1]} : vector<8x384xf32> to vector<8x128xf32>
    %31 = arith.mulf %20, %30 : vector<8x128xf32>
    %32 = arith.addf %29, %31 : vector<8x128xf32>
    %33 = math.tanh %32 : vector<8x128xf32>
    %cst_11 = arith.constant 1.000000e+00 : f32
    %34 = vector.broadcast %cst_11 : f32 to vector<8x128xf32>
    %35 = arith.subf %34, %28 : vector<8x128xf32>
    %36 = arith.mulf %35, %33 : vector<8x128xf32>
    %37 = arith.mulf %28, %7 : vector<8x128xf32>
    %38 = arith.addf %36, %37 : vector<8x128xf32>
    %c1_i32 = arith.constant 1 : i32
    %39 = arith.index_cast %c1_i32 : i32 to index
    %c0_12 = arith.constant 0 : index
    %c0_13 = arith.constant 0 : index
    %40 = vector.load %arg1[%39, %c0_12, %c0_13] : memref<8x8x384xf32, #tpu.memory_space<vmem>>, vector<1x8x384xf32>
    %41 = vector.shape_cast %40 : vector<1x8x384xf32> to vector<8x384xf32>
    %cst_14 = arith.constant dense<0.000000e+00> : vector<8x384xf32>
    %42 = tpu.matmul %38, %3, %cst_14 {dimension_numbers = #tpu.dot_dimension_numbers<[1], [0], [0], [1], [0, 0, 1, 1], [], []>} : vector<8x128xf32>, vector<128x384xf32>, vector<8x384xf32> -> vector<8x384xf32>
    %43 = arith.addf %42, %6 : vector<8x384xf32>
    %44 = vector.extract_strided_slice %41 {offsets = [0, 0], sizes = [8, 128], strides = [1, 1]} : vector<8x384xf32> to vector<8x128xf32>
    %45 = vector.extract_strided_slice %43 {offsets = [0, 0], sizes = [8, 128], strides = [1, 1]} : vector<8x384xf32> to vector<8x128xf32>
    %46 = arith.addf %44, %45 : vector<8x128xf32>
    %47 = arith.negf %46 : vector<8x128xf32>
    %48 = math.exp %47 : vector<8x128xf32>
    %cst_15 = arith.constant 1.000000e+00 : f32
    %49 = vector.broadcast %cst_15 : f32 to vector<8x128xf32>
    %50 = arith.addf %49, %48 : vector<8x128xf32>
    %51 = arith.divf %49, %50 : vector<8x128xf32>
    %52 = vector.extract_strided_slice %41 {offsets = [0, 128], sizes = [8, 128], strides = [1, 1]} : vector<8x384xf32> to vector<8x128xf32>
    %53 = vector.extract_strided_slice %43 {offsets = [0, 128], sizes = [8, 128], strides = [1, 1]} : vector<8x384xf32> to vector<8x128xf32>
    %54 = arith.addf %52, %53 : vector<8x128xf32>
    %55 = arith.negf %54 : vector<8x128xf32>
    %56 = math.exp %55 : vector<8x128xf32>
    %cst_16 = arith.constant 1.000000e+00 : f32
    %57 = vector.broadcast %cst_16 : f32 to vector<8x128xf32>
    %58 = arith.addf %57, %56 : vector<8x128xf32>
    %59 = arith.divf %57, %58 : vector<8x128xf32>
    %60 = vector.extract_strided_slice %41 {offsets = [0, 256], sizes = [8, 128], strides = [1, 1]} : vector<8x384xf32> to vector<8x128xf32>
    %61 = vector.extract_strided_slice %43 {offsets = [0, 256], sizes = [8, 128], strides = [1, 1]} : vector<8x384xf32> to vector<8x128xf32>
    %62 = arith.mulf %51, %61 : vector<8x128xf32>
    %63 = arith.addf %60, %62 : vector<8x128xf32>
    %64 = math.tanh %63 : vector<8x128xf32>
    %cst_17 = arith.constant 1.000000e+00 : f32
    %65 = vector.broadcast %cst_17 : f32 to vector<8x128xf32>
    %66 = arith.subf %65, %59 : vector<8x128xf32>
    %67 = arith.mulf %66, %64 : vector<8x128xf32>
    %68 = arith.mulf %59, %38 : vector<8x128xf32>
    %69 = arith.addf %67, %68 : vector<8x128xf32>
    %c2_i32 = arith.constant 2 : i32
    %70 = arith.index_cast %c2_i32 : i32 to index
    %c0_18 = arith.constant 0 : index
    %c0_19 = arith.constant 0 : index
    %71 = vector.load %arg1[%70, %c0_18, %c0_19] : memref<8x8x384xf32, #tpu.memory_space<vmem>>, vector<1x8x384xf32>
    %72 = vector.shape_cast %71 : vector<1x8x384xf32> to vector<8x384xf32>
    %cst_20 = arith.constant dense<0.000000e+00> : vector<8x384xf32>
    %73 = tpu.matmul %69, %3, %cst_20 {dimension_numbers = #tpu.dot_dimension_numbers<[1], [0], [0], [1], [0, 0, 1, 1], [], []>} : vector<8x128xf32>, vector<128x384xf32>, vector<8x384xf32> -> vector<8x384xf32>
    %74 = arith.addf %73, %6 : vector<8x384xf32>
    %75 = vector.extract_strided_slice %72 {offsets = [0, 0], sizes = [8, 128], strides = [1, 1]} : vector<8x384xf32> to vector<8x128xf32>
    %76 = vector.extract_strided_slice %74 {offsets = [0, 0], sizes = [8, 128], strides = [1, 1]} : vector<8x384xf32> to vector<8x128xf32>
    %77 = arith.addf %75, %76 : vector<8x128xf32>
    %78 = arith.negf %77 : vector<8x128xf32>
    %79 = math.exp %78 : vector<8x128xf32>
    %cst_21 = arith.constant 1.000000e+00 : f32
    %80 = vector.broadcast %cst_21 : f32 to vector<8x128xf32>
    %81 = arith.addf %80, %79 : vector<8x128xf32>
    %82 = arith.divf %80, %81 : vector<8x128xf32>
    %83 = vector.extract_strided_slice %72 {offsets = [0, 128], sizes = [8, 128], strides = [1, 1]} : vector<8x384xf32> to vector<8x128xf32>
    %84 = vector.extract_strided_slice %74 {offsets = [0, 128], sizes = [8, 128], strides = [1, 1]} : vector<8x384xf32> to vector<8x128xf32>
    %85 = arith.addf %83, %84 : vector<8x128xf32>
    %86 = arith.negf %85 : vector<8x128xf32>
    %87 = math.exp %86 : vector<8x128xf32>
    %cst_22 = arith.constant 1.000000e+00 : f32
    %88 = vector.broadcast %cst_22 : f32 to vector<8x128xf32>
    %89 = arith.addf %88, %87 : vector<8x128xf32>
    %90 = arith.divf %88, %89 : vector<8x128xf32>
    %91 = vector.extract_strided_slice %72 {offsets = [0, 256], sizes = [8, 128], strides = [1, 1]} : vector<8x384xf32> to vector<8x128xf32>
    %92 = vector.extract_strided_slice %74 {offsets = [0, 256], sizes = [8, 128], strides = [1, 1]} : vector<8x384xf32> to vector<8x128xf32>
    %93 = arith.mulf %82, %92 : vector<8x128xf32>
    %94 = arith.addf %91, %93 : vector<8x128xf32>
    %95 = math.tanh %94 : vector<8x128xf32>
    %cst_23 = arith.constant 1.000000e+00 : f32
    %96 = vector.broadcast %cst_23 : f32 to vector<8x128xf32>
    %97 = arith.subf %96, %90 : vector<8x128xf32>
    %98 = arith.mulf %97, %95 : vector<8x128xf32>
    %99 = arith.mulf %90, %69 : vector<8x128xf32>
    %100 = arith.addf %98, %99 : vector<8x128xf32>
    %c3_i32 = arith.constant 3 : i32
    %101 = arith.index_cast %c3_i32 : i32 to index
    %c0_24 = arith.constant 0 : index
    %c0_25 = arith.constant 0 : index
    %102 = vector.load %arg1[%101, %c0_24, %c0_25] : memref<8x8x384xf32, #tpu.memory_space<vmem>>, vector<1x8x384xf32>
    %103 = vector.shape_cast %102 : vector<1x8x384xf32> to vector<8x384xf32>
    %cst_26 = arith.constant dense<0.000000e+00> : vector<8x384xf32>
    %104 = tpu.matmul %100, %3, %cst_26 {dimension_numbers = #tpu.dot_dimension_numbers<[1], [0], [0], [1], [0, 0, 1, 1], [], []>} : vector<8x128xf32>, vector<128x384xf32>, vector<8x384xf32> -> vector<8x384xf32>
    %105 = arith.addf %104, %6 : vector<8x384xf32>
    %106 = vector.extract_strided_slice %103 {offsets = [0, 0], sizes = [8, 128], strides = [1, 1]} : vector<8x384xf32> to vector<8x128xf32>
    %107 = vector.extract_strided_slice %105 {offsets = [0, 0], sizes = [8, 128], strides = [1, 1]} : vector<8x384xf32> to vector<8x128xf32>
    %108 = arith.addf %106, %107 : vector<8x128xf32>
    %109 = arith.negf %108 : vector<8x128xf32>
    %110 = math.exp %109 : vector<8x128xf32>
    %cst_27 = arith.constant 1.000000e+00 : f32
    %111 = vector.broadcast %cst_27 : f32 to vector<8x128xf32>
    %112 = arith.addf %111, %110 : vector<8x128xf32>
    %113 = arith.divf %111, %112 : vector<8x128xf32>
    %114 = vector.extract_strided_slice %103 {offsets = [0, 128], sizes = [8, 128], strides = [1, 1]} : vector<8x384xf32> to vector<8x128xf32>
    %115 = vector.extract_strided_slice %105 {offsets = [0, 128], sizes = [8, 128], strides = [1, 1]} : vector<8x384xf32> to vector<8x128xf32>
    %116 = arith.addf %114, %115 : vector<8x128xf32>
    %117 = arith.negf %116 : vector<8x128xf32>
    %118 = math.exp %117 : vector<8x128xf32>
    %cst_28 = arith.constant 1.000000e+00 : f32
    %119 = vector.broadcast %cst_28 : f32 to vector<8x128xf32>
    %120 = arith.addf %119, %118 : vector<8x128xf32>
    %121 = arith.divf %119, %120 : vector<8x128xf32>
    %122 = vector.extract_strided_slice %103 {offsets = [0, 256], sizes = [8, 128], strides = [1, 1]} : vector<8x384xf32> to vector<8x128xf32>
    %123 = vector.extract_strided_slice %105 {offsets = [0, 256], sizes = [8, 128], strides = [1, 1]} : vector<8x384xf32> to vector<8x128xf32>
    %124 = arith.mulf %113, %123 : vector<8x128xf32>
    %125 = arith.addf %122, %124 : vector<8x128xf32>
    %126 = math.tanh %125 : vector<8x128xf32>
    %cst_29 = arith.constant 1.000000e+00 : f32
    %127 = vector.broadcast %cst_29 : f32 to vector<8x128xf32>
    %128 = arith.subf %127, %121 : vector<8x128xf32>
    %129 = arith.mulf %128, %126 : vector<8x128xf32>
    %130 = arith.mulf %121, %100 : vector<8x128xf32>
    %131 = arith.addf %129, %130 : vector<8x128xf32>
    %c4_i32 = arith.constant 4 : i32
    %132 = arith.index_cast %c4_i32 : i32 to index
    %c0_30 = arith.constant 0 : index
    %c0_31 = arith.constant 0 : index
    %133 = vector.load %arg1[%132, %c0_30, %c0_31] : memref<8x8x384xf32, #tpu.memory_space<vmem>>, vector<1x8x384xf32>
    %134 = vector.shape_cast %133 : vector<1x8x384xf32> to vector<8x384xf32>
    %cst_32 = arith.constant dense<0.000000e+00> : vector<8x384xf32>
    %135 = tpu.matmul %131, %3, %cst_32 {dimension_numbers = #tpu.dot_dimension_numbers<[1], [0], [0], [1], [0, 0, 1, 1], [], []>} : vector<8x128xf32>, vector<128x384xf32>, vector<8x384xf32> -> vector<8x384xf32>
    %136 = arith.addf %135, %6 : vector<8x384xf32>
    %137 = vector.extract_strided_slice %134 {offsets = [0, 0], sizes = [8, 128], strides = [1, 1]} : vector<8x384xf32> to vector<8x128xf32>
    %138 = vector.extract_strided_slice %136 {offsets = [0, 0], sizes = [8, 128], strides = [1, 1]} : vector<8x384xf32> to vector<8x128xf32>
    %139 = arith.addf %137, %138 : vector<8x128xf32>
    %140 = arith.negf %139 : vector<8x128xf32>
    %141 = math.exp %140 : vector<8x128xf32>
    %cst_33 = arith.constant 1.000000e+00 : f32
    %142 = vector.broadcast %cst_33 : f32 to vector<8x128xf32>
    %143 = arith.addf %142, %141 : vector<8x128xf32>
    %144 = arith.divf %142, %143 : vector<8x128xf32>
    %145 = vector.extract_strided_slice %134 {offsets = [0, 128], sizes = [8, 128], strides = [1, 1]} : vector<8x384xf32> to vector<8x128xf32>
    %146 = vector.extract_strided_slice %136 {offsets = [0, 128], sizes = [8, 128], strides = [1, 1]} : vector<8x384xf32> to vector<8x128xf32>
    %147 = arith.addf %145, %146 : vector<8x128xf32>
    %148 = arith.negf %147 : vector<8x128xf32>
    %149 = math.exp %148 : vector<8x128xf32>
    %cst_34 = arith.constant 1.000000e+00 : f32
    %150 = vector.broadcast %cst_34 : f32 to vector<8x128xf32>
    %151 = arith.addf %150, %149 : vector<8x128xf32>
    %152 = arith.divf %150, %151 : vector<8x128xf32>
    %153 = vector.extract_strided_slice %134 {offsets = [0, 256], sizes = [8, 128], strides = [1, 1]} : vector<8x384xf32> to vector<8x128xf32>
    %154 = vector.extract_strided_slice %136 {offsets = [0, 256], sizes = [8, 128], strides = [1, 1]} : vector<8x384xf32> to vector<8x128xf32>
    %155 = arith.mulf %144, %154 : vector<8x128xf32>
    %156 = arith.addf %153, %155 : vector<8x128xf32>
    %157 = math.tanh %156 : vector<8x128xf32>
    %cst_35 = arith.constant 1.000000e+00 : f32
    %158 = vector.broadcast %cst_35 : f32 to vector<8x128xf32>
    %159 = arith.subf %158, %152 : vector<8x128xf32>
    %160 = arith.mulf %159, %157 : vector<8x128xf32>
    %161 = arith.mulf %152, %131 : vector<8x128xf32>
    %162 = arith.addf %160, %161 : vector<8x128xf32>
    %c5_i32 = arith.constant 5 : i32
    %163 = arith.index_cast %c5_i32 : i32 to index
    %c0_36 = arith.constant 0 : index
    %c0_37 = arith.constant 0 : index
    %164 = vector.load %arg1[%163, %c0_36, %c0_37] : memref<8x8x384xf32, #tpu.memory_space<vmem>>, vector<1x8x384xf32>
    %165 = vector.shape_cast %164 : vector<1x8x384xf32> to vector<8x384xf32>
    %cst_38 = arith.constant dense<0.000000e+00> : vector<8x384xf32>
    %166 = tpu.matmul %162, %3, %cst_38 {dimension_numbers = #tpu.dot_dimension_numbers<[1], [0], [0], [1], [0, 0, 1, 1], [], []>} : vector<8x128xf32>, vector<128x384xf32>, vector<8x384xf32> -> vector<8x384xf32>
    %167 = arith.addf %166, %6 : vector<8x384xf32>
    %168 = vector.extract_strided_slice %165 {offsets = [0, 0], sizes = [8, 128], strides = [1, 1]} : vector<8x384xf32> to vector<8x128xf32>
    %169 = vector.extract_strided_slice %167 {offsets = [0, 0], sizes = [8, 128], strides = [1, 1]} : vector<8x384xf32> to vector<8x128xf32>
    %170 = arith.addf %168, %169 : vector<8x128xf32>
    %171 = arith.negf %170 : vector<8x128xf32>
    %172 = math.exp %171 : vector<8x128xf32>
    %cst_39 = arith.constant 1.000000e+00 : f32
    %173 = vector.broadcast %cst_39 : f32 to vector<8x128xf32>
    %174 = arith.addf %173, %172 : vector<8x128xf32>
    %175 = arith.divf %173, %174 : vector<8x128xf32>
    %176 = vector.extract_strided_slice %165 {offsets = [0, 128], sizes = [8, 128], strides = [1, 1]} : vector<8x384xf32> to vector<8x128xf32>
    %177 = vector.extract_strided_slice %167 {offsets = [0, 128], sizes = [8, 128], strides = [1, 1]} : vector<8x384xf32> to vector<8x128xf32>
    %178 = arith.addf %176, %177 : vector<8x128xf32>
    %179 = arith.negf %178 : vector<8x128xf32>
    %180 = math.exp %179 : vector<8x128xf32>
    %cst_40 = arith.constant 1.000000e+00 : f32
    %181 = vector.broadcast %cst_40 : f32 to vector<8x128xf32>
    %182 = arith.addf %181, %180 : vector<8x128xf32>
    %183 = arith.divf %181, %182 : vector<8x128xf32>
    %184 = vector.extract_strided_slice %165 {offsets = [0, 256], sizes = [8, 128], strides = [1, 1]} : vector<8x384xf32> to vector<8x128xf32>
    %185 = vector.extract_strided_slice %167 {offsets = [0, 256], sizes = [8, 128], strides = [1, 1]} : vector<8x384xf32> to vector<8x128xf32>
    %186 = arith.mulf %175, %185 : vector<8x128xf32>
    %187 = arith.addf %184, %186 : vector<8x128xf32>
    %188 = math.tanh %187 : vector<8x128xf32>
    %cst_41 = arith.constant 1.000000e+00 : f32
    %189 = vector.broadcast %cst_41 : f32 to vector<8x128xf32>
    %190 = arith.subf %189, %183 : vector<8x128xf32>
    %191 = arith.mulf %190, %188 : vector<8x128xf32>
    %192 = arith.mulf %183, %162 : vector<8x128xf32>
    %193 = arith.addf %191, %192 : vector<8x128xf32>
    %c6_i32 = arith.constant 6 : i32
    %194 = arith.index_cast %c6_i32 : i32 to index
    %c0_42 = arith.constant 0 : index
    %c0_43 = arith.constant 0 : index
    %195 = vector.load %arg1[%194, %c0_42, %c0_43] : memref<8x8x384xf32, #tpu.memory_space<vmem>>, vector<1x8x384xf32>
    %196 = vector.shape_cast %195 : vector<1x8x384xf32> to vector<8x384xf32>
    %cst_44 = arith.constant dense<0.000000e+00> : vector<8x384xf32>
    %197 = tpu.matmul %193, %3, %cst_44 {dimension_numbers = #tpu.dot_dimension_numbers<[1], [0], [0], [1], [0, 0, 1, 1], [], []>} : vector<8x128xf32>, vector<128x384xf32>, vector<8x384xf32> -> vector<8x384xf32>
    %198 = arith.addf %197, %6 : vector<8x384xf32>
    %199 = vector.extract_strided_slice %196 {offsets = [0, 0], sizes = [8, 128], strides = [1, 1]} : vector<8x384xf32> to vector<8x128xf32>
    %200 = vector.extract_strided_slice %198 {offsets = [0, 0], sizes = [8, 128], strides = [1, 1]} : vector<8x384xf32> to vector<8x128xf32>
    %201 = arith.addf %199, %200 : vector<8x128xf32>
    %202 = arith.negf %201 : vector<8x128xf32>
    %203 = math.exp %202 : vector<8x128xf32>
    %cst_45 = arith.constant 1.000000e+00 : f32
    %204 = vector.broadcast %cst_45 : f32 to vector<8x128xf32>
    %205 = arith.addf %204, %203 : vector<8x128xf32>
    %206 = arith.divf %204, %205 : vector<8x128xf32>
    %207 = vector.extract_strided_slice %196 {offsets = [0, 128], sizes = [8, 128], strides = [1, 1]} : vector<8x384xf32> to vector<8x128xf32>
    %208 = vector.extract_strided_slice %198 {offsets = [0, 128], sizes = [8, 128], strides = [1, 1]} : vector<8x384xf32> to vector<8x128xf32>
    %209 = arith.addf %207, %208 : vector<8x128xf32>
    %210 = arith.negf %209 : vector<8x128xf32>
    %211 = math.exp %210 : vector<8x128xf32>
    %cst_46 = arith.constant 1.000000e+00 : f32
    %212 = vector.broadcast %cst_46 : f32 to vector<8x128xf32>
    %213 = arith.addf %212, %211 : vector<8x128xf32>
    %214 = arith.divf %212, %213 : vector<8x128xf32>
    %215 = vector.extract_strided_slice %196 {offsets = [0, 256], sizes = [8, 128], strides = [1, 1]} : vector<8x384xf32> to vector<8x128xf32>
    %216 = vector.extract_strided_slice %198 {offsets = [0, 256], sizes = [8, 128], strides = [1, 1]} : vector<8x384xf32> to vector<8x128xf32>
    %217 = arith.mulf %206, %216 : vector<8x128xf32>
    %218 = arith.addf %215, %217 : vector<8x128xf32>
    %219 = math.tanh %218 : vector<8x128xf32>
    %cst_47 = arith.constant 1.000000e+00 : f32
    %220 = vector.broadcast %cst_47 : f32 to vector<8x128xf32>
    %221 = arith.subf %220, %214 : vector<8x128xf32>
    %222 = arith.mulf %221, %219 : vector<8x128xf32>
    %223 = arith.mulf %214, %193 : vector<8x128xf32>
    %224 = arith.addf %222, %223 : vector<8x128xf32>
    %c7_i32 = arith.constant 7 : i32
    %225 = arith.index_cast %c7_i32 : i32 to index
    %c0_48 = arith.constant 0 : index
    %c0_49 = arith.constant 0 : index
    %226 = vector.load %arg1[%225, %c0_48, %c0_49] : memref<8x8x384xf32, #tpu.memory_space<vmem>>, vector<1x8x384xf32>
    %227 = vector.shape_cast %226 : vector<1x8x384xf32> to vector<8x384xf32>
    %cst_50 = arith.constant dense<0.000000e+00> : vector<8x384xf32>
    %228 = tpu.matmul %224, %3, %cst_50 {dimension_numbers = #tpu.dot_dimension_numbers<[1], [0], [0], [1], [0, 0, 1, 1], [], []>} : vector<8x128xf32>, vector<128x384xf32>, vector<8x384xf32> -> vector<8x384xf32>
    %229 = arith.addf %228, %6 : vector<8x384xf32>
    %230 = vector.extract_strided_slice %227 {offsets = [0, 0], sizes = [8, 128], strides = [1, 1]} : vector<8x384xf32> to vector<8x128xf32>
    %231 = vector.extract_strided_slice %229 {offsets = [0, 0], sizes = [8, 128], strides = [1, 1]} : vector<8x384xf32> to vector<8x128xf32>
    %232 = arith.addf %230, %231 : vector<8x128xf32>
    %233 = arith.negf %232 : vector<8x128xf32>
    %234 = math.exp %233 : vector<8x128xf32>
    %cst_51 = arith.constant 1.000000e+00 : f32
    %235 = vector.broadcast %cst_51 : f32 to vector<8x128xf32>
    %236 = arith.addf %235, %234 : vector<8x128xf32>
    %237 = arith.divf %235, %236 : vector<8x128xf32>
    %238 = vector.extract_strided_slice %227 {offsets = [0, 128], sizes = [8, 128], strides = [1, 1]} : vector<8x384xf32> to vector<8x128xf32>
    %239 = vector.extract_strided_slice %229 {offsets = [0, 128], sizes = [8, 128], strides = [1, 1]} : vector<8x384xf32> to vector<8x128xf32>
    %240 = arith.addf %238, %239 : vector<8x128xf32>
    %241 = arith.negf %240 : vector<8x128xf32>
    %242 = math.exp %241 : vector<8x128xf32>
    %cst_52 = arith.constant 1.000000e+00 : f32
    %243 = vector.broadcast %cst_52 : f32 to vector<8x128xf32>
    %244 = arith.addf %243, %242 : vector<8x128xf32>
    %245 = arith.divf %243, %244 : vector<8x128xf32>
    %246 = vector.extract_strided_slice %227 {offsets = [0, 256], sizes = [8, 128], strides = [1, 1]} : vector<8x384xf32> to vector<8x128xf32>
    %247 = vector.extract_strided_slice %229 {offsets = [0, 256], sizes = [8, 128], strides = [1, 1]} : vector<8x384xf32> to vector<8x128xf32>
    %248 = arith.mulf %237, %247 : vector<8x128xf32>
    %249 = arith.addf %246, %248 : vector<8x128xf32>
    %250 = math.tanh %249 : vector<8x128xf32>
    %cst_53 = arith.constant 1.000000e+00 : f32
    %251 = vector.broadcast %cst_53 : f32 to vector<8x128xf32>
    %252 = arith.subf %251, %245 : vector<8x128xf32>
    %253 = arith.mulf %252, %250 : vector<8x128xf32>
    %254 = arith.mulf %245, %224 : vector<8x128xf32>
    %255 = arith.addf %253, %254 : vector<8x128xf32>
    %c8_i32 = arith.constant 8 : i32
    %c0_54 = arith.constant 0 : index
    %c0_55 = arith.constant 0 : index
    %256 = vector.load %arg5[%c0_54, %c0_55] : memref<8x128xf32, #tpu.memory_space<vmem>>, vector<8x128xf32>
    tpu.vector_store %arg5[%c0_54, %c0_55], %255 {strides = array<i32>} : memref<8x128xf32, #tpu.memory_space<vmem>>, vector<8x128xf32>,
    %c0_i32_56 = arith.constant 0 : i32
    %257 = arith.cmpi eq, %arg0, %c0_i32_56 : i32
    %258 = arith.extui %257 : i1 to i32
    %c0_i32_57 = arith.constant 0 : i32
    %259 = arith.cmpi ne, %258, %c0_i32_57 : i32
    scf.if %259 {
      %cst_58 = arith.constant 0.000000e+00 : f32
      %260 = vector.broadcast %cst_58 : f32 to vector<8x128xf32>
      %261 = arith.maximumf %255, %260 : vector<8x128xf32>
      %c0_59 = arith.constant 0 : index
      %c0_60 = arith.constant 0 : index
      %262 = vector.load %arg4[%c0_59, %c0_60] : memref<8x128xf32, #tpu.memory_space<vmem>>, vector<8x128xf32>
      tpu.vector_store %arg4[%c0_59, %c0_60], %261 {strides = array<i32>} : memref<8x128xf32, #tpu.memory_space<vmem>>, vector<8x128xf32>,
    } else {
    }
    return
  }
  func.func @transform_0(%arg0: i32) -> (i32, i32, i32) {
    %c0_i32 = arith.constant 0 : i32
    %c0_i32_0 = arith.constant 0 : i32
    %c0_i32_1 = arith.constant 0 : i32
    return %arg0, %c0_i32, %c0_i32_0 : i32, i32, i32
  }
  func.func @transform_1(%arg0: i32) -> (i32, i32) {
    %c0_i32 = arith.constant 0 : i32
    %c0_i32_0 = arith.constant 0 : i32
    %c0_i32_1 = arith.constant 0 : i32
    return %c0_i32, %c0_i32_0 : i32, i32
  }
  func.func @transform_2(%arg0: i32) -> (i32, i32) {
    %c0_i32 = arith.constant 0 : i32
    %c0_i32_0 = arith.constant 0 : i32
    %c0_i32_1 = arith.constant 0 : i32
    return %c0_i32, %c0_i32_0 : i32, i32
  }
  func.func @transform_3(%arg0: i32) -> (i32, i32) {
    %c0_i32 = arith.constant 0 : i32
    %c0_i32_0 = arith.constant 0 : i32
    %c0_i32_1 = arith.constant 0 : i32
    return %c0_i32, %c0_i32_0 : i32, i32
  }
}

</mosaic_0001>

<bundles_post_ra>
// kernel: gru_forward.2
= control target key start
LH: loop header
LB: loop body
LE: loop exit
PB: predicated region body
PF: predicated region fallthrough
CT: control target
= control target key end

     0   :  { %8 = vsyncpa [#allocation4], 0  ;;  %s2062_s12 = smov [#allocation3]   ;;  %s2985_s0 = inlined_call_operand.vmem [shape: f32[8,8,384], index: 0, kind: input, shape index: {}]   ;;  %s2986_s1 = inlined_call_operand.hbm [shape: f32[128,384], index: 1, kind: input, shape index: {}]   ;;  %s2987_s2 = inlined_call_operand.vmem [shape: f32[1,384], index: 2, kind: input, shape index: {}]   ;;  %s2988_s3 = inlined_call_operand.vmem [shape: f32[8,8,128], index: 3, kind: output, shape index: {}]  }
   0x1   :  { %s16_s13 = sshll.u32 %s2062_s12, 4  ;;  %s17_s13 = int_to_ptr.vmem [resolvable:$true] %s16_s13 }
   0x2   :  { %s2048_s14 = scalar_lea.vmem %s17_s13, 6144  ;;  %p2053_p1 = scmp.lt.s32.totalorder %s17_s13, %s17_s13 }
   0x3   :  { %p2049_p0 = scmp.ne.s32.totalorder %s17_s13, %s2048_s14  ;;  %p2054_p2 = scmp.lt.s32.totalorder %s2048_s14, %s2048_s14 }
   0x5   :  { %p2055_p3 = por %p2054_p2, %p2053_p1 }
   0x7   :  { %p2056_p4 = pnand %p2055_p3, %p2049_p0 }
   0x9   :  { %2059 = shalt.err (!%p2056_p4)
}
   0xa   :  { %s2063_s15 = smov 384   ;;  %s2064_s16 = smov 24  }
   0xb   :  { %22 = dma.hbm_to_vmem [thread:$0]  %s2986_s1, 6144, %s17_s13, [#allocation4], %s2063_s15, %s2063_s15, %s2064_s16  }
   0xc   :  { %2060 = dma.done.wait [#allocation4], 6144  }
   0xd   :  { %2061 = vsyncadd [#allocation4], 4294961152  ;;  %v2989_v0 = vmov 0.0   ;;  %vm2066_vm0 = vmmov 0   ;;  %v2094_v1 = vld [vmem:[#allocation3 + $0x170] sm:$0xff]  ;;  %v2096_v2 = vld [vmem:[#allocation3 + $0x168] sm:$0xff]  ;;  %v83_v49 = vlaneseq }
   0xe   :  { %166 = vmatprep.mubr.f32.mxu0 %v2989_v0  ;;  %1627 = vmatprep.subr.mxu1 %v2989_v0  ;;  %3005 = vst [vmem:[#allocation6_spill] sm:$0xff] %v2094_v1  ;;  %v2098_v3 = vld [vmem:[#allocation3 + $0x158] sm:$0xff]  ;;  %v2101_v4 = vld [vmem:[#allocation3 + $0x150] sm:$0xff]  ;;  %v2104_v5 = vld [vmem:[#allocation3 + $0x140] sm:$0xff] }
   0xf   :  { %1659 = vmatprep.mubr.msk.f32.mxu1 %vm2066_vm0, %v2989_v0  ;;  %102 = vmatprep.subr.mxu0 %v2094_v1  ;;  %v2107_v6 = vld [vmem:[#allocation3 + $0x138] sm:$0xff]  ;;  %v2110_v7 = vld [vmem:[#allocation3 + $0x128] sm:$0xff]  ;;  %v2113_v8 = vld [vmem:[#allocation3 + $0x120] sm:$0xff]  ;;  %v84_v50 = vshrl.u32 %v83_v49, 7 }
  0x10   :  { %103 = vmatpush1.msra.mxu0 %v2096_v2  ;;  %v2116_v9 = vld [vmem:[#allocation3 + $0x110] sm:$0xff]  ;;  %v2119_v10 = vld [vmem:[#allocation3 + $0x108] sm:$0xff]  ;;  %v2122_v11 = vld [vmem:[#allocation3 + $0xf8] sm:$0xff] }
  0x11   :  { %104 = vmatprep.subr.mxu0 %v2098_v3  ;;  %v2125_v12 = vld [vmem:[#allocation3 + $0xf0] sm:$0xff]  ;;  %v2128_v13 = vld [vmem:[#allocation3 + $0xe0] sm:$0xff]  ;;  %v2130_v14 = vld [vmem:[#allocation3 + $0x178] sm:$0xff]  ;;  %v85_v51 = vsub.s32 0, %v84_v50  ;;  %v89_v54 = vsub.s32 1, %v84_v50 }
  0x12   :  { %105 = vmatpush1.msra.mxu0 %v2101_v4  ;;  %v2133_v15 = vld [vmem:[#allocation3 + $0xd8] sm:$0xff]  ;;  %1628 = vmatpush3.msra.mxu1 %v2130_v14  ;;  %v2136_v16 = vld [vmem:[#allocation3 + $0x160] sm:$0xff]  ;;  %v2139_v17 = vld [vmem:[#allocation3 + $0xc8] sm:$0xff] }
  0x13   :  { %106 = vmatprep.subr.mxu0 %v2104_v5  ;;  %1629 = vmatprep.subr.mxu1 %v2989_v0  ;;  %v2142_v18 = vld [vmem:[#allocation3 + $0x148] sm:$0xff]  ;;  %v2145_v19 = vld [vmem:[#allocation3 + $0xc0] sm:$0xff]  ;;  %v2149_v20 = vld [vmem:[#allocation3 + $0xb0] sm:$0xff] }
  0x14   :  { %107 = vmatpush1.msra.mxu0 %v2107_v6  ;;  %1630 = vmatpush3.msra.mxu1 %v2136_v16  ;;  %v2152_v21 = vld [vmem:[#allocation3 + $0x130] sm:$0xff]  ;;  %v2155_v22 = vld [vmem:[#allocation3 + $0xa8] sm:$0xff]  ;;  %v2159_v23 = vld [vmem:[#allocation3 + $0x98] sm:$0xff] }
  0x15   :  { %108 = vmatprep.subr.mxu0 %v2110_v7  ;;  %1631 = vmatprep.subr.mxu1 %v2989_v0  ;;  %v2162_v24 = vld [vmem:[#allocation3 + $0x118] sm:$0xff]  ;;  %v2165_v25 = vld [vmem:[#allocation3 + $0x90] sm:$0xff]  ;;  %v2169_v26 = vld [vmem:[#allocation3 + $0x80] sm:$0xff] }
  0x16   :  { %109 = vmatpush1.msra.mxu0 %v2113_v8  ;;  %1632 = vmatpush3.msra.mxu1 %v2142_v18  ;;  %v2172_v27 = vld [vmem:[#allocation3 + $0x100] sm:$0xff]  ;;  %v2175_v28 = vld [vmem:[#allocation3 + $0x78] sm:$0xff]  ;;  %v2179_v29 = vld [vmem:[#allocation3 + $0x68] sm:$0xff] }
  0x17   :  { %110 = vmatprep.subr.mxu0 %v2116_v9  ;;  %1633 = vmatprep.subr.mxu1 %v2989_v0  ;;  %v2182_v30 = vld [vmem:[#allocation3 + $0xe8] sm:$0xff]  ;;  %v2185_v31 = vld [vmem:[#allocation3 + $0x60] sm:$0xff]  ;;  %v2189_v32 = vld [vmem:[#allocation3 + $0x50] sm:$0xff] }
  0x18   :  { %111 = vmatpush1.msra.mxu0 %v2119_v10  ;;  %1634 = vmatpush3.msra.mxu1 %v2152_v21  ;;  %v2192_v33 = vld [vmem:[#allocation3 + $0xd0] sm:$0xff]  ;;  %v2195_v34 = vld [vmem:[#allocation3 + $0x48] sm:$0xff]  ;;  %v2199_v35 = vld [vmem:[#allocation3 + $0x38] sm:$0xff] }
  0x19   :  { %112 = vmatprep.subr.mxu0 %v2122_v11  ;;  %1635 = vmatprep.subr.mxu1 %v2989_v0  ;;  %v2202_v36 = vld [vmem:[#allocation3 + $0xb8] sm:$0xff]  ;;  %v2205_v37 = vld [vmem:[#allocation3 + $0x30] sm:$0xff]  ;;  %v2209_v38 = vld [vmem:[#allocation3 + $0x20] sm:$0xff] }
  0x1a   :  { %113 = vmatpush1.msra.mxu0 %v2125_v12  ;;  %1636 = vmatpush3.msra.mxu1 %v2162_v24  ;;  %v2212_v39 = vld [vmem:[#allocation3 + $0xa0] sm:$0xff]  ;;  %v2215_v40 = vld [vmem:[#allocation3 + $0x18] sm:$0xff]  ;;  %v2219_v41 = vld [vmem:[#allocation3 + $0x8] sm:$0xff] }
  0x1b   :  { %114 = vmatprep.subr.mxu0 %v2128_v13  ;;  %1637 = vmatprep.subr.mxu1 %v2989_v0  ;;  %3006 = vst [vmem:[#allocation7_spill] sm:$0xff] %v2219_v41  ;;  %v2222_v42 = vld [vmem:[#allocation3 + $0x88] sm:$0xff]  ;;  %v2225_v43 = vld [vmem:[#allocation3] sm:$0xff]  ;;  %v2230_v44 = vld [vmem:[#allocation3 + $0x70] sm:$0xff] }
  0x1c   :  { %115 = vmatpush1.msra.mxu0 %v2133_v15  ;;  %1638 = vmatpush3.msra.mxu1 %v2172_v27  ;;  %3007 = vst [vmem:[#allocation8_spill] sm:$0xff] %v2225_v43  ;;  %v2236_v45 = vld [vmem:[#allocation3 + $0x58] sm:$0xff]  ;;  %v2241_v46 = vld [vmem:[#allocation3 + $0x40] sm:$0xff]  ;;  %v2247_v47 = vld [vmem:[#allocation3 + $0x28] sm:$0xff] }
  0x1d   :  { %116 = vmatprep.subr.mxu0 %v2139_v17  ;;  %1639 = vmatprep.subr.mxu1 %v2989_v0  ;;  %3008 = vst [vmem:[#allocation9_spill] sm:$0xff] %v2247_v47  ;;  %v2253_v48 = vld [vmem:[#allocation3 + $0x10] sm:$0xff]  ;;  %v81_v52 = vld [vmem:[%s2987_s2] sm:$0x7]  ;;  %v100_v63 = vld [vmem:[%s2985_s0 + $0x8] sm:$0xff] }
  0x1e   :  { %117 = vmatpush1.msra.mxu0 %v2145_v19  ;;  %1640 = vmatpush3.msra.mxu1 %v2182_v30  ;;  %3009 = vst [vmem:[#allocation10_spill] sm:$0xff] %v2253_v48  ;;  %v2327_v53 = vrot.slane %v81_v52, %v85_v51  ;;  %v99_v55 = vld [vmem:[%s2985_s0] sm:$0xff]  ;;  %v2333_v58 = vrot.slane %v81_v52, %v89_v54  ;;  %v93_v54 = vsub.s32 2, %v84_v50 }
  0x1f   :  { %118 = vmatprep.subr.mxu0 %v2149_v20  ;;  %1641 = vmatprep.subr.mxu1 %v2989_v0 }
  0x20   :  { %119 = vmatpush1.msra.mxu0 %v2155_v22  ;;  %1642 = vmatpush3.msra.mxu1 %v2192_v33 }
  0x21   :  { %120 = vmatprep.subr.mxu0 %v2159_v23  ;;  %1643 = vmatprep.subr.mxu1 %v2989_v0 }
  0x22   :  { %121 = vmatpush1.msra.mxu0 %v2165_v25  ;;  %1644 = vmatpush3.msra.mxu1 %v2202_v36 }
  0x23   :  { %122 = vmatprep.subr.mxu0 %v2169_v26  ;;  %1645 = vmatprep.subr.mxu1 %v2989_v0 }
  0x24   :  { %123 = vmatpush1.msra.mxu0 %v2175_v28  ;;  %1646 = vmatpush3.msra.mxu1 %v2212_v39 }
  0x25   :  { %124 = vmatprep.subr.mxu0 %v2179_v29  ;;  %1647 = vmatprep.subr.mxu1 %v2989_v0 }
  0x26   :  { %125 = vmatpush1.msra.mxu0 %v2185_v31  ;;  %1648 = vmatpush3.msra.mxu1 %v2222_v42 }
  0x27   :  { %126 = vmatprep.subr.mxu0 %v2189_v32  ;;  %1649 = vmatprep.subr.mxu1 %v2989_v0 }
  0x28   :  { %127 = vmatpush1.msra.mxu0 %v2195_v34  ;;  %1650 = vmatpush3.msra.mxu1 %v2230_v44 }
  0x29   :  { %128 = vmatprep.subr.mxu0 %v2199_v35  ;;  %1651 = vmatprep.subr.mxu1 %v2989_v0 }
  0x2a   :  { %129 = vmatpush1.msra.mxu0 %v2205_v37  ;;  %1652 = vmatpush3.msra.mxu1 %v2236_v45 }
  0x2b   :  { %130 = vmatprep.subr.mxu0 %v2209_v38  ;;  %1653 = vmatprep.subr.mxu1 %v2989_v0 }
  0x2c   :  { %131 = vmatpush1.msra.mxu0 %v2215_v40  ;;  %1654 = vmatpush3.msra.mxu1 %v2241_v46 }
  0x2d   :  { %132 = vmatprep.subr.mxu0 %v2219_v41  ;;  %1655 = vmatprep.subr.mxu1 %v2989_v0 }
  0x2e   :  { %133 = vmatpush1.msra.mxu0 %v2225_v43  ;;  %1656 = vmatpush3.msra.mxu1 %v2247_v47 }
  0x2f   :  { %167 = vmatmul.mubr.f32.vlgmr.msra.gmra.mxu0 %v2989_v0  ;;  %269 = vmatprep.subr.mxu0 %v2094_v1 }
  0x30   :  { %270 = vmatpush1.msra.mxu0 %v2096_v2  ;;  %1657 = vmatprep.subr.mxu1 %v2989_v0 }
  0x31   :  { %271 = vmatprep.subr.mxu0 %v2098_v3  ;;  %1658 = vmatpush3.msra.mxu1 %v2253_v48 }
  0x32   :  { %272 = vmatpush1.msra.mxu0 %v2101_v4  ;;  %1660 = vmatmul.mubr.f32.vlgmr.msra.gmra.mxu1 %v2989_v0 }
  0x33   :  { %273 = vmatprep.subr.mxu0 %v2104_v5  ;;  %1662 = vmatprep.subr.mxu1 %v2989_v0 }
  0x34   :  { %274 = vmatpush1.msra.mxu0 %v2107_v6  ;;  %1663 = vmatpush3.msra.mxu1 %v2130_v14 }
  0x35   :  { %275 = vmatprep.subr.mxu0 %v2110_v7  ;;  %1664 = vmatprep.subr.mxu1 %v2989_v0 }
  0x36   :  { %276 = vmatpush1.msra.mxu0 %v2113_v8  ;;  %1665 = vmatpush3.msra.mxu1 %v2136_v16 }
  0x37   :  { %277 = vmatprep.subr.mxu0 %v2116_v9  ;;  %1666 = vmatprep.subr.mxu1 %v2989_v0 }
  0x38   :  { %278 = vmatpush1.msra.mxu0 %v2119_v10  ;;  %1667 = vmatpush3.msra.mxu1 %v2142_v18 }
  0x39   :  { %279 = vmatprep.subr.mxu0 %v2122_v11  ;;  %1668 = vmatprep.subr.mxu1 %v2989_v0 }
  0x3a   :  { %280 = vmatpush1.msra.mxu0 %v2125_v12  ;;  %1669 = vmatpush3.msra.mxu1 %v2152_v21 }
  0x3b   :  { %281 = vmatprep.subr.mxu0 %v2128_v13  ;;  %1670 = vmatprep.subr.mxu1 %v2989_v0 }
  0x3c   :  { %282 = vmatpush1.msra.mxu0 %v2133_v15  ;;  %1671 = vmatpush3.msra.mxu1 %v2162_v24 }
  0x3d   :  { %283 = vmatprep.subr.mxu0 %v2139_v17  ;;  %1672 = vmatprep.subr.mxu1 %v2989_v0 }
  0x3e   :  { %284 = vmatpush1.msra.mxu0 %v2145_v19  ;;  %1673 = vmatpush3.msra.mxu1 %v2172_v27 }
  0x3f   :  { %285 = vmatprep.subr.mxu0 %v2149_v20  ;;  %1674 = vmatprep.subr.mxu1 %v2989_v0 }
  0x40   :  { %286 = vmatpush1.msra.mxu0 %v2155_v22  ;;  %1675 = vmatpush3.msra.mxu1 %v2182_v30 }
  0x41   :  { %287 = vmatprep.subr.mxu0 %v2159_v23  ;;  %1676 = vmatprep.subr.mxu1 %v2989_v0 }
  0x42   :  { %288 = vmatpush1.msra.mxu0 %v2165_v25  ;;  %1677 = vmatpush3.msra.mxu1 %v2192_v33 }
  0x43   :  { %289 = vmatprep.subr.mxu0 %v2169_v26  ;;  %1678 = vmatprep.subr.mxu1 %v2989_v0 }
  0x44   :  { %290 = vmatpush1.msra.mxu0 %v2175_v28  ;;  %1679 = vmatpush3.msra.mxu1 %v2202_v36 }
  0x45   :  { %291 = vmatprep.subr.mxu0 %v2179_v29  ;;  %1680 = vmatprep.subr.mxu1 %v2989_v0 }
  0x46   :  { %292 = vmatpush1.msra.mxu0 %v2185_v31  ;;  %1681 = vmatpush3.msra.mxu1 %v2212_v39 }
  0x47   :  { %293 = vmatprep.subr.mxu0 %v2189_v32  ;;  %1682 = vmatprep.subr.mxu1 %v2989_v0 }
  0x48   :  { %294 = vmatpush1.msra.mxu0 %v2195_v34  ;;  %1683 = vmatpush3.msra.mxu1 %v2222_v42 }
  0x49   :  { %295 = vmatprep.subr.mxu0 %v2199_v35  ;;  %1684 = vmatprep.subr.mxu1 %v2989_v0 }
  0x4a   :  { %296 = vmatpush1.msra.mxu0 %v2205_v37  ;;  %1685 = vmatpush3.msra.mxu1 %v2230_v44 }
  0x4b   :  { %297 = vmatprep.subr.mxu0 %v2209_v38  ;;  %1686 = vmatprep.subr.mxu1 %v2989_v0 }
  0x4c   :  { %298 = vmatpush1.msra.mxu0 %v2215_v40  ;;  %1687 = vmatpush3.msra.mxu1 %v2236_v45 }
  0x4d   :  { %299 = vmatprep.subr.mxu0 %v2219_v41  ;;  %333 = vmatprep.mubr.f32.mxu0 %v2989_v0 }
  0x4e   :  { %300 = vmatpush1.msra.mxu0 %v2225_v43  ;;  %1688 = vmatprep.subr.mxu1 %v2989_v0 }
  0x4f   :  { %1694 = vmatprep.mubr.msk.f32.mxu1 %vm2066_vm0, %v2989_v0  ;;  %1689 = vmatpush3.msra.mxu1 %v2241_v46 }
  0x50   :  { %437 = vmatprep.subr.mxu0 %v2094_v1  ;;  %1690 = vmatprep.subr.mxu1 %v2989_v0 }
  0x51   :  { %1691 = vmatpush3.msra.mxu1 %v2247_v47 }
  0x52   :  { %1692 = vmatprep.subr.mxu1 %v2989_v0 }
  0x53   :  { %1693 = vmatpush3.msra.mxu1 %v2253_v48 }
  0x54   :  { %1697 = vmatprep.subr.mxu1 %v2989_v0 }
  0xef   :  { %v168_v56 = vpop.f32.mrf.mxu0 }
  0xf0   :  { %v169_v57 = vadd.f32 %v168_v56, %v2327_v53  ;;  %v2339_v56 = vrot.slane %v81_v52, %v93_v54  ;;  %v3012_v54 = vld [vmem:[#allocation10_spill] sm:$0xff] }
  0xf1   :  { %v170_v59 = vpop.f32.mrf.mxu0 }
  0xf2   :  { %v243_v60 = vadd.f32 %v169_v57, %v99_v55  ;;  %v171_v62 = vadd.f32 %v170_v59, %v2333_v58  ;;  %v239_v51 = vpop.f32.mrf.mxu1 }
  0xf3   :  { %v240_v59 = vadd.f32 %v239_v51, %v2339_v56  ;;  %v3011_v51 = vld [vmem:[#allocation8_spill] sm:$0xff] }
  0xf4   :  { %v1447_v61 = vmul.f32 -1.442695, %v243_v60  ;;  %v250_v49 = vadd.f32 %v171_v62, %v100_v63  ;;  %v1661_v0 = vpop.f32.mrf.mxu1 }
  0xf6   :  { %1912 = vpow2.f32 %v1447_v61  ;;  %v1448_v1 = vmul.f32 -1.442695, %v250_v49  ;;  %v101_v61 = vld [vmem:[%s2985_s0 + $0x10] sm:$0xff]  ;;  %v3010_v49 = vmov 0.0  }
  0xf8   :  { %1914 = vpow2.f32 %v1448_v1 }
 0x103   :  { %v1913_v48 = vpop.eup %1912 }
 0x104   :  { %v247_v43 = vadd.f32 1.0, %v1913_v48 }
 0x105   :  { %v1915_v55 = vpop.eup %1914 }
 0x106   :  { %1916 = vrcp.f32 %v247_v43  ;;  %v254_v57 = vadd.f32 1.0, %v1915_v55  ;;  %v3013_v55 = vld [vmem:[#allocation6_spill] sm:$0xff] }
 0x108   :  { %1918 = vrcp.f32 %v254_v57  ;;  %v1449_v57 = vld [vmem:[%s2985_s0 + $0x18] sm:$0xff] }
 0x113   :  { %v1917_v60 = vpop.eup %1916 }
 0x114   :  { %v257_v62 = vmul.f32 %v1917_v60, %v240_v59 }
 0x115   :  { %v1919_v1 = vpop.eup %1918 }
 0x116   :  { %v258_v0 = vadd.f32 %v257_v62, %v101_v61  ;;  %v260_v63 = vsub.f32 1.0, %v1919_v1  ;;  %v262_v50 = vmul.f32 0.0, %v1919_v1 }
 0x118   :  { %1920 = vtanh.f32 %v258_v0 }
 0x125   :  { %v1921_v48 = vpop.eup %1920 }
 0x126   :  { %v261_v43 = vmul.f32 %v1921_v48, %v260_v63 }
 0x128   :  { %v2345_v52 = vadd.f32 %v262_v50, %v261_v43  ;;  %v1450_v43 = vld [vmem:[%s2985_s0 + $0x20] sm:$0xff] }
 0x12a   :  { %264 = vst [vmem:[%s2988_s3] sm:$0xff] %v2345_v52  ;;  %334 = vmatmul.mubr.f32.vlgmr.msra.gmra.mxu0 %v2345_v52  ;;  %1695 = vmatmul.mubr.f32.vlgmr.msra.gmra.mxu1 %v2345_v52 }
 0x12b   :  { %438 = vmatpush1.msra.mxu0 %v2096_v2  ;;  %1698 = vmatpush3.msra.mxu1 %v2130_v14 }
 0x12c   :  { %439 = vmatprep.subr.mxu0 %v2098_v3  ;;  %1699 = vmatprep.subr.mxu1 %v3010_v49 }
 0x12d   :  { %440 = vmatpush1.msra.mxu0 %v2101_v4  ;;  %1700 = vmatpush3.msra.mxu1 %v2136_v16 }
 0x12e   :  { %441 = vmatprep.subr.mxu0 %v2104_v5  ;;  %1701 = vmatprep.subr.mxu1 %v3010_v49 }
 0x12f   :  { %442 = vmatpush1.msra.mxu0 %v2107_v6  ;;  %1702 = vmatpush3.msra.mxu1 %v2142_v18 }
 0x130   :  { %443 = vmatprep.subr.mxu0 %v2110_v7  ;;  %1703 = vmatprep.subr.mxu1 %v3010_v49 }
 0x131   :  { %444 = vmatpush1.msra.mxu0 %v2113_v8  ;;  %1704 = vmatpush3.msra.mxu1 %v2152_v21 }
 0x132   :  { %445 = vmatprep.subr.mxu0 %v2116_v9  ;;  %1705 = vmatprep.subr.mxu1 %v3010_v49 }
 0x133   :  { %446 = vmatpush1.msra.mxu0 %v2119_v10  ;;  %1706 = vmatpush3.msra.mxu1 %v2162_v24 }
 0x134   :  { %447 = vmatprep.subr.mxu0 %v2122_v11  ;;  %1707 = vmatprep.subr.mxu1 %v3010_v49 }
 0x135   :  { %448 = vmatpush1.msra.mxu0 %v2125_v12  ;;  %1708 = vmatpush3.msra.mxu1 %v2172_v27 }
 0x136   :  { %449 = vmatprep.subr.mxu0 %v2128_v13  ;;  %1709 = vmatprep.subr.mxu1 %v3010_v49 }
 0x137   :  { %450 = vmatpush1.msra.mxu0 %v2133_v15  ;;  %1710 = vmatpush3.msra.mxu1 %v2182_v30 }
 0x138   :  { %451 = vmatprep.subr.mxu0 %v2139_v17  ;;  %1711 = vmatprep.subr.mxu1 %v3010_v49 }
 0x139   :  { %452 = vmatpush1.msra.mxu0 %v2145_v19  ;;  %1712 = vmatpush3.msra.mxu1 %v2192_v33 }
 0x13a   :  { %453 = vmatprep.subr.mxu0 %v2149_v20  ;;  %1713 = vmatprep.subr.mxu1 %v3010_v49 }
 0x13b   :  { %454 = vmatpush1.msra.mxu0 %v2155_v22  ;;  %1714 = vmatpush3.msra.mxu1 %v2202_v36 }
 0x13c   :  { %455 = vmatprep.subr.mxu0 %v2159_v23  ;;  %1715 = vmatprep.subr.mxu1 %v3010_v49 }
 0x13d   :  { %456 = vmatpush1.msra.mxu0 %v2165_v25  ;;  %1716 = vmatpush3.msra.mxu1 %v2212_v39 }
 0x13e   :  { %457 = vmatprep.subr.mxu0 %v2169_v26  ;;  %1717 = vmatprep.subr.mxu1 %v3010_v49 }
 0x13f   :  { %458 = vmatpush1.msra.mxu0 %v2175_v28  ;;  %1718 = vmatpush3.msra.mxu1 %v2222_v42 }
 0x140   :  { %459 = vmatprep.subr.mxu0 %v2179_v29  ;;  %1719 = vmatprep.subr.mxu1 %v3010_v49 }
 0x141   :  { %460 = vmatpush1.msra.mxu0 %v2185_v31  ;;  %1720 = vmatpush3.msra.mxu1 %v2230_v44 }
 0x142   :  { %461 = vmatprep.subr.mxu0 %v2189_v32  ;;  %1721 = vmatprep.subr.mxu1 %v3010_v49 }
 0x143   :  { %462 = vmatpush1.msra.mxu0 %v2195_v34  ;;  %1722 = vmatpush3.msra.mxu1 %v2236_v45 }
 0x144   :  { %463 = vmatprep.subr.mxu0 %v2199_v35  ;;  %1723 = vmatprep.subr.mxu1 %v3010_v49 }
 0x145   :  { %464 = vmatpush1.msra.mxu0 %v2205_v37  ;;  %1724 = vmatpush3.msra.mxu1 %v2241_v46 }
 0x146   :  { %465 = vmatprep.subr.mxu0 %v2209_v38  ;;  %1725 = vmatprep.subr.mxu1 %v3010_v49 }
 0x147   :  { %466 = vmatpush1.msra.mxu0 %v2215_v40  ;;  %1726 = vmatpush3.msra.mxu1 %v2247_v47 }
 0x148   :  { %467 = vmatprep.subr.mxu0 %v2219_v41  ;;  %1727 = vmatprep.subr.mxu1 %v3010_v49 }
 0x149   :  { %468 = vmatpush1.msra.mxu0 %v3011_v51  ;;  %501 = vmatprep.mubr.f32.mxu0 %v3010_v49 }
 0x14a   :  { %1728 = vmatpush3.msra.mxu1 %v3012_v54  ;;  %1729 = vmatprep.mubr.msk.f32.mxu1 %vm2066_vm0, %v3010_v49 }
 0x14b   :  { %605 = vmatprep.subr.mxu0 %v3013_v55  ;;  %1732 = vmatprep.subr.mxu1 %v3010_v49 }
 0x1ea   :  { %v335_v59 = vpop.f32.mrf.mxu0  ;;  %v406_v60 = vpop.f32.mrf.mxu1 }
 0x1eb   :  { %v336_v61 = vadd.f32 %v335_v59, %v2327_v53  ;;  %v407_v59 = vadd.f32 %v406_v60, %v2339_v56  ;;  %v3017_v60 = vld [vmem:[#allocation10_spill] sm:$0xff] }
 0x1ec   :  { %v337_v62 = vpop.f32.mrf.mxu0  ;;  %v1696_v0 = vpop.f32.mrf.mxu1 }
 0x1ed   :  { %v410_v1 = vadd.f32 %v1449_v57, %v336_v61  ;;  %v338_v48 = vadd.f32 %v337_v62, %v2333_v58  ;;  %v1451_v57 = vld [vmem:[%s2985_s0 + $0x28] sm:$0xff] }
 0x1ef   :  { %v1452_v63 = vmul.f32 -1.442695, %v410_v1  ;;  %v417_v50 = vadd.f32 %v1450_v43, %v338_v48  ;;  %v3018_v43 = vld [vmem:[#allocation6_spill] sm:$0xff] }
 0x1f1   :  { %1922 = vpow2.f32 %v1452_v63  ;;  %v1453_v55 = vmul.f32 -1.442695, %v417_v50  ;;  %v1455_v50 = vld [vmem:[%s2985_s0 + $0x30] sm:$0xff] }
 0x1f3   :  { %1924 = vpow2.f32 %v1453_v55 }
 0x1fe   :  { %v1923_v54 = vpop.eup %1922 }
 0x1ff   :  { %v414_v51 = vadd.f32 1.0, %v1923_v54 }
 0x200   :  { %v1925_v41 = vpop.eup %1924 }
 0x201   :  { %1926 = vrcp.f32 %v414_v51  ;;  %v421_v47 = vadd.f32 1.0, %v1925_v41  ;;  %v3014_v41 = vld [vmem:[#allocation9_spill] sm:$0xff] }
 0x203   :  { %1928 = vrcp.f32 %v421_v47  ;;  %v3015_v47 = vld [vmem:[#allocation7_spill] sm:$0xff] }
 0x20e   :  { %v1927_v0 = vpop.eup %1926 }
 0x20f   :  { %v424_v61 = vmul.f32 %v1927_v0, %v407_v59 }
 0x210   :  { %v1929_v1 = vpop.eup %1928 }
 0x211   :  { %v425_v62 = vadd.f32 %v1451_v57, %v424_v61  ;;  %v427_v63 = vsub.f32 1.0, %v1929_v1  ;;  %v429_v54 = vmul.f32 %v1929_v1, %v2345_v52  ;;  %v3016_v52 = vld [vmem:[#allocation8_spill] sm:$0xff] }
 0x213   :  { %1930 = vtanh.f32 %v425_v62 }
 0x220   :  { %v1931_v48 = vpop.eup %1930 }
 0x221   :  { %v428_v55 = vmul.f32 %v1931_v48, %v427_v63 }
 0x223   :  { %v2433_v51 = vadd.f32 %v429_v54, %v428_v55  ;;  %v1456_v55 = vld [vmem:[%s2985_s0 + $0x38] sm:$0xff] }
 0x225   :  { %1454 = vst [vmem:[%s2988_s3 + $0x8] sm:$0xff] %v2433_v51  ;;  %502 = vmatmul.mubr.f32.vlgmr.msra.gmra.mxu0 %v2433_v51  ;;  %1730 = vmatmul.mubr.f32.vlgmr.msra.gmra.mxu1 %v2433_v51 }
 0x226   :  { %606 = vmatpush1.msra.mxu0 %v2096_v2  ;;  %1733 = vmatpush3.msra.mxu1 %v2130_v14 }
 0x227   :  { %607 = vmatprep.subr.mxu0 %v2098_v3  ;;  %1734 = vmatprep.subr.mxu1 %v3010_v49 }
 0x228   :  { %608 = vmatpush1.msra.mxu0 %v2101_v4  ;;  %1735 = vmatpush3.msra.mxu1 %v2136_v16 }
 0x229   :  { %609 = vmatprep.subr.mxu0 %v2104_v5  ;;  %1736 = vmatprep.subr.mxu1 %v3010_v49 }
 0x22a   :  { %610 = vmatpush1.msra.mxu0 %v2107_v6  ;;  %1737 = vmatpush3.msra.mxu1 %v2142_v18 }
 0x22b   :  { %611 = vmatprep.subr.mxu0 %v2110_v7  ;;  %1738 = vmatprep.subr.mxu1 %v3010_v49 }
 0x22c   :  { %612 = vmatpush1.msra.mxu0 %v2113_v8  ;;  %1739 = vmatpush3.msra.mxu1 %v2152_v21 }
 0x22d   :  { %613 = vmatprep.subr.mxu0 %v2116_v9  ;;  %1740 = vmatprep.subr.mxu1 %v3010_v49 }
 0x22e   :  { %614 = vmatpush1.msra.mxu0 %v2119_v10  ;;  %1741 = vmatpush3.msra.mxu1 %v2162_v24 }
 0x22f   :  { %615 = vmatprep.subr.mxu0 %v2122_v11  ;;  %1742 = vmatprep.subr.mxu1 %v3010_v49 }
 0x230   :  { %616 = vmatpush1.msra.mxu0 %v2125_v12  ;;  %1743 = vmatpush3.msra.mxu1 %v2172_v27 }
 0x231   :  { %617 = vmatprep.subr.mxu0 %v2128_v13  ;;  %1744 = vmatprep.subr.mxu1 %v3010_v49 }
 0x232   :  { %618 = vmatpush1.msra.mxu0 %v2133_v15  ;;  %1745 = vmatpush3.msra.mxu1 %v2182_v30 }
 0x233   :  { %619 = vmatprep.subr.mxu0 %v2139_v17  ;;  %1746 = vmatprep.subr.mxu1 %v3010_v49 }
 0x234   :  { %620 = vmatpush1.msra.mxu0 %v2145_v19  ;;  %1747 = vmatpush3.msra.mxu1 %v2192_v33 }
 0x235   :  { %621 = vmatprep.subr.mxu0 %v2149_v20  ;;  %1748 = vmatprep.subr.mxu1 %v3010_v49 }
 0x236   :  { %622 = vmatpush1.msra.mxu0 %v2155_v22  ;;  %1749 = vmatpush3.msra.mxu1 %v2202_v36 }
 0x237   :  { %623 = vmatprep.subr.mxu0 %v2159_v23  ;;  %1750 = vmatprep.subr.mxu1 %v3010_v49 }
 0x238   :  { %624 = vmatpush1.msra.mxu0 %v2165_v25  ;;  %1751 = vmatpush3.msra.mxu1 %v2212_v39 }
 0x239   :  { %625 = vmatprep.subr.mxu0 %v2169_v26  ;;  %1752 = vmatprep.subr.mxu1 %v3010_v49 }
 0x23a   :  { %626 = vmatpush1.msra.mxu0 %v2175_v28  ;;  %1753 = vmatpush3.msra.mxu1 %v2222_v42 }
 0x23b   :  { %627 = vmatprep.subr.mxu0 %v2179_v29  ;;  %1754 = vmatprep.subr.mxu1 %v3010_v49 }
 0x23c   :  { %628 = vmatpush1.msra.mxu0 %v2185_v31  ;;  %1755 = vmatpush3.msra.mxu1 %v2230_v44 }
 0x23d   :  { %629 = vmatprep.subr.mxu0 %v2189_v32  ;;  %1756 = vmatprep.subr.mxu1 %v3010_v49 }
 0x23e   :  { %630 = vmatpush1.msra.mxu0 %v2195_v34  ;;  %1757 = vmatpush3.msra.mxu1 %v2236_v45 }
 0x23f   :  { %631 = vmatprep.subr.mxu0 %v2199_v35  ;;  %1758 = vmatprep.subr.mxu1 %v3010_v49 }
 0x240   :  { %632 = vmatpush1.msra.mxu0 %v2205_v37  ;;  %1759 = vmatpush3.msra.mxu1 %v2241_v46 }
 0x241   :  { %633 = vmatprep.subr.mxu0 %v2209_v38  ;;  %1760 = vmatprep.subr.mxu1 %v3010_v49 }
 0x242   :  { %634 = vmatpush1.msra.mxu0 %v2215_v40  ;;  %1761 = vmatpush3.msra.mxu1 %v3014_v41 }
 0x243   :  { %635 = vmatprep.subr.mxu0 %v3015_v47  ;;  %1762 = vmatprep.subr.mxu1 %v3010_v49 }
 0x244   :  { %636 = vmatpush1.msra.mxu0 %v3016_v52  ;;  %669 = vmatprep.mubr.f32.mxu0 %v3010_v49 }
 0x245   :  { %1763 = vmatpush3.msra.mxu1 %v3017_v60  ;;  %1764 = vmatprep.mubr.msk.f32.mxu1 %vm2066_vm0, %v3010_v49 }
 0x246   :  { %773 = vmatprep.subr.mxu0 %v3018_v43  ;;  %1767 = vmatprep.subr.mxu1 %v3010_v49 }
 0x2e5   :  { %v503_v59 = vpop.f32.mrf.mxu0  ;;  %v574_v0 = vpop.f32.mrf.mxu1 }
 0x2e6   :  { %v504_v57 = vadd.f32 %v503_v59, %v2327_v53  ;;  %v575_v59 = vadd.f32 %v574_v0, %v2339_v56 }
 0x2e7   :  { %v505_v61 = vpop.f32.mrf.mxu0  ;;  %v1731_v62 = vpop.f32.mrf.mxu1 }
 0x2e8   :  { %v578_v1 = vadd.f32 %v1455_v50, %v504_v57  ;;  %v506_v48 = vadd.f32 %v505_v61, %v2333_v58  ;;  %v1457_v50 = vld [vmem:[%s2985_s0 + $0x40] sm:$0xff] }
 0x2ea   :  { %v1458_v63 = vmul.f32 -1.442695, %v578_v1  ;;  %v585_v54 = vadd.f32 %v1456_v55, %v506_v48 }
 0x2ec   :  { %1932 = vpow2.f32 %v1458_v63  ;;  %v1459_v43 = vmul.f32 -1.442695, %v585_v54 }
 0x2ee   :  { %1934 = vpow2.f32 %v1459_v43 }
 0x2f9   :  { %v1933_v60 = vpop.eup %1932 }
 0x2fa   :  { %v582_v52 = vadd.f32 1.0, %v1933_v60 }
 0x2fb   :  { %v1935_v47 = vpop.eup %1934 }
 0x2fc   :  { %1936 = vrcp.f32 %v582_v52  ;;  %v589_v41 = vadd.f32 1.0, %v1935_v47 }
 0x2fe   :  { %1938 = vrcp.f32 %v589_v41  ;;  %v1463_v41 = vld [vmem:[%s2985_s0 + $0x58] sm:$0xff] }
 0x309   :  { %v1937_v62 = vpop.eup %1936 }
 0x30a   :  { %v592_v57 = vmul.f32 %v1937_v62, %v575_v59 }
 0x30b   :  { %v1939_v1 = vpop.eup %1938 }
 0x30c   :  { %v593_v61 = vadd.f32 %v1457_v50, %v592_v57  ;;  %v595_v63 = vsub.f32 1.0, %v1939_v1  ;;  %v597_v60 = vmul.f32 %v1939_v1, %v2433_v51  ;;  %v2621_v1 = vld [vmem:[#allocation3 + $0x158] sm:$0xff] }
 0x30e   :  { %1940 = vtanh.f32 %v593_v61  ;;  %v2617_v61 = vld [vmem:[#allocation3 + $0x168] sm:$0xff] }
 0x31b   :  { %v1941_v48 = vpop.eup %1940 }
 0x31c   :  { %v596_v43 = vmul.f32 %v1941_v48, %v595_v63  ;;  %v2625_v63 = vld [vmem:[#allocation3 + $0x150] sm:$0xff]  ;;  %v2629_v48 = vld [vmem:[#allocation3 + $0x140] sm:$0xff] }
 0x31e   :  { %v2521_v52 = vadd.f32 %v597_v60, %v596_v43  ;;  %v2633_v43 = vld [vmem:[#allocation3 + $0x138] sm:$0xff]  ;;  %v2641_v60 = vld [vmem:[#allocation3 + $0x120] sm:$0xff] }
 0x320   :  { %1460 = vst [vmem:[%s2988_s3 + $0x10] sm:$0xff] %v2521_v52  ;;  %670 = vmatmul.mubr.f32.vlgmr.msra.gmra.mxu0 %v2521_v52  ;;  %1765 = vmatmul.mubr.f32.vlgmr.msra.gmra.mxu1 %v2521_v52 }
 0x321   :  { %774 = vmatpush1.msra.mxu0 %v2096_v2  ;;  %1768 = vmatpush3.msra.mxu1 %v2130_v14  ;;  %v3019_v2 = vld [vmem:[#allocation9_spill] sm:$0xff] }
 0x322   :  { %775 = vmatprep.subr.mxu0 %v2098_v3  ;;  %1769 = vmatprep.subr.mxu1 %v3010_v49  ;;  %v3020_v3 = vld [vmem:[#allocation7_spill] sm:$0xff] }
 0x323   :  { %776 = vmatpush1.msra.mxu0 %v2101_v4  ;;  %1770 = vmatpush3.msra.mxu1 %v2136_v16  ;;  %v3021_v4 = vld [vmem:[#allocation8_spill] sm:$0xff] }
 0x324   :  { %777 = vmatprep.subr.mxu0 %v2104_v5  ;;  %1771 = vmatprep.subr.mxu1 %v3010_v49  ;;  %v3022_v5 = vld [vmem:[#allocation10_spill] sm:$0xff] }
 0x325   :  { %778 = vmatpush1.msra.mxu0 %v2107_v6  ;;  %1772 = vmatpush3.msra.mxu1 %v2142_v18  ;;  %v3023_v6 = vld [vmem:[#allocation6_spill] sm:$0xff] }
 0x326   :  { %779 = vmatprep.subr.mxu0 %v2110_v7  ;;  %1773 = vmatprep.subr.mxu1 %v3010_v49  ;;  %v1461_v7 = vld [vmem:[%s2985_s0 + $0x48] sm:$0xff] }
 0x327   :  { %780 = vmatpush1.msra.mxu0 %v2113_v8  ;;  %1774 = vmatpush3.msra.mxu1 %v2152_v21 }
 0x328   :  { %781 = vmatprep.subr.mxu0 %v2116_v9  ;;  %1775 = vmatprep.subr.mxu1 %v3010_v49 }
 0x329   :  { %782 = vmatpush1.msra.mxu0 %v2119_v10  ;;  %1776 = vmatpush3.msra.mxu1 %v2162_v24 }
 0x32a   :  { %783 = vmatprep.subr.mxu0 %v2122_v11  ;;  %1777 = vmatprep.subr.mxu1 %v3010_v49 }
 0x32b   :  { %784 = vmatpush1.msra.mxu0 %v2125_v12  ;;  %1778 = vmatpush3.msra.mxu1 %v2172_v27 }
 0x32c   :  { %785 = vmatprep.subr.mxu0 %v2128_v13  ;;  %1779 = vmatprep.subr.mxu1 %v3010_v49 }
 0x32d   :  { %786 = vmatpush1.msra.mxu0 %v2133_v15  ;;  %1780 = vmatpush3.msra.mxu1 %v2182_v30 }
 0x32e   :  { %787 = vmatprep.subr.mxu0 %v2139_v17  ;;  %1781 = vmatprep.subr.mxu1 %v3010_v49 }
 0x32f   :  { %788 = vmatpush1.msra.mxu0 %v2145_v19  ;;  %1782 = vmatpush3.msra.mxu1 %v2192_v33  ;;  %v1462_v19 = vld [vmem:[%s2985_s0 + $0x50] sm:$0xff] }
 0x330   :  { %789 = vmatprep.subr.mxu0 %v2149_v20  ;;  %1783 = vmatprep.subr.mxu1 %v3010_v49 }
 0x331   :  { %790 = vmatpush1.msra.mxu0 %v2155_v22  ;;  %1784 = vmatpush3.msra.mxu1 %v2202_v36 }
 0x332   :  { %791 = vmatprep.subr.mxu0 %v2159_v23  ;;  %1785 = vmatprep.subr.mxu1 %v3010_v49 }
 0x333   :  { %792 = vmatpush1.msra.mxu0 %v2165_v25  ;;  %1786 = vmatpush3.msra.mxu1 %v2212_v39 }
 0x334   :  { %793 = vmatprep.subr.mxu0 %v2169_v26  ;;  %1787 = vmatprep.subr.mxu1 %v3010_v49 }
 0x335   :  { %794 = vmatpush1.msra.mxu0 %v2175_v28  ;;  %1788 = vmatpush3.msra.mxu1 %v2222_v42 }
 0x336   :  { %795 = vmatprep.subr.mxu0 %v2179_v29  ;;  %1789 = vmatprep.subr.mxu1 %v3010_v49 }
 0x337   :  { %796 = vmatpush1.msra.mxu0 %v2185_v31  ;;  %1790 = vmatpush3.msra.mxu1 %v2230_v44 }
 0x338   :  { %797 = vmatprep.subr.mxu0 %v2189_v32  ;;  %1791 = vmatprep.subr.mxu1 %v3010_v49 }
 0x339   :  { %798 = vmatpush1.msra.mxu0 %v2195_v34  ;;  %1792 = vmatpush3.msra.mxu1 %v2236_v45 }
 0x33a   :  { %799 = vmatprep.subr.mxu0 %v2199_v35  ;;  %1793 = vmatprep.subr.mxu1 %v3010_v49 }
 0x33b   :  { %800 = vmatpush1.msra.mxu0 %v2205_v37  ;;  %1794 = vmatpush3.msra.mxu1 %v2241_v46 }
 0x33c   :  { %801 = vmatprep.subr.mxu0 %v2209_v38  ;;  %1795 = vmatprep.subr.mxu1 %v3010_v49 }
 0x33d   :  { %802 = vmatpush1.msra.mxu0 %v2215_v40  ;;  %1796 = vmatpush3.msra.mxu1 %v3019_v2 }
 0x33e   :  { %803 = vmatprep.subr.mxu0 %v3020_v3  ;;  %1797 = vmatprep.subr.mxu1 %v3010_v49 }
 0x33f   :  { %804 = vmatpush1.msra.mxu0 %v3021_v4  ;;  %837 = vmatprep.mubr.f32.mxu0 %v3010_v49 }
 0x340   :  { %1798 = vmatpush3.msra.mxu1 %v3022_v5  ;;  %1799 = vmatprep.mubr.msk.f32.mxu1 %vm2066_vm0, %v3010_v49 }
 0x341   :  { %941 = vmatprep.subr.mxu0 %v3023_v6  ;;  %1802 = vmatprep.subr.mxu1 %v3010_v49  ;;  %v2657_v6 = vld [vmem:[#allocation3 + $0xf0] sm:$0xff] }
 0x3e0   :  { %v671_v8 = vpop.f32.mrf.mxu0  ;;  %v742_v9 = vpop.f32.mrf.mxu1 }
 0x3e1   :  { %v672_v10 = vadd.f32 %v671_v8, %v2327_v53  ;;  %v743_v29 = vadd.f32 %v742_v9, %v2339_v56  ;;  %v2673_v8 = vld [vmem:[#allocation3 + $0xc0] sm:$0xff]  ;;  %v2681_v9 = vld [vmem:[#allocation3 + $0xa8] sm:$0xff] }
 0x3e2   :  { %v673_v11 = vpop.f32.mrf.mxu0  ;;  %v1766_v12 = vpop.f32.mrf.mxu1 }
 0x3e3   :  { %v746_v13 = vadd.f32 %v1461_v7, %v672_v10  ;;  %v674_v17 = vadd.f32 %v673_v11, %v2333_v58  ;;  %v2665_v7 = vld [vmem:[#allocation3 + $0xd8] sm:$0xff]  ;;  %v2689_v10 = vld [vmem:[#allocation3 + $0x90] sm:$0xff] }
 0x3e4   :  { %v2697_v11 = vld [vmem:[#allocation3 + $0x78] sm:$0xff] }
 0x3e5   :  { %v1464_v15 = vmul.f32 -1.442695, %v746_v13  ;;  %v753_v20 = vadd.f32 %v1462_v19, %v674_v17  ;;  %v1469_v17 = vld [vmem:[%s2985_s0 + $0x70] sm:$0xff] }
 0x3e7   :  { %1942 = vpow2.f32 %v1464_v15  ;;  %v1465_v22 = vmul.f32 -1.442695, %v753_v20 }
 0x3e9   :  { %1944 = vpow2.f32 %v1465_v22 }
 0x3f4   :  { %v1943_v23 = vpop.eup %1942 }
 0x3f5   :  { %v750_v25 = vadd.f32 1.0, %v1943_v23 }
 0x3f6   :  { %v1945_v26 = vpop.eup %1944 }
 0x3f7   :  { %1946 = vrcp.f32 %v750_v25  ;;  %v757_v28 = vadd.f32 1.0, %v1945_v26 }
 0x3f9   :  { %1948 = vrcp.f32 %v757_v28 }
 0x404   :  { %v1947_v51 = vpop.eup %1946 }
 0x405   :  { %v760_v47 = vmul.f32 %v1947_v51, %v743_v29  ;;  %v2752_v51 = vld [vmem:[#allocation3 + $0x178] sm:$0xff] }
 0x406   :  { %v1949_v55 = vpop.eup %1948 }
 0x407   :  { %v761_v0 = vadd.f32 %v1463_v41, %v760_v47  ;;  %v763_v54 = vsub.f32 1.0, %v1949_v55  ;;  %v765_v50 = vmul.f32 %v1949_v55, %v2521_v52  ;;  %v2649_v52 = vld [vmem:[#allocation3 + $0x108] sm:$0xff]  ;;  %v2758_v41 = vld [vmem:[#allocation3 + $0x160] sm:$0xff]  ;;  %v2776_v55 = vld [vmem:[#allocation3 + $0x118] sm:$0xff] }
 0x408   :  { %v2764_v47 = vld [vmem:[#allocation3 + $0x148] sm:$0xff] }
 0x409   :  { %1950 = vtanh.f32 %v761_v0  ;;  %v2770_v0 = vld [vmem:[#allocation3 + $0x130] sm:$0xff] }
 0x416   :  { %v1951_v59 = vpop.eup %1950 }
 0x417   :  { %v764_v62 = vmul.f32 %v1951_v59, %v763_v54  ;;  %v2782_v54 = vld [vmem:[#allocation3 + $0x100] sm:$0xff]  ;;  %v2788_v59 = vld [vmem:[#allocation3 + $0xe8] sm:$0xff] }
 0x419   :  { %v2609_v57 = vadd.f32 %v765_v50, %v764_v62  ;;  %v2794_v62 = vld [vmem:[#allocation3 + $0xd0] sm:$0xff]  ;;  %v2800_v50 = vld [vmem:[#allocation3 + $0xb8] sm:$0xff] }
 0x41b   :  { %1466 = vst [vmem:[%s2988_s3 + $0x18] sm:$0xff] %v2609_v57  ;;  %838 = vmatmul.mubr.f32.vlgmr.msra.gmra.mxu0 %v2609_v57  ;;  %1800 = vmatmul.mubr.f32.vlgmr.msra.gmra.mxu1 %v2609_v57 }
 0x41c   :  { %942 = vmatpush1.msra.mxu0 %v2617_v61  ;;  %1803 = vmatpush3.msra.mxu1 %v2130_v14  ;;  %v2637_v14 = vld [vmem:[#allocation3 + $0x128] sm:$0xff] }
 0x41d   :  { %943 = vmatprep.subr.mxu0 %v2621_v1  ;;  %1804 = vmatprep.subr.mxu1 %v3010_v49 }
 0x41e   :  { %944 = vmatpush1.msra.mxu0 %v2625_v63  ;;  %1805 = vmatpush3.msra.mxu1 %v2136_v16  ;;  %v2645_v16 = vld [vmem:[#allocation3 + $0x110] sm:$0xff] }
 0x41f   :  { %945 = vmatprep.subr.mxu0 %v2629_v48  ;;  %1806 = vmatprep.subr.mxu1 %v3010_v49 }
 0x420   :  { %946 = vmatpush1.msra.mxu0 %v2633_v43  ;;  %1807 = vmatpush3.msra.mxu1 %v2142_v18  ;;  %v2653_v18 = vld [vmem:[#allocation3 + $0xf8] sm:$0xff] }
 0x421   :  { %947 = vmatprep.subr.mxu0 %v2637_v14  ;;  %1808 = vmatprep.subr.mxu1 %v3010_v49 }
 0x422   :  { %948 = vmatpush1.msra.mxu0 %v2641_v60  ;;  %1809 = vmatpush3.msra.mxu1 %v2152_v21  ;;  %v2661_v21 = vld [vmem:[#allocation3 + $0xe0] sm:$0xff] }
 0x423   :  { %949 = vmatprep.subr.mxu0 %v2645_v16  ;;  %1810 = vmatprep.subr.mxu1 %v3010_v49 }
 0x424   :  { %950 = vmatpush1.msra.mxu0 %v2649_v52  ;;  %1811 = vmatpush3.msra.mxu1 %v2162_v24  ;;  %v2669_v24 = vld [vmem:[#allocation3 + $0xc8] sm:$0xff] }
 0x425   :  { %951 = vmatprep.subr.mxu0 %v2653_v18  ;;  %1812 = vmatprep.subr.mxu1 %v3010_v49 }
 0x426   :  { %952 = vmatpush1.msra.mxu0 %v2657_v6  ;;  %1813 = vmatpush3.msra.mxu1 %v2172_v27  ;;  %v2677_v27 = vld [vmem:[#allocation3 + $0xb0] sm:$0xff] }
 0x427   :  { %953 = vmatprep.subr.mxu0 %v2661_v21  ;;  %1814 = vmatprep.subr.mxu1 %v3010_v49 }
 0x428   :  { %954 = vmatpush1.msra.mxu0 %v2665_v7  ;;  %1815 = vmatpush3.msra.mxu1 %v2182_v30  ;;  %v2685_v30 = vld [vmem:[#allocation3 + $0x98] sm:$0xff] }
 0x429   :  { %955 = vmatprep.subr.mxu0 %v2669_v24  ;;  %1816 = vmatprep.subr.mxu1 %v3010_v49 }
 0x42a   :  { %956 = vmatpush1.msra.mxu0 %v2673_v8  ;;  %1817 = vmatpush3.msra.mxu1 %v2192_v33  ;;  %v2693_v33 = vld [vmem:[#allocation3 + $0x80] sm:$0xff] }
 0x42b   :  { %957 = vmatprep.subr.mxu0 %v2677_v27  ;;  %1818 = vmatprep.subr.mxu1 %v3010_v49 }
 0x42c   :  { %958 = vmatpush1.msra.mxu0 %v2681_v9  ;;  %1819 = vmatpush3.msra.mxu1 %v2202_v36  ;;  %v2701_v36 = vld [vmem:[#allocation3 + $0x68] sm:$0xff] }
 0x42d   :  { %959 = vmatprep.subr.mxu0 %v2685_v30  ;;  %1820 = vmatprep.subr.mxu1 %v3010_v49 }
 0x42e   :  { %960 = vmatpush1.msra.mxu0 %v2689_v10  ;;  %1821 = vmatpush3.msra.mxu1 %v2212_v39 }
 0x42f   :  { %961 = vmatprep.subr.mxu0 %v2693_v33  ;;  %1822 = vmatprep.subr.mxu1 %v3010_v49 }
 0x430   :  { %962 = vmatpush1.msra.mxu0 %v2697_v11  ;;  %1823 = vmatpush3.msra.mxu1 %v2222_v42 }
 0x431   :  { %963 = vmatprep.subr.mxu0 %v2701_v36  ;;  %1824 = vmatprep.subr.mxu1 %v3010_v49 }
 0x432   :  { %964 = vmatpush1.msra.mxu0 %v2185_v31  ;;  %1825 = vmatpush3.msra.mxu1 %v2230_v44  ;;  %v2726_v31 = vld [vmem:[#allocation3 + $0x170] sm:$0xff] }
 0x433   :  { %965 = vmatprep.subr.mxu0 %v2189_v32  ;;  %1826 = vmatprep.subr.mxu1 %v3010_v49  ;;  %v1467_v32 = vld [vmem:[%s2985_s0 + $0x60] sm:$0xff] }
 0x434   :  { %966 = vmatpush1.msra.mxu0 %v2195_v34  ;;  %1827 = vmatpush3.msra.mxu1 %v2236_v45  ;;  %v1468_v45 = vld [vmem:[%s2985_s0 + $0x68] sm:$0xff] }
 0x435   :  { %967 = vmatprep.subr.mxu0 %v2199_v35  ;;  %1828 = vmatprep.subr.mxu1 %v3010_v49 }
 0x436   :  { %968 = vmatpush1.msra.mxu0 %v2205_v37  ;;  %1829 = vmatpush3.msra.mxu1 %v2241_v46 }
 0x437   :  { %969 = vmatprep.subr.mxu0 %v2209_v38  ;;  %1830 = vmatprep.subr.mxu1 %v3010_v49 }
 0x438   :  { %970 = vmatpush1.msra.mxu0 %v2215_v40  ;;  %1831 = vmatpush3.msra.mxu1 %v3019_v2 }
 0x439   :  { %971 = vmatprep.subr.mxu0 %v3020_v3  ;;  %1832 = vmatprep.subr.mxu1 %v3010_v49 }
 0x43a   :  { %972 = vmatpush1.msra.mxu0 %v3021_v4  ;;  %1005 = vmatprep.mubr.f32.mxu0 %v3010_v49 }
 0x43b   :  { %1833 = vmatpush3.msra.mxu1 %v3022_v5  ;;  %1834 = vmatprep.mubr.msk.f32.mxu1 %vm2066_vm0, %v3010_v49 }
 0x43c   :  { %1109 = vmatprep.subr.mxu0 %v2726_v31  ;;  %1837 = vmatprep.subr.mxu1 %v3010_v49 }
 0x4db   :  { %v839_v34 = vpop.f32.mrf.mxu0  ;;  %v910_v35 = vpop.f32.mrf.mxu1 }
 0x4dc   :  { %v840_v37 = vadd.f32 %v839_v34, %v2327_v53  ;;  %v911_v13 = vadd.f32 %v910_v35, %v2339_v56  ;;  %v2817_v34 = vld [vmem:[#allocation3 + $0x60] sm:$0xff]  ;;  %v2820_v35 = vld [vmem:[#allocation3 + $0x70] sm:$0xff] }
 0x4dd   :  { %v841_v38 = vpop.f32.mrf.mxu0  ;;  %v1801_v39 = vpop.f32.mrf.mxu1 }
 0x4de   :  { %v914_v40 = vadd.f32 %v1467_v32, %v840_v37  ;;  %v842_v44 = vadd.f32 %v841_v38, %v2333_v58  ;;  %v2812_v32 = vld [vmem:[#allocation3 + $0x88] sm:$0xff]  ;;  %v2823_v37 = vld [vmem:[#allocation3 + $0x50] sm:$0xff]  ;;  %v2830_v39 = vld [vmem:[#allocation3 + $0x58] sm:$0xff] }
 0x4df   :  { %v2827_v38 = vld [vmem:[#allocation3 + $0x48] sm:$0xff] }
 0x4e0   :  { %v1470_v42 = vmul.f32 -1.442695, %v914_v40  ;;  %v921_v46 = vadd.f32 %v1468_v45, %v842_v44  ;;  %v2833_v40 = vld [vmem:[#allocation3 + $0x38] sm:$0xff]  ;;  %v2840_v44 = vld [vmem:[#allocation3 + $0x40] sm:$0xff] }
 0x4e1   :  { %v2843_v45 = vld [vmem:[#allocation3 + $0x20] sm:$0xff] }
 0x4e2   :  { %1952 = vpow2.f32 %v1470_v42  ;;  %v1471_v2 = vmul.f32 -1.442695, %v921_v46  ;;  %v2837_v42 = vld [vmem:[#allocation3 + $0x30] sm:$0xff]  ;;  %v2847_v46 = vld [vmem:[#allocation3 + $0x18] sm:$0xff] }
 0x4e4   :  { %1954 = vpow2.f32 %v1471_v2  ;;  %v2850_v2 = vld [vmem:[#allocation3 + $0x28] sm:$0xff] }
 0x4e5   :  { %3024 = vst [vmem:[#allocation9_spill] sm:$0xff] %v2850_v2 }
 0x4ef   :  { %v1953_v3 = vpop.eup %1952 }
 0x4f0   :  { %v918_v4 = vadd.f32 1.0, %v1953_v3  ;;  %v2853_v3 = vld [vmem:[#allocation3 + $0x8] sm:$0xff] }
 0x4f1   :  { %v1955_v5 = vpop.eup %1954  ;;  %3025 = vst [vmem:[#allocation7_spill] sm:$0xff] %v2853_v3 }
 0x4f2   :  { %1956 = vrcp.f32 %v918_v4  ;;  %v925_v12 = vadd.f32 1.0, %v1955_v5  ;;  %v2857_v4 = vld [vmem:[#allocation3] sm:$0xff]  ;;  %v2861_v5 = vld [vmem:[#allocation3 + $0x10] sm:$0xff] }
 0x4f3   :  { %3026 = vst [vmem:[#allocation8_spill] sm:$0xff] %v2857_v4  ;;  %3027 = vst [vmem:[#allocation10_spill] sm:$0xff] %v2861_v5 }
 0x4f4   :  { %1958 = vrcp.f32 %v925_v12  ;;  %v1473_v12 = vld [vmem:[%s2985_s0 + $0x78] sm:$0xff] }
 0x4ff   :  { %v1957_v15 = vpop.eup %1956 }
 0x500   :  { %v928_v19 = vmul.f32 %v1957_v15, %v911_v13 }
 0x501   :  { %v1959_v22 = vpop.eup %1958 }
 0x502   :  { %v929_v20 = vadd.f32 %v1469_v17, %v928_v19  ;;  %v931_v23 = vsub.f32 1.0, %v1959_v22  ;;  %v933_v28 = vmul.f32 %v1959_v22, %v2609_v57  ;;  %v2806_v57 = vld [vmem:[#allocation3 + $0xa0] sm:$0xff] }
 0x504   :  { %1960 = vtanh.f32 %v929_v20 }
 0x511   :  { %v1961_v25 = vpop.eup %1960 }
 0x512   :  { %v932_v26 = vmul.f32 %v1961_v25, %v931_v23 }
 0x514   :  { %v2743_v29 = vadd.f32 %v933_v28, %v932_v26 }
 0x516   :  { %1472 = vst [vmem:[%s2988_s3 + $0x20] sm:$0xff] %v2743_v29  ;;  %1006 = vmatmul.mubr.f32.vlgmr.msra.gmra.mxu0 %v2743_v29  ;;  %1835 = vmatmul.mubr.f32.vlgmr.msra.gmra.mxu1 %v2743_v29 }
 0x517   :  { %1110 = vmatpush1.msra.mxu0 %v2617_v61  ;;  %1838 = vmatpush3.msra.mxu1 %v2752_v51 }
 0x518   :  { %1111 = vmatprep.subr.mxu0 %v2621_v1  ;;  %1839 = vmatprep.subr.mxu1 %v3010_v49 }
 0x519   :  { %1112 = vmatpush1.msra.mxu0 %v2625_v63  ;;  %1840 = vmatpush3.msra.mxu1 %v2758_v41 }
 0x51a   :  { %1113 = vmatprep.subr.mxu0 %v2629_v48  ;;  %1841 = vmatprep.subr.mxu1 %v3010_v49 }
 0x51b   :  { %1114 = vmatpush1.msra.mxu0 %v2633_v43  ;;  %1842 = vmatpush3.msra.mxu1 %v2764_v47 }
 0x51c   :  { %1115 = vmatprep.subr.mxu0 %v2637_v14  ;;  %1843 = vmatprep.subr.mxu1 %v3010_v49 }
 0x51d   :  { %1116 = vmatpush1.msra.mxu0 %v2641_v60  ;;  %1844 = vmatpush3.msra.mxu1 %v2770_v0 }
 0x51e   :  { %1117 = vmatprep.subr.mxu0 %v2645_v16  ;;  %1845 = vmatprep.subr.mxu1 %v3010_v49 }
 0x51f   :  { %1118 = vmatpush1.msra.mxu0 %v2649_v52  ;;  %1846 = vmatpush3.msra.mxu1 %v2776_v55 }
 0x520   :  { %1119 = vmatprep.subr.mxu0 %v2653_v18  ;;  %1847 = vmatprep.subr.mxu1 %v3010_v49 }
 0x521   :  { %1120 = vmatpush1.msra.mxu0 %v2657_v6  ;;  %1848 = vmatpush3.msra.mxu1 %v2782_v54 }
 0x522   :  { %1121 = vmatprep.subr.mxu0 %v2661_v21  ;;  %1849 = vmatprep.subr.mxu1 %v3010_v49 }
 0x523   :  { %1122 = vmatpush1.msra.mxu0 %v2665_v7  ;;  %1850 = vmatpush3.msra.mxu1 %v2788_v59 }
 0x524   :  { %1123 = vmatprep.subr.mxu0 %v2669_v24  ;;  %1851 = vmatprep.subr.mxu1 %v3010_v49 }
 0x525   :  { %1124 = vmatpush1.msra.mxu0 %v2673_v8  ;;  %1852 = vmatpush3.msra.mxu1 %v2794_v62 }
 0x526   :  { %1125 = vmatprep.subr.mxu0 %v2677_v27  ;;  %1853 = vmatprep.subr.mxu1 %v3010_v49 }
 0x527   :  { %1126 = vmatpush1.msra.mxu0 %v2681_v9  ;;  %1854 = vmatpush3.msra.mxu1 %v2800_v50 }
 0x528   :  { %1127 = vmatprep.subr.mxu0 %v2685_v30  ;;  %1855 = vmatprep.subr.mxu1 %v3010_v49 }
 0x529   :  { %1128 = vmatpush1.msra.mxu0 %v2689_v10  ;;  %1856 = vmatpush3.msra.mxu1 %v2806_v57 }
 0x52a   :  { %1129 = vmatprep.subr.mxu0 %v2693_v33  ;;  %1857 = vmatprep.subr.mxu1 %v3010_v49 }
 0x52b   :  { %1130 = vmatpush1.msra.mxu0 %v2697_v11  ;;  %1858 = vmatpush3.msra.mxu1 %v2812_v32 }
 0x52c   :  { %1131 = vmatprep.subr.mxu0 %v2701_v36  ;;  %1859 = vmatprep.subr.mxu1 %v3010_v49 }
 0x52d   :  { %1132 = vmatpush1.msra.mxu0 %v2817_v34  ;;  %1860 = vmatpush3.msra.mxu1 %v2820_v35 }
 0x52e   :  { %1133 = vmatprep.subr.mxu0 %v2823_v37  ;;  %1861 = vmatprep.subr.mxu1 %v3010_v49 }
 0x52f   :  { %1134 = vmatpush1.msra.mxu0 %v2827_v38  ;;  %1862 = vmatpush3.msra.mxu1 %v2830_v39 }
 0x530   :  { %1135 = vmatprep.subr.mxu0 %v2833_v40  ;;  %1863 = vmatprep.subr.mxu1 %v3010_v49 }
 0x531   :  { %1136 = vmatpush1.msra.mxu0 %v2837_v42  ;;  %1864 = vmatpush3.msra.mxu1 %v2840_v44 }
 0x532   :  { %1137 = vmatprep.subr.mxu0 %v2843_v45  ;;  %1865 = vmatprep.subr.mxu1 %v3010_v49 }
 0x533   :  { %1138 = vmatpush1.msra.mxu0 %v2847_v46  ;;  %1866 = vmatpush3.msra.mxu1 %v2850_v2 }
 0x534   :  { %1139 = vmatprep.subr.mxu0 %v2853_v3  ;;  %1867 = vmatprep.subr.mxu1 %v3010_v49 }
 0x535   :  { %1140 = vmatpush1.msra.mxu0 %v2857_v4  ;;  %1173 = vmatprep.mubr.f32.mxu0 %v3010_v49 }
 0x536   :  { %1868 = vmatpush3.msra.mxu1 %v2861_v5  ;;  %1869 = vmatprep.mubr.msk.f32.mxu1 %vm2066_vm0, %v3010_v49 }
 0x537   :  { %1277 = vmatprep.subr.mxu0 %v2726_v31  ;;  %1872 = vmatprep.subr.mxu1 %v3010_v49  ;;  %v1474_v31 = vld [vmem:[%s2985_s0 + $0x80] sm:$0xff] }
 0x5d6   :  { %v1007_v13 = vpop.f32.mrf.mxu0  ;;  %v1078_v15 = vpop.f32.mrf.mxu1 }
 0x5d7   :  { %v1008_v17 = vadd.f32 %v1007_v13, %v2327_v53  ;;  %v1079_v13 = vadd.f32 %v1078_v15, %v2339_v56 }
 0x5d8   :  { %v1009_v19 = vpop.f32.mrf.mxu0  ;;  %v1836_v20 = vpop.f32.mrf.mxu1 }
 0x5d9   :  { %v1082_v22 = vadd.f32 %v1473_v12, %v1008_v17  ;;  %v1010_v25 = vadd.f32 %v1009_v19, %v2333_v58  ;;  %v1475_v12 = vld [vmem:[%s2985_s0 + $0x88] sm:$0xff] }
 0x5db   :  { %v1476_v23 = vmul.f32 -1.442695, %v1082_v22  ;;  %v1089_v26 = vadd.f32 %v1474_v31, %v1010_v25 }
 0x5dd   :  { %1962 = vpow2.f32 %v1476_v23  ;;  %v1477_v28 = vmul.f32 -1.442695, %v1089_v26 }
 0x5df   :  { %1964 = vpow2.f32 %v1477_v28 }
 0x5ea   :  { %v1963_v5 = vpop.eup %1962 }
 0x5eb   :  { %v1086_v4 = vadd.f32 1.0, %v1963_v5 }
 0x5ec   :  { %v1965_v3 = vpop.eup %1964 }
 0x5ed   :  { %1966 = vrcp.f32 %v1086_v4  ;;  %v1093_v2 = vadd.f32 1.0, %v1965_v3 }
 0x5ef   :  { %1968 = vrcp.f32 %v1093_v2 }
 0x5fa   :  { %v1967_v20 = vpop.eup %1966 }
 0x5fb   :  { %v1096_v17 = vmul.f32 %v1967_v20, %v1079_v13 }
 0x5fc   :  { %v1969_v22 = vpop.eup %1968 }
 0x5fd   :  { %v1097_v19 = vadd.f32 %v1475_v12, %v1096_v17  ;;  %v1099_v23 = vsub.f32 1.0, %v1969_v22  ;;  %v1101_v5 = vmul.f32 %v1969_v22, %v2743_v29 }
 0x5ff   :  { %1970 = vtanh.f32 %v1097_v19 }
 0x60c   :  { %v1971_v25 = vpop.eup %1970 }
 0x60d   :  { %v1100_v31 = vmul.f32 %v1971_v25, %v1099_v23 }
 0x60f   :  { %v2881_v4 = vadd.f32 %v1101_v5, %v1100_v31 }
 0x611   :  { %1478 = vst [vmem:[%s2988_s3 + $0x28] sm:$0xff] %v2881_v4  ;;  %1174 = vmatmul.mubr.f32.vlgmr.msra.gmra.mxu0 %v2881_v4  ;;  %1870 = vmatmul.mubr.f32.vlgmr.msra.gmra.mxu1 %v2881_v4 }
 0x612   :  { %1278 = vmatpush1.msra.mxu0 %v2617_v61  ;;  %1873 = vmatpush3.msra.mxu1 %v2752_v51  ;;  %v3028_v61 = vld [vmem:[#allocation9_spill] sm:$0xff] }
 0x613   :  { %1279 = vmatprep.subr.mxu0 %v2621_v1  ;;  %1874 = vmatprep.subr.mxu1 %v3010_v49  ;;  %v3029_v1 = vld [vmem:[#allocation7_spill] sm:$0xff] }
 0x614   :  { %1280 = vmatpush1.msra.mxu0 %v2625_v63  ;;  %1875 = vmatpush3.msra.mxu1 %v2758_v41  ;;  %v3030_v63 = vld [vmem:[#allocation8_spill] sm:$0xff] }
 0x615   :  { %1281 = vmatprep.subr.mxu0 %v2629_v48  ;;  %1876 = vmatprep.subr.mxu1 %v3010_v49  ;;  %v3031_v48 = vld [vmem:[#allocation10_spill] sm:$0xff] }
 0x616   :  { %1282 = vmatpush1.msra.mxu0 %v2633_v43  ;;  %1877 = vmatpush3.msra.mxu1 %v2764_v47  ;;  %v1479_v43 = vld [vmem:[%s2985_s0 + $0x90] sm:$0xff] }
 0x617   :  { %1283 = vmatprep.subr.mxu0 %v2637_v14  ;;  %1878 = vmatprep.subr.mxu1 %v3010_v49 }
 0x618   :  { %1284 = vmatpush1.msra.mxu0 %v2641_v60  ;;  %1879 = vmatpush3.msra.mxu1 %v2770_v0 }
 0x619   :  { %1285 = vmatprep.subr.mxu0 %v2645_v16  ;;  %1880 = vmatprep.subr.mxu1 %v3010_v49 }
 0x61a   :  { %1286 = vmatpush1.msra.mxu0 %v2649_v52  ;;  %1881 = vmatpush3.msra.mxu1 %v2776_v55 }
 0x61b   :  { %1287 = vmatprep.subr.mxu0 %v2653_v18  ;;  %1882 = vmatprep.subr.mxu1 %v3010_v49 }
 0x61c   :  { %1288 = vmatpush1.msra.mxu0 %v2657_v6  ;;  %1883 = vmatpush3.msra.mxu1 %v2782_v54 }
 0x61d   :  { %1289 = vmatprep.subr.mxu0 %v2661_v21  ;;  %1884 = vmatprep.subr.mxu1 %v3010_v49 }
 0x61e   :  { %1290 = vmatpush1.msra.mxu0 %v2665_v7  ;;  %1885 = vmatpush3.msra.mxu1 %v2788_v59 }
 0x61f   :  { %1291 = vmatprep.subr.mxu0 %v2669_v24  ;;  %1886 = vmatprep.subr.mxu1 %v3010_v49  ;;  %v1480_v24 = vld [vmem:[%s2985_s0 + $0x98] sm:$0xff] }
 0x620   :  { %1292 = vmatpush1.msra.mxu0 %v2673_v8  ;;  %1887 = vmatpush3.msra.mxu1 %v2794_v62  ;;  %v1485_v62 = vld [vmem:[%s2985_s0 + $0xa8] sm:$0xff] }
 0x621   :  { %1293 = vmatprep.subr.mxu0 %v2677_v27  ;;  %1888 = vmatprep.subr.mxu1 %v3010_v49 }
 0x622   :  { %1294 = vmatpush1.msra.mxu0 %v2681_v9  ;;  %1889 = vmatpush3.msra.mxu1 %v2800_v50 }
 0x623   :  { %1295 = vmatprep.subr.mxu0 %v2685_v30  ;;  %1890 = vmatprep.subr.mxu1 %v3010_v49 }
 0x624   :  { %1296 = vmatpush1.msra.mxu0 %v2689_v10  ;;  %1891 = vmatpush3.msra.mxu1 %v2806_v57 }
 0x625   :  { %1297 = vmatprep.subr.mxu0 %v2693_v33  ;;  %1892 = vmatprep.subr.mxu1 %v3010_v49 }
 0x626   :  { %1298 = vmatpush1.msra.mxu0 %v2697_v11  ;;  %1893 = vmatpush3.msra.mxu1 %v2812_v32 }
 0x627   :  { %1299 = vmatprep.subr.mxu0 %v2701_v36  ;;  %1894 = vmatprep.subr.mxu1 %v3010_v49  ;;  %v1481_v36 = vld [vmem:[%s2985_s0 + $0xa0] sm:$0xff] }
 0x628   :  { %1300 = vmatpush1.msra.mxu0 %v2817_v34  ;;  %1895 = vmatpush3.msra.mxu1 %v2820_v35 }
 0x629   :  { %1301 = vmatprep.subr.mxu0 %v2823_v37  ;;  %1896 = vmatprep.subr.mxu1 %v3010_v49 }
 0x62a   :  { %1302 = vmatpush1.msra.mxu0 %v2827_v38  ;;  %1897 = vmatpush3.msra.mxu1 %v2830_v39 }
 0x62b   :  { %1303 = vmatprep.subr.mxu0 %v2833_v40  ;;  %1898 = vmatprep.subr.mxu1 %v3010_v49  ;;  %v1486_v40 = vld [vmem:[%s2985_s0 + $0xb0] sm:$0xff] }
 0x62c   :  { %1304 = vmatpush1.msra.mxu0 %v2837_v42  ;;  %1899 = vmatpush3.msra.mxu1 %v2840_v44 }
 0x62d   :  { %1305 = vmatprep.subr.mxu0 %v2843_v45  ;;  %1900 = vmatprep.subr.mxu1 %v3010_v49 }
 0x62e   :  { %1306 = vmatpush1.msra.mxu0 %v2847_v46  ;;  %1901 = vmatpush3.msra.mxu1 %v3028_v61 }
 0x62f   :  { %1307 = vmatprep.subr.mxu0 %v3029_v1  ;;  %1902 = vmatprep.subr.mxu1 %v3010_v49 }
 0x630   :  { %1308 = vmatpush1.msra.mxu0 %v3030_v63  ;;  %1341 = vmatprep.mubr.f32.mxu0 %v3010_v49 }
 0x631   :  { %1903 = vmatpush3.msra.mxu1 %v3031_v48  ;;  %1904 = vmatprep.mubr.msk.f32.mxu1 %vm2066_vm0, %v3010_v49 }
 0x6d1   :  { %v1175_v14 = vpop.f32.mrf.mxu0  ;;  %v1246_v60 = vpop.f32.mrf.mxu1 }
 0x6d2   :  { %v1176_v16 = vadd.f32 %v1175_v14, %v2327_v53  ;;  %v1247_v33 = vadd.f32 %v1246_v60, %v2339_v56 }
 0x6d3   :  { %v1177_v52 = vpop.f32.mrf.mxu0  ;;  %v1871_v18 = vpop.f32.mrf.mxu1 }
 0x6d4   :  { %v1250_v6 = vadd.f32 %v1479_v43, %v1176_v16  ;;  %v1178_v7 = vadd.f32 %v1177_v52, %v2333_v58 }
 0x6d6   :  { %v1482_v21 = vmul.f32 -1.442695, %v1250_v6  ;;  %v1257_v49 = vadd.f32 %v1480_v24, %v1178_v7 }
 0x6d8   :  { %1972 = vpow2.f32 %v1482_v21  ;;  %v1483_v8 = vmul.f32 -1.442695, %v1257_v49 }
 0x6da   :  { %1974 = vpow2.f32 %v1483_v8 }
 0x6e5   :  { %v1973_v27 = vpop.eup %1972 }
 0x6e6   :  { %v1254_v9 = vadd.f32 1.0, %v1973_v27 }
 0x6e7   :  { %v1975_v30 = vpop.eup %1974 }
 0x6e8   :  { %1976 = vrcp.f32 %v1254_v9  ;;  %v1261_v10 = vadd.f32 1.0, %v1975_v30 }
 0x6ea   :  { %1978 = vrcp.f32 %v1261_v10 }
 0x6f5   :  { %v1977_v11 = vpop.eup %1976 }
 0x6f6   :  { %v1264_v29 = vmul.f32 %v1977_v11, %v1247_v33 }
 0x6f7   :  { %v1979_v41 = vpop.eup %1978 }
 0x6f8   :  { %v1265_v51 = vadd.f32 %v1481_v36, %v1264_v29  ;;  %v1267_v47 = vsub.f32 1.0, %v1979_v41  ;;  %v1269_v54 = vmul.f32 %v1979_v41, %v2881_v4 }
 0x6fa   :  { %1980 = vtanh.f32 %v1265_v51 }
 0x707   :  { %v1981_v0 = vpop.eup %1980 }
 0x708   :  { %v1268_v55 = vmul.f32 %v1981_v0, %v1267_v47 }
 0x70a   :  { %v1270_v59 = vadd.f32 %v1269_v54, %v1268_v55 }
 0x70c   :  { %1484 = vst [vmem:[%s2988_s3 + $0x30] sm:$0xff] %v1270_v59  ;;  %1342 = vmatmul.mubr.f32.vlgmr.msra.gmra.mxu0 %v1270_v59  ;;  %1905 = vmatmul.mubr.f32.vlgmr.msra.gmra.mxu1 %v1270_v59 }
 0x7cc   :  { %v1343_v50 = vpop.f32.mrf.mxu0  ;;  %v1414_v57 = vpop.f32.mrf.mxu1 }
 0x7cd   :  { %v1344_v32 = vadd.f32 %v1343_v50, %v2327_v53  ;;  %v1415_v53 = vadd.f32 %v1414_v57, %v2339_v56 }
 0x7ce   :  { %v1345_v34 = vpop.f32.mrf.mxu0  ;;  %v1906_v35 = vpop.f32.mrf.mxu1 }
 0x7cf   :  { %v1418_v37 = vadd.f32 %v1485_v62, %v1344_v32  ;;  %v1346_v39 = vadd.f32 %v1345_v34, %v2333_v58  ;;  %v1487_v58 = vld [vmem:[%s2985_s0 + $0xb8] sm:$0xff] }
 0x7d1   :  { %v1488_v38 = vmul.f32 -1.442695, %v1418_v37  ;;  %v1425_v42 = vadd.f32 %v1486_v40, %v1346_v39 }
 0x7d3   :  { %1982 = vpow2.f32 %v1488_v38  ;;  %v1489_v44 = vmul.f32 -1.442695, %v1425_v42 }
 0x7d5   :  { %1984 = vpow2.f32 %v1489_v44 }
 0x7e0   :  { %v1983_v45 = vpop.eup %1982 }
 0x7e1   :  { %v1422_v46 = vadd.f32 1.0, %v1983_v45 }
 0x7e2   :  { %v1985_v2 = vpop.eup %1984 }
 0x7e3   :  { %1986 = vrcp.f32 %v1422_v46  ;;  %v1429_v3 = vadd.f32 1.0, %v1985_v2 }
 0x7e5   :  { %1988 = vrcp.f32 %v1429_v3 }
 0x7f0   :  { %v1987_v15 = vpop.eup %1986 }
 0x7f1   :  { %v1432_v26 = vmul.f32 %v1987_v15, %v1415_v53 }
 0x7f2   :  { %v1989_v13 = vpop.eup %1988 }
 0x7f3   :  { %v1433_v28 = vadd.f32 %v1487_v58, %v1432_v26  ;;  %v1435_v20 = vsub.f32 1.0, %v1989_v13  ;;  %v1437_v19 = vmul.f32 %v1989_v13, %v1270_v59 }
 0x7f5   :  { %1990 = vtanh.f32 %v1433_v28 }
 0x802   :  { %v1991_v12 = vpop.eup %1990 }
 0x803   :  { %v1436_v17 = vmul.f32 %v1991_v12, %v1435_v20 }
 0x805   :  { %v1438_v22 = vadd.f32 %v1437_v19, %v1436_v17 }
 0x807   :  { %1490 = vst [vmem:[%s2988_s3 + $0x38] sm:$0xff] %v1438_v22 }
 0x808   :  { %1446 = vsyncpa [#allocation4], 1 }

// kernel: gru_forward.3
= control target key start
LH: loop header
LB: loop body
LE: loop exit
PB: predicated region body
PF: predicated region fallthrough
CT: control target
= control target key end

     0   :  { %v3187_v3 = vmov 0.0   ;;  %vm2006_vm0 = vmmov 0   ;;  %v69_v49 = vlaneseq  ;;  %s3183_s1 = inlined_call_operand.vmem [shape: f32[128,384], index: 1, kind: input, shape index: {}]   ;;  %s3184_s2 = inlined_call_operand.vmem [shape: f32[1,384], index: 2, kind: input, shape index: {}]   ;;  %s3185_s0 = inlined_call_operand.vmem [shape: f32[8,8,384], index: 0, kind: input, shape index: {}]   ;;  %s3186_s3 = inlined_call_operand.vmem [shape: f32[8,128], index: 3, kind: output, shape index: {}]  }
   0x1   :  { %v2030_v0 = vld [vmem:[%s3183_s1 + $0x170] sm:$0xff]  ;;  %v2035_v1 = vld [vmem:[%s3183_s1 + $0x168] sm:$0xff]  ;;  %v2040_v2 = vld [vmem:[%s3183_s1 + $0x158] sm:$0xff]  ;;  %152 = vmatprep.mubr.f32.mxu0 %v3187_v3  ;;  %1595 = vmatprep.subr.mxu1 %v3187_v3 }
   0x2   :  { %3203 = vst [vmem:[#allocation3_spill] sm:$0xff] %v2030_v0  ;;  %88 = vmatprep.subr.mxu0 %v2030_v0  ;;  %v2048_v4 = vld [vmem:[%s3183_s1 + $0x150] sm:$0xff]  ;;  %1627 = vmatprep.mubr.msk.f32.mxu1 %vm2006_vm0, %v3187_v3  ;;  %v2056_v5 = vld [vmem:[%s3183_s1 + $0x140] sm:$0xff]  ;;  %v2062_v6 = vld [vmem:[%s3183_s1 + $0x138] sm:$0xff]  ;;  %v70_v50 = vshrl.u32 %v69_v49, 7 }
   0x3   :  { %89 = vmatpush1.msra.mxu0 %v2035_v1  ;;  %v2068_v7 = vld [vmem:[%s3183_s1 + $0x128] sm:$0xff]  ;;  %v2074_v8 = vld [vmem:[%s3183_s1 + $0x120] sm:$0xff]  ;;  %v2080_v9 = vld [vmem:[%s3183_s1 + $0x110] sm:$0xff] }
   0x4   :  { %90 = vmatprep.subr.mxu0 %v2040_v2  ;;  %v2086_v10 = vld [vmem:[%s3183_s1 + $0x108] sm:$0xff]  ;;  %v2092_v11 = vld [vmem:[%s3183_s1 + $0xf8] sm:$0xff]  ;;  %v2098_v12 = vld [vmem:[%s3183_s1 + $0xf0] sm:$0xff]  ;;  %v71_v51 = vsub.s32 0, %v70_v50  ;;  %v75_v54 = vsub.s32 1, %v70_v50 }
   0x5   :  { %91 = vmatpush1.msra.mxu0 %v2048_v4  ;;  %v2104_v13 = vld [vmem:[%s3183_s1 + $0xe0] sm:$0xff]  ;;  %v2109_v14 = vld [vmem:[%s3183_s1 + $0x178] sm:$0xff]  ;;  %v2127_v17 = vld [vmem:[%s3183_s1 + $0xc8] sm:$0xff] }
   0x6   :  { %92 = vmatprep.subr.mxu0 %v2056_v5  ;;  %v2115_v15 = vld [vmem:[%s3183_s1 + $0xd8] sm:$0xff]  ;;  %1596 = vmatpush3.msra.mxu1 %v2109_v14  ;;  %v2121_v16 = vld [vmem:[%s3183_s1 + $0x160] sm:$0xff]  ;;  %v2133_v18 = vld [vmem:[%s3183_s1 + $0x148] sm:$0xff] }
   0x7   :  { %93 = vmatpush1.msra.mxu0 %v2062_v6  ;;  %1597 = vmatprep.subr.mxu1 %v3187_v3  ;;  %v2139_v19 = vld [vmem:[%s3183_s1 + $0xc0] sm:$0xff]  ;;  %v2146_v20 = vld [vmem:[%s3183_s1 + $0xb0] sm:$0xff]  ;;  %v2158_v22 = vld [vmem:[%s3183_s1 + $0xa8] sm:$0xff] }
   0x8   :  { %94 = vmatprep.subr.mxu0 %v2068_v7  ;;  %1598 = vmatpush3.msra.mxu1 %v2121_v16  ;;  %v2152_v21 = vld [vmem:[%s3183_s1 + $0x130] sm:$0xff]  ;;  %v2165_v23 = vld [vmem:[%s3183_s1 + $0x98] sm:$0xff]  ;;  %v2184_v26 = vld [vmem:[%s3183_s1 + $0x80] sm:$0xff] }
   0x9   :  { %95 = vmatpush1.msra.mxu0 %v2074_v8  ;;  %1599 = vmatprep.subr.mxu1 %v3187_v3  ;;  %v2171_v24 = vld [vmem:[%s3183_s1 + $0x118] sm:$0xff]  ;;  %v2177_v25 = vld [vmem:[%s3183_s1 + $0x90] sm:$0xff]  ;;  %v2190_v27 = vld [vmem:[%s3183_s1 + $0x100] sm:$0xff] }
   0xa   :  { %96 = vmatprep.subr.mxu0 %v2080_v9  ;;  %1600 = vmatpush3.msra.mxu1 %v2133_v18  ;;  %v2196_v28 = vld [vmem:[%s3183_s1 + $0x78] sm:$0xff]  ;;  %v2203_v29 = vld [vmem:[%s3183_s1 + $0x68] sm:$0xff]  ;;  %v2215_v31 = vld [vmem:[%s3183_s1 + $0x60] sm:$0xff] }
   0xb   :  { %97 = vmatpush1.msra.mxu0 %v2086_v10  ;;  %1601 = vmatprep.subr.mxu1 %v3187_v3  ;;  %v2209_v30 = vld [vmem:[%s3183_s1 + $0xe8] sm:$0xff]  ;;  %v2222_v32 = vld [vmem:[%s3183_s1 + $0x50] sm:$0xff]  ;;  %v2241_v35 = vld [vmem:[%s3183_s1 + $0x38] sm:$0xff] }
   0xc   :  { %98 = vmatprep.subr.mxu0 %v2092_v11  ;;  %1602 = vmatpush3.msra.mxu1 %v2152_v21  ;;  %v2228_v33 = vld [vmem:[%s3183_s1 + $0xd0] sm:$0xff]  ;;  %v2234_v34 = vld [vmem:[%s3183_s1 + $0x48] sm:$0xff]  ;;  %v2247_v36 = vld [vmem:[%s3183_s1 + $0xb8] sm:$0xff] }
   0xd   :  { %99 = vmatpush1.msra.mxu0 %v2098_v12  ;;  %1603 = vmatprep.subr.mxu1 %v3187_v3  ;;  %v2253_v37 = vld [vmem:[%s3183_s1 + $0x30] sm:$0xff]  ;;  %v2260_v38 = vld [vmem:[%s3183_s1 + $0x20] sm:$0xff]  ;;  %v2272_v40 = vld [vmem:[%s3183_s1 + $0x18] sm:$0xff] }
   0xe   :  { %100 = vmatprep.subr.mxu0 %v2104_v13  ;;  %1604 = vmatpush3.msra.mxu1 %v2171_v24  ;;  %v2266_v39 = vld [vmem:[%s3183_s1 + $0xa0] sm:$0xff]  ;;  %v2279_v41 = vld [vmem:[%s3183_s1 + $0x8] sm:$0xff]  ;;  %v2299_v44 = vld [vmem:[%s3183_s1 + $0x70] sm:$0xff] }
   0xf   :  { %101 = vmatpush1.msra.mxu0 %v2115_v15  ;;  %1605 = vmatprep.subr.mxu1 %v3187_v3  ;;  %3204 = vst [vmem:[#allocation4_spill] sm:$0xff] %v2279_v41  ;;  %v2285_v42 = vld [vmem:[%s3183_s1 + $0x88] sm:$0xff]  ;;  %v2291_v43 = vld [vmem:[%s3183_s1] sm:$0xff]  ;;  %v2308_v45 = vld [vmem:[%s3183_s1 + $0x58] sm:$0xff] }
  0x10   :  { %102 = vmatprep.subr.mxu0 %v2127_v17  ;;  %1606 = vmatpush3.msra.mxu1 %v2190_v27  ;;  %3205 = vst [vmem:[#allocation5_spill] sm:$0xff] %v2291_v43  ;;  %v2316_v46 = vld [vmem:[%s3183_s1 + $0x40] sm:$0xff]  ;;  %v2325_v47 = vld [vmem:[%s3183_s1 + $0x28] sm:$0xff]  ;;  %v2334_v48 = vld [vmem:[%s3183_s1 + $0x10] sm:$0xff] }
  0x11   :  { %103 = vmatpush1.msra.mxu0 %v2139_v19  ;;  %1607 = vmatprep.subr.mxu1 %v3187_v3  ;;  %3206 = vst [vmem:[#allocation6_spill] sm:$0xff] %v2325_v47  ;;  %3207 = vst [vmem:[#allocation7_spill] sm:$0xff] %v2334_v48  ;;  %v67_v52 = vld [vmem:[%s3184_s2] sm:$0x7]  ;;  %v86_v63 = vld [vmem:[%s3185_s0 + $0x8] sm:$0xff] }
  0x12   :  { %104 = vmatprep.subr.mxu0 %v2146_v20  ;;  %1608 = vmatpush3.msra.mxu1 %v2209_v30  ;;  %v2408_v53 = vrot.slane %v67_v52, %v71_v51  ;;  %v85_v55 = vld [vmem:[%s3185_s0] sm:$0xff]  ;;  %v2414_v58 = vrot.slane %v67_v52, %v75_v54  ;;  %v79_v54 = vsub.s32 2, %v70_v50 }
  0x13   :  { %105 = vmatpush1.msra.mxu0 %v2158_v22  ;;  %1609 = vmatprep.subr.mxu1 %v3187_v3 }
  0x14   :  { %106 = vmatprep.subr.mxu0 %v2165_v23  ;;  %1610 = vmatpush3.msra.mxu1 %v2228_v33 }
  0x15   :  { %107 = vmatpush1.msra.mxu0 %v2177_v25  ;;  %1611 = vmatprep.subr.mxu1 %v3187_v3 }
  0x16   :  { %108 = vmatprep.subr.mxu0 %v2184_v26  ;;  %1612 = vmatpush3.msra.mxu1 %v2247_v36 }
  0x17   :  { %109 = vmatpush1.msra.mxu0 %v2196_v28  ;;  %1613 = vmatprep.subr.mxu1 %v3187_v3 }
  0x18   :  { %110 = vmatprep.subr.mxu0 %v2203_v29  ;;  %1614 = vmatpush3.msra.mxu1 %v2266_v39 }
  0x19   :  { %111 = vmatpush1.msra.mxu0 %v2215_v31  ;;  %1615 = vmatprep.subr.mxu1 %v3187_v3 }
  0x1a   :  { %112 = vmatprep.subr.mxu0 %v2222_v32  ;;  %1616 = vmatpush3.msra.mxu1 %v2285_v42 }
  0x1b   :  { %113 = vmatpush1.msra.mxu0 %v2234_v34  ;;  %1617 = vmatprep.subr.mxu1 %v3187_v3 }
  0x1c   :  { %114 = vmatprep.subr.mxu0 %v2241_v35  ;;  %1618 = vmatpush3.msra.mxu1 %v2299_v44 }
  0x1d   :  { %115 = vmatpush1.msra.mxu0 %v2253_v37  ;;  %1619 = vmatprep.subr.mxu1 %v3187_v3 }
  0x1e   :  { %116 = vmatprep.subr.mxu0 %v2260_v38  ;;  %1620 = vmatpush3.msra.mxu1 %v2308_v45 }
  0x1f   :  { %117 = vmatpush1.msra.mxu0 %v2272_v40  ;;  %1621 = vmatprep.subr.mxu1 %v3187_v3 }
  0x20   :  { %118 = vmatprep.subr.mxu0 %v2279_v41  ;;  %1622 = vmatpush3.msra.mxu1 %v2316_v46 }
  0x21   :  { %119 = vmatpush1.msra.mxu0 %v2291_v43  ;;  %1623 = vmatprep.subr.mxu1 %v3187_v3 }
  0x22   :  { %153 = vmatmul.mubr.f32.vlgmr.msra.gmra.mxu0 %v3187_v3  ;;  %254 = vmatprep.subr.mxu0 %v2030_v0 }
  0x23   :  { %255 = vmatpush1.msra.mxu0 %v2035_v1  ;;  %1624 = vmatpush3.msra.mxu1 %v2325_v47 }
  0x24   :  { %256 = vmatprep.subr.mxu0 %v2040_v2  ;;  %1625 = vmatprep.subr.mxu1 %v3187_v3 }
  0x25   :  { %257 = vmatpush1.msra.mxu0 %v2048_v4  ;;  %1626 = vmatpush3.msra.mxu1 %v2334_v48 }
  0x26   :  { %258 = vmatprep.subr.mxu0 %v2056_v5  ;;  %1628 = vmatmul.mubr.f32.vlgmr.msra.gmra.mxu1 %v3187_v3 }
  0x27   :  { %259 = vmatpush1.msra.mxu0 %v2062_v6  ;;  %1630 = vmatprep.subr.mxu1 %v3187_v3 }
  0x28   :  { %260 = vmatprep.subr.mxu0 %v2068_v7  ;;  %1631 = vmatpush3.msra.mxu1 %v2109_v14 }
  0x29   :  { %261 = vmatpush1.msra.mxu0 %v2074_v8  ;;  %1632 = vmatprep.subr.mxu1 %v3187_v3 }
  0x2a   :  { %262 = vmatprep.subr.mxu0 %v2080_v9  ;;  %1633 = vmatpush3.msra.mxu1 %v2121_v16 }
  0x2b   :  { %263 = vmatpush1.msra.mxu0 %v2086_v10  ;;  %1634 = vmatprep.subr.mxu1 %v3187_v3 }
  0x2c   :  { %264 = vmatprep.subr.mxu0 %v2092_v11  ;;  %1635 = vmatpush3.msra.mxu1 %v2133_v18 }
  0x2d   :  { %265 = vmatpush1.msra.mxu0 %v2098_v12  ;;  %1636 = vmatprep.subr.mxu1 %v3187_v3 }
  0x2e   :  { %266 = vmatprep.subr.mxu0 %v2104_v13  ;;  %1637 = vmatpush3.msra.mxu1 %v2152_v21 }
  0x2f   :  { %267 = vmatpush1.msra.mxu0 %v2115_v15  ;;  %1638 = vmatprep.subr.mxu1 %v3187_v3 }
  0x30   :  { %268 = vmatprep.subr.mxu0 %v2127_v17  ;;  %1639 = vmatpush3.msra.mxu1 %v2171_v24 }
  0x31   :  { %269 = vmatpush1.msra.mxu0 %v2139_v19  ;;  %1640 = vmatprep.subr.mxu1 %v3187_v3 }
  0x32   :  { %270 = vmatprep.subr.mxu0 %v2146_v20  ;;  %1641 = vmatpush3.msra.mxu1 %v2190_v27 }
  0x33   :  { %271 = vmatpush1.msra.mxu0 %v2158_v22  ;;  %1642 = vmatprep.subr.mxu1 %v3187_v3 }
  0x34   :  { %272 = vmatprep.subr.mxu0 %v2165_v23  ;;  %1643 = vmatpush3.msra.mxu1 %v2209_v30 }
  0x35   :  { %273 = vmatpush1.msra.mxu0 %v2177_v25  ;;  %1644 = vmatprep.subr.mxu1 %v3187_v3 }
  0x36   :  { %274 = vmatprep.subr.mxu0 %v2184_v26  ;;  %1645 = vmatpush3.msra.mxu1 %v2228_v33 }
  0x37   :  { %275 = vmatpush1.msra.mxu0 %v2196_v28  ;;  %1646 = vmatprep.subr.mxu1 %v3187_v3 }
  0x38   :  { %276 = vmatprep.subr.mxu0 %v2203_v29  ;;  %1647 = vmatpush3.msra.mxu1 %v2247_v36 }
  0x39   :  { %277 = vmatpush1.msra.mxu0 %v2215_v31  ;;  %1648 = vmatprep.subr.mxu1 %v3187_v3 }
  0x3a   :  { %278 = vmatprep.subr.mxu0 %v2222_v32  ;;  %1649 = vmatpush3.msra.mxu1 %v2266_v39 }
  0x3b   :  { %279 = vmatpush1.msra.mxu0 %v2234_v34  ;;  %1650 = vmatprep.subr.mxu1 %v3187_v3 }
  0x3c   :  { %280 = vmatprep.subr.mxu0 %v2241_v35  ;;  %1651 = vmatpush3.msra.mxu1 %v2285_v42 }
  0x3d   :  { %281 = vmatpush1.msra.mxu0 %v2253_v37  ;;  %1652 = vmatprep.subr.mxu1 %v3187_v3 }
  0x3e   :  { %282 = vmatprep.subr.mxu0 %v2260_v38  ;;  %1653 = vmatpush3.msra.mxu1 %v2299_v44 }
  0x3f   :  { %283 = vmatpush1.msra.mxu0 %v2272_v40  ;;  %1654 = vmatprep.subr.mxu1 %v3187_v3 }
  0x40   :  { %284 = vmatprep.subr.mxu0 %v2279_v41  ;;  %1655 = vmatpush3.msra.mxu1 %v2308_v45 }
  0x41   :  { %285 = vmatpush1.msra.mxu0 %v2291_v43  ;;  %318 = vmatprep.mubr.f32.mxu0 %v3187_v3 }
  0x42   :  { %1656 = vmatprep.subr.mxu1 %v3187_v3  ;;  %1662 = vmatprep.mubr.msk.f32.mxu1 %vm2006_vm0, %v3187_v3 }
  0x43   :  { %1657 = vmatpush3.msra.mxu1 %v2316_v46  ;;  %420 = vmatprep.subr.mxu0 %v2030_v0 }
  0x44   :  { %1658 = vmatprep.subr.mxu1 %v3187_v3 }
  0x45   :  { %1659 = vmatpush3.msra.mxu1 %v2325_v47 }
  0x46   :  { %1660 = vmatprep.subr.mxu1 %v3187_v3 }
  0x47   :  { %1661 = vmatpush3.msra.mxu1 %v2334_v48 }
  0x48   :  { %1665 = vmatprep.subr.mxu1 %v3187_v3 }
  0xe2   :  { %v154_v56 = vpop.f32.mrf.mxu0 }
  0xe3   :  { %v155_v57 = vadd.f32 %v154_v56, %v2408_v53  ;;  %v2420_v56 = vrot.slane %v67_v52, %v79_v54  ;;  %v3210_v54 = vld [vmem:[#allocation7_spill] sm:$0xff] }
  0xe4   :  { %v156_v59 = vpop.f32.mrf.mxu0 }
  0xe5   :  { %v229_v60 = vadd.f32 %v155_v57, %v85_v55  ;;  %v157_v62 = vadd.f32 %v156_v59, %v2414_v58 }
  0xe6   :  { %v225_v51 = vpop.f32.mrf.mxu1 }
  0xe7   :  { %v1422_v61 = vmul.f32 -1.442695, %v229_v60  ;;  %v236_v49 = vadd.f32 %v157_v62, %v86_v63  ;;  %v226_v59 = vadd.f32 %v225_v51, %v2420_v56  ;;  %v3209_v51 = vld [vmem:[#allocation5_spill] sm:$0xff] }
  0xe8   :  { %v1629_v3 = vpop.f32.mrf.mxu1 }
  0xe9   :  { %1877 = vpow2.f32 %v1422_v61  ;;  %v1423_v0 = vmul.f32 -1.442695, %v236_v49  ;;  %v87_v61 = vld [vmem:[%s3185_s0 + $0x10] sm:$0xff]  ;;  %v3208_v49 = vmov 0.0  }
  0xeb   :  { %1879 = vpow2.f32 %v1423_v0 }
  0xf6   :  { %v1878_v48 = vpop.eup %1877 }
  0xf7   :  { %v233_v43 = vadd.f32 1.0, %v1878_v48 }
  0xf8   :  { %v1880_v55 = vpop.eup %1879 }
  0xf9   :  { %1881 = vrcp.f32 %v233_v43  ;;  %v240_v57 = vadd.f32 1.0, %v1880_v55  ;;  %v3211_v55 = vld [vmem:[#allocation3_spill] sm:$0xff] }
  0xfb   :  { %1883 = vrcp.f32 %v240_v57  ;;  %v1424_v57 = vld [vmem:[%s3185_s0 + $0x18] sm:$0xff] }
 0x106   :  { %v1882_v60 = vpop.eup %1881 }
 0x107   :  { %v243_v62 = vmul.f32 %v1882_v60, %v226_v59 }
 0x108   :  { %v1884_v0 = vpop.eup %1883 }
 0x109   :  { %v244_v3 = vadd.f32 %v243_v62, %v87_v61  ;;  %v246_v63 = vsub.f32 1.0, %v1884_v0  ;;  %v248_v50 = vmul.f32 0.0, %v1884_v0 }
 0x10b   :  { %1885 = vtanh.f32 %v244_v3 }
 0x118   :  { %v1886_v48 = vpop.eup %1885 }
 0x119   :  { %v247_v43 = vmul.f32 %v1886_v48, %v246_v63 }
 0x11b   :  { %v2426_v52 = vadd.f32 %v248_v50, %v247_v43  ;;  %v1425_v43 = vld [vmem:[%s3185_s0 + $0x20] sm:$0xff] }
 0x11d   :  { %319 = vmatmul.mubr.f32.vlgmr.msra.gmra.mxu0 %v2426_v52  ;;  %1663 = vmatmul.mubr.f32.vlgmr.msra.gmra.mxu1 %v2426_v52 }
 0x11e   :  { %421 = vmatpush1.msra.mxu0 %v2035_v1  ;;  %1666 = vmatpush3.msra.mxu1 %v2109_v14 }
 0x11f   :  { %422 = vmatprep.subr.mxu0 %v2040_v2  ;;  %1667 = vmatprep.subr.mxu1 %v3208_v49 }
 0x120   :  { %423 = vmatpush1.msra.mxu0 %v2048_v4  ;;  %1668 = vmatpush3.msra.mxu1 %v2121_v16 }
 0x121   :  { %424 = vmatprep.subr.mxu0 %v2056_v5  ;;  %1669 = vmatprep.subr.mxu1 %v3208_v49 }
 0x122   :  { %425 = vmatpush1.msra.mxu0 %v2062_v6  ;;  %1670 = vmatpush3.msra.mxu1 %v2133_v18 }
 0x123   :  { %426 = vmatprep.subr.mxu0 %v2068_v7  ;;  %1671 = vmatprep.subr.mxu1 %v3208_v49 }
 0x124   :  { %427 = vmatpush1.msra.mxu0 %v2074_v8  ;;  %1672 = vmatpush3.msra.mxu1 %v2152_v21 }
 0x125   :  { %428 = vmatprep.subr.mxu0 %v2080_v9  ;;  %1673 = vmatprep.subr.mxu1 %v3208_v49 }
 0x126   :  { %429 = vmatpush1.msra.mxu0 %v2086_v10  ;;  %1674 = vmatpush3.msra.mxu1 %v2171_v24 }
 0x127   :  { %430 = vmatprep.subr.mxu0 %v2092_v11  ;;  %1675 = vmatprep.subr.mxu1 %v3208_v49 }
 0x128   :  { %431 = vmatpush1.msra.mxu0 %v2098_v12  ;;  %1676 = vmatpush3.msra.mxu1 %v2190_v27 }
 0x129   :  { %432 = vmatprep.subr.mxu0 %v2104_v13  ;;  %1677 = vmatprep.subr.mxu1 %v3208_v49 }
 0x12a   :  { %433 = vmatpush1.msra.mxu0 %v2115_v15  ;;  %1678 = vmatpush3.msra.mxu1 %v2209_v30 }
 0x12b   :  { %434 = vmatprep.subr.mxu0 %v2127_v17  ;;  %1679 = vmatprep.subr.mxu1 %v3208_v49 }
 0x12c   :  { %435 = vmatpush1.msra.mxu0 %v2139_v19  ;;  %1680 = vmatpush3.msra.mxu1 %v2228_v33 }
 0x12d   :  { %436 = vmatprep.subr.mxu0 %v2146_v20  ;;  %1681 = vmatprep.subr.mxu1 %v3208_v49 }
 0x12e   :  { %437 = vmatpush1.msra.mxu0 %v2158_v22  ;;  %1682 = vmatpush3.msra.mxu1 %v2247_v36 }
 0x12f   :  { %438 = vmatprep.subr.mxu0 %v2165_v23  ;;  %1683 = vmatprep.subr.mxu1 %v3208_v49 }
 0x130   :  { %439 = vmatpush1.msra.mxu0 %v2177_v25  ;;  %1684 = vmatpush3.msra.mxu1 %v2266_v39 }
 0x131   :  { %440 = vmatprep.subr.mxu0 %v2184_v26  ;;  %1685 = vmatprep.subr.mxu1 %v3208_v49 }
 0x132   :  { %441 = vmatpush1.msra.mxu0 %v2196_v28  ;;  %1686 = vmatpush3.msra.mxu1 %v2285_v42 }
 0x133   :  { %442 = vmatprep.subr.mxu0 %v2203_v29  ;;  %1687 = vmatprep.subr.mxu1 %v3208_v49 }
 0x134   :  { %443 = vmatpush1.msra.mxu0 %v2215_v31  ;;  %1688 = vmatpush3.msra.mxu1 %v2299_v44 }
 0x135   :  { %444 = vmatprep.subr.mxu0 %v2222_v32  ;;  %1689 = vmatprep.subr.mxu1 %v3208_v49 }
 0x136   :  { %445 = vmatpush1.msra.mxu0 %v2234_v34  ;;  %1690 = vmatpush3.msra.mxu1 %v2308_v45 }
 0x137   :  { %446 = vmatprep.subr.mxu0 %v2241_v35  ;;  %1691 = vmatprep.subr.mxu1 %v3208_v49 }
 0x138   :  { %447 = vmatpush1.msra.mxu0 %v2253_v37  ;;  %1692 = vmatpush3.msra.mxu1 %v2316_v46 }
 0x139   :  { %448 = vmatprep.subr.mxu0 %v2260_v38  ;;  %1693 = vmatprep.subr.mxu1 %v3208_v49 }
 0x13a   :  { %449 = vmatpush1.msra.mxu0 %v2272_v40  ;;  %1694 = vmatpush3.msra.mxu1 %v2325_v47 }
 0x13b   :  { %450 = vmatprep.subr.mxu0 %v2279_v41  ;;  %1695 = vmatprep.subr.mxu1 %v3208_v49 }
 0x13c   :  { %451 = vmatpush1.msra.mxu0 %v3209_v51  ;;  %484 = vmatprep.mubr.f32.mxu0 %v3208_v49 }
 0x13d   :  { %1696 = vmatpush3.msra.mxu1 %v3210_v54  ;;  %1697 = vmatprep.mubr.msk.f32.mxu1 %vm2006_vm0, %v3208_v49 }
 0x13e   :  { %586 = vmatprep.subr.mxu0 %v3211_v55  ;;  %1700 = vmatprep.subr.mxu1 %v3208_v49 }
 0x1dd   :  { %v320_v59 = vpop.f32.mrf.mxu0  ;;  %v391_v60 = vpop.f32.mrf.mxu1 }
 0x1de   :  { %v321_v61 = vadd.f32 %v320_v59, %v2408_v53  ;;  %v392_v59 = vadd.f32 %v391_v60, %v2420_v56  ;;  %v3215_v60 = vld [vmem:[#allocation7_spill] sm:$0xff] }
 0x1df   :  { %v322_v62 = vpop.f32.mrf.mxu0  ;;  %v1664_v3 = vpop.f32.mrf.mxu1 }
 0x1e0   :  { %v395_v0 = vadd.f32 %v1424_v57, %v321_v61  ;;  %v323_v48 = vadd.f32 %v322_v62, %v2414_v58  ;;  %v1426_v57 = vld [vmem:[%s3185_s0 + $0x28] sm:$0xff] }
 0x1e2   :  { %v1427_v63 = vmul.f32 -1.442695, %v395_v0  ;;  %v402_v50 = vadd.f32 %v1425_v43, %v323_v48  ;;  %v3216_v43 = vld [vmem:[#allocation3_spill] sm:$0xff] }
 0x1e4   :  { %1887 = vpow2.f32 %v1427_v63  ;;  %v1428_v55 = vmul.f32 -1.442695, %v402_v50  ;;  %v1429_v50 = vld [vmem:[%s3185_s0 + $0x30] sm:$0xff] }
 0x1e6   :  { %1889 = vpow2.f32 %v1428_v55 }
 0x1f1   :  { %v1888_v54 = vpop.eup %1887 }
 0x1f2   :  { %v399_v51 = vadd.f32 1.0, %v1888_v54 }
 0x1f3   :  { %v1890_v41 = vpop.eup %1889 }
 0x1f4   :  { %1891 = vrcp.f32 %v399_v51  ;;  %v406_v47 = vadd.f32 1.0, %v1890_v41  ;;  %v3212_v41 = vld [vmem:[#allocation6_spill] sm:$0xff] }
 0x1f6   :  { %1893 = vrcp.f32 %v406_v47  ;;  %v3213_v47 = vld [vmem:[#allocation4_spill] sm:$0xff] }
 0x201   :  { %v1892_v3 = vpop.eup %1891 }
 0x202   :  { %v409_v61 = vmul.f32 %v1892_v3, %v392_v59 }
 0x203   :  { %v1894_v0 = vpop.eup %1893 }
 0x204   :  { %v410_v62 = vadd.f32 %v1426_v57, %v409_v61  ;;  %v412_v63 = vsub.f32 1.0, %v1894_v0  ;;  %v414_v54 = vmul.f32 %v1894_v0, %v2426_v52  ;;  %v3214_v52 = vld [vmem:[#allocation5_spill] sm:$0xff] }
 0x206   :  { %1895 = vtanh.f32 %v410_v62 }
 0x213   :  { %v1896_v48 = vpop.eup %1895 }
 0x214   :  { %v413_v55 = vmul.f32 %v1896_v48, %v412_v63 }
 0x216   :  { %v2510_v51 = vadd.f32 %v414_v54, %v413_v55  ;;  %v1430_v55 = vld [vmem:[%s3185_s0 + $0x38] sm:$0xff] }
 0x218   :  { %485 = vmatmul.mubr.f32.vlgmr.msra.gmra.mxu0 %v2510_v51  ;;  %1698 = vmatmul.mubr.f32.vlgmr.msra.gmra.mxu1 %v2510_v51 }
 0x219   :  { %587 = vmatpush1.msra.mxu0 %v2035_v1  ;;  %1701 = vmatpush3.msra.mxu1 %v2109_v14 }
 0x21a   :  { %588 = vmatprep.subr.mxu0 %v2040_v2  ;;  %1702 = vmatprep.subr.mxu1 %v3208_v49 }
 0x21b   :  { %589 = vmatpush1.msra.mxu0 %v2048_v4  ;;  %1703 = vmatpush3.msra.mxu1 %v2121_v16 }
 0x21c   :  { %590 = vmatprep.subr.mxu0 %v2056_v5  ;;  %1704 = vmatprep.subr.mxu1 %v3208_v49 }
 0x21d   :  { %591 = vmatpush1.msra.mxu0 %v2062_v6  ;;  %1705 = vmatpush3.msra.mxu1 %v2133_v18 }
 0x21e   :  { %592 = vmatprep.subr.mxu0 %v2068_v7  ;;  %1706 = vmatprep.subr.mxu1 %v3208_v49 }
 0x21f   :  { %593 = vmatpush1.msra.mxu0 %v2074_v8  ;;  %1707 = vmatpush3.msra.mxu1 %v2152_v21 }
 0x220   :  { %594 = vmatprep.subr.mxu0 %v2080_v9  ;;  %1708 = vmatprep.subr.mxu1 %v3208_v49 }
 0x221   :  { %595 = vmatpush1.msra.mxu0 %v2086_v10  ;;  %1709 = vmatpush3.msra.mxu1 %v2171_v24 }
 0x222   :  { %596 = vmatprep.subr.mxu0 %v2092_v11  ;;  %1710 = vmatprep.subr.mxu1 %v3208_v49 }
 0x223   :  { %597 = vmatpush1.msra.mxu0 %v2098_v12  ;;  %1711 = vmatpush3.msra.mxu1 %v2190_v27 }
 0x224   :  { %598 = vmatprep.subr.mxu0 %v2104_v13  ;;  %1712 = vmatprep.subr.mxu1 %v3208_v49 }
 0x225   :  { %599 = vmatpush1.msra.mxu0 %v2115_v15  ;;  %1713 = vmatpush3.msra.mxu1 %v2209_v30 }
 0x226   :  { %600 = vmatprep.subr.mxu0 %v2127_v17  ;;  %1714 = vmatprep.subr.mxu1 %v3208_v49 }
 0x227   :  { %601 = vmatpush1.msra.mxu0 %v2139_v19  ;;  %1715 = vmatpush3.msra.mxu1 %v2228_v33 }
 0x228   :  { %602 = vmatprep.subr.mxu0 %v2146_v20  ;;  %1716 = vmatprep.subr.mxu1 %v3208_v49 }
 0x229   :  { %603 = vmatpush1.msra.mxu0 %v2158_v22  ;;  %1717 = vmatpush3.msra.mxu1 %v2247_v36 }
 0x22a   :  { %604 = vmatprep.subr.mxu0 %v2165_v23  ;;  %1718 = vmatprep.subr.mxu1 %v3208_v49 }
 0x22b   :  { %605 = vmatpush1.msra.mxu0 %v2177_v25  ;;  %1719 = vmatpush3.msra.mxu1 %v2266_v39 }
 0x22c   :  { %606 = vmatprep.subr.mxu0 %v2184_v26  ;;  %1720 = vmatprep.subr.mxu1 %v3208_v49 }
 0x22d   :  { %607 = vmatpush1.msra.mxu0 %v2196_v28  ;;  %1721 = vmatpush3.msra.mxu1 %v2285_v42 }
 0x22e   :  { %608 = vmatprep.subr.mxu0 %v2203_v29  ;;  %1722 = vmatprep.subr.mxu1 %v3208_v49 }
 0x22f   :  { %609 = vmatpush1.msra.mxu0 %v2215_v31  ;;  %1723 = vmatpush3.msra.mxu1 %v2299_v44 }
 0x230   :  { %610 = vmatprep.subr.mxu0 %v2222_v32  ;;  %1724 = vmatprep.subr.mxu1 %v3208_v49 }
 0x231   :  { %611 = vmatpush1.msra.mxu0 %v2234_v34  ;;  %1725 = vmatpush3.msra.mxu1 %v2308_v45 }
 0x232   :  { %612 = vmatprep.subr.mxu0 %v2241_v35  ;;  %1726 = vmatprep.subr.mxu1 %v3208_v49 }
 0x233   :  { %613 = vmatpush1.msra.mxu0 %v2253_v37  ;;  %1727 = vmatpush3.msra.mxu1 %v2316_v46 }
 0x234   :  { %614 = vmatprep.subr.mxu0 %v2260_v38  ;;  %1728 = vmatprep.subr.mxu1 %v3208_v49 }
 0x235   :  { %615 = vmatpush1.msra.mxu0 %v2272_v40  ;;  %1729 = vmatpush3.msra.mxu1 %v3212_v41 }
 0x236   :  { %616 = vmatprep.subr.mxu0 %v3213_v47  ;;  %1730 = vmatprep.subr.mxu1 %v3208_v49 }
 0x237   :  { %617 = vmatpush1.msra.mxu0 %v3214_v52  ;;  %650 = vmatprep.mubr.f32.mxu0 %v3208_v49 }
 0x238   :  { %1731 = vmatpush3.msra.mxu1 %v3215_v60  ;;  %1732 = vmatprep.mubr.msk.f32.mxu1 %vm2006_vm0, %v3208_v49 }
 0x239   :  { %752 = vmatprep.subr.mxu0 %v3216_v43  ;;  %1735 = vmatprep.subr.mxu1 %v3208_v49 }
 0x2d8   :  { %v486_v59 = vpop.f32.mrf.mxu0  ;;  %v557_v3 = vpop.f32.mrf.mxu1 }
 0x2d9   :  { %v487_v57 = vadd.f32 %v486_v59, %v2408_v53  ;;  %v558_v59 = vadd.f32 %v557_v3, %v2420_v56 }
 0x2da   :  { %v488_v61 = vpop.f32.mrf.mxu0  ;;  %v1699_v62 = vpop.f32.mrf.mxu1 }
 0x2db   :  { %v561_v0 = vadd.f32 %v1429_v50, %v487_v57  ;;  %v489_v48 = vadd.f32 %v488_v61, %v2414_v58  ;;  %v1431_v50 = vld [vmem:[%s3185_s0 + $0x40] sm:$0xff] }
 0x2dd   :  { %v1432_v63 = vmul.f32 -1.442695, %v561_v0  ;;  %v568_v54 = vadd.f32 %v1430_v55, %v489_v48 }
 0x2df   :  { %1897 = vpow2.f32 %v1432_v63  ;;  %v1433_v43 = vmul.f32 -1.442695, %v568_v54 }
 0x2e1   :  { %1899 = vpow2.f32 %v1433_v43 }
 0x2ec   :  { %v1898_v60 = vpop.eup %1897 }
 0x2ed   :  { %v565_v52 = vadd.f32 1.0, %v1898_v60 }
 0x2ee   :  { %v1900_v47 = vpop.eup %1899 }
 0x2ef   :  { %1901 = vrcp.f32 %v565_v52  ;;  %v572_v41 = vadd.f32 1.0, %v1900_v47  ;;  %v1436_v47 = vld [vmem:[%s3185_s0 + $0x58] sm:$0xff] }
 0x2f1   :  { %1903 = vrcp.f32 %v572_v41 }
 0x2fc   :  { %v1902_v62 = vpop.eup %1901 }
 0x2fd   :  { %v575_v57 = vmul.f32 %v1902_v62, %v558_v59 }
 0x2fe   :  { %v1904_v0 = vpop.eup %1903 }
 0x2ff   :  { %v576_v61 = vadd.f32 %v1431_v50, %v575_v57  ;;  %v578_v63 = vsub.f32 1.0, %v1904_v0  ;;  %v580_v60 = vmul.f32 %v1904_v0, %v2510_v51  ;;  %v2685_v0 = vld [vmem:[%s3183_s1 + $0x168] sm:$0xff] }
 0x301   :  { %1905 = vtanh.f32 %v576_v61 }
 0x30e   :  { %v1906_v48 = vpop.eup %1905 }
 0x30f   :  { %v579_v43 = vmul.f32 %v1906_v48, %v578_v63  ;;  %v2692_v63 = vld [vmem:[%s3183_s1 + $0x158] sm:$0xff]  ;;  %v2699_v48 = vld [vmem:[%s3183_s1 + $0x150] sm:$0xff] }
 0x311   :  { %v2594_v52 = vadd.f32 %v580_v60, %v579_v43  ;;  %v2713_v43 = vld [vmem:[%s3183_s1 + $0x138] sm:$0xff]  ;;  %v2727_v60 = vld [vmem:[%s3183_s1 + $0x120] sm:$0xff] }
 0x313   :  { %651 = vmatmul.mubr.f32.vlgmr.msra.gmra.mxu0 %v2594_v52  ;;  %1733 = vmatmul.mubr.f32.vlgmr.msra.gmra.mxu1 %v2594_v52 }
 0x314   :  { %753 = vmatpush1.msra.mxu0 %v2035_v1  ;;  %1736 = vmatpush3.msra.mxu1 %v2109_v14  ;;  %v3217_v1 = vld [vmem:[#allocation6_spill] sm:$0xff] }
 0x315   :  { %754 = vmatprep.subr.mxu0 %v2040_v2  ;;  %1737 = vmatprep.subr.mxu1 %v3208_v49  ;;  %v3218_v2 = vld [vmem:[#allocation4_spill] sm:$0xff] }
 0x316   :  { %755 = vmatpush1.msra.mxu0 %v2048_v4  ;;  %1738 = vmatpush3.msra.mxu1 %v2121_v16  ;;  %v3219_v4 = vld [vmem:[#allocation5_spill] sm:$0xff] }
 0x317   :  { %756 = vmatprep.subr.mxu0 %v2056_v5  ;;  %1739 = vmatprep.subr.mxu1 %v3208_v49  ;;  %v3220_v5 = vld [vmem:[#allocation7_spill] sm:$0xff] }
 0x318   :  { %757 = vmatpush1.msra.mxu0 %v2062_v6  ;;  %1740 = vmatpush3.msra.mxu1 %v2133_v18  ;;  %v3221_v6 = vld [vmem:[#allocation3_spill] sm:$0xff] }
 0x319   :  { %758 = vmatprep.subr.mxu0 %v2068_v7  ;;  %1741 = vmatprep.subr.mxu1 %v3208_v49  ;;  %v1434_v7 = vld [vmem:[%s3185_s0 + $0x48] sm:$0xff] }
 0x31a   :  { %759 = vmatpush1.msra.mxu0 %v2074_v8  ;;  %1742 = vmatpush3.msra.mxu1 %v2152_v21 }
 0x31b   :  { %760 = vmatprep.subr.mxu0 %v2080_v9  ;;  %1743 = vmatprep.subr.mxu1 %v3208_v49 }
 0x31c   :  { %761 = vmatpush1.msra.mxu0 %v2086_v10  ;;  %1744 = vmatpush3.msra.mxu1 %v2171_v24 }
 0x31d   :  { %762 = vmatprep.subr.mxu0 %v2092_v11  ;;  %1745 = vmatprep.subr.mxu1 %v3208_v49 }
 0x31e   :  { %763 = vmatpush1.msra.mxu0 %v2098_v12  ;;  %1746 = vmatpush3.msra.mxu1 %v2190_v27 }
 0x31f   :  { %764 = vmatprep.subr.mxu0 %v2104_v13  ;;  %1747 = vmatprep.subr.mxu1 %v3208_v49 }
 0x320   :  { %765 = vmatpush1.msra.mxu0 %v2115_v15  ;;  %1748 = vmatpush3.msra.mxu1 %v2209_v30 }
 0x321   :  { %766 = vmatprep.subr.mxu0 %v2127_v17  ;;  %1749 = vmatprep.subr.mxu1 %v3208_v49 }
 0x322   :  { %767 = vmatpush1.msra.mxu0 %v2139_v19  ;;  %1750 = vmatpush3.msra.mxu1 %v2228_v33  ;;  %v1435_v19 = vld [vmem:[%s3185_s0 + $0x50] sm:$0xff] }
 0x323   :  { %768 = vmatprep.subr.mxu0 %v2146_v20  ;;  %1751 = vmatprep.subr.mxu1 %v3208_v49 }
 0x324   :  { %769 = vmatpush1.msra.mxu0 %v2158_v22  ;;  %1752 = vmatpush3.msra.mxu1 %v2247_v36 }
 0x325   :  { %770 = vmatprep.subr.mxu0 %v2165_v23  ;;  %1753 = vmatprep.subr.mxu1 %v3208_v49 }
 0x326   :  { %771 = vmatpush1.msra.mxu0 %v2177_v25  ;;  %1754 = vmatpush3.msra.mxu1 %v2266_v39 }
 0x327   :  { %772 = vmatprep.subr.mxu0 %v2184_v26  ;;  %1755 = vmatprep.subr.mxu1 %v3208_v49 }
 0x328   :  { %773 = vmatpush1.msra.mxu0 %v2196_v28  ;;  %1756 = vmatpush3.msra.mxu1 %v2285_v42 }
 0x329   :  { %774 = vmatprep.subr.mxu0 %v2203_v29  ;;  %1757 = vmatprep.subr.mxu1 %v3208_v49 }
 0x32a   :  { %775 = vmatpush1.msra.mxu0 %v2215_v31  ;;  %1758 = vmatpush3.msra.mxu1 %v2299_v44 }
 0x32b   :  { %776 = vmatprep.subr.mxu0 %v2222_v32  ;;  %1759 = vmatprep.subr.mxu1 %v3208_v49 }
 0x32c   :  { %777 = vmatpush1.msra.mxu0 %v2234_v34  ;;  %1760 = vmatpush3.msra.mxu1 %v2308_v45 }
 0x32d   :  { %778 = vmatprep.subr.mxu0 %v2241_v35  ;;  %1761 = vmatprep.subr.mxu1 %v3208_v49 }
 0x32e   :  { %779 = vmatpush1.msra.mxu0 %v2253_v37  ;;  %1762 = vmatpush3.msra.mxu1 %v2316_v46 }
 0x32f   :  { %780 = vmatprep.subr.mxu0 %v2260_v38  ;;  %1763 = vmatprep.subr.mxu1 %v3208_v49 }
 0x330   :  { %781 = vmatpush1.msra.mxu0 %v2272_v40  ;;  %1764 = vmatpush3.msra.mxu1 %v3217_v1 }
 0x331   :  { %782 = vmatprep.subr.mxu0 %v3218_v2  ;;  %1765 = vmatprep.subr.mxu1 %v3208_v49 }
 0x332   :  { %783 = vmatpush1.msra.mxu0 %v3219_v4  ;;  %816 = vmatprep.mubr.f32.mxu0 %v3208_v49 }
 0x333   :  { %1766 = vmatpush3.msra.mxu1 %v3220_v5  ;;  %1767 = vmatprep.mubr.msk.f32.mxu1 %vm2006_vm0, %v3208_v49 }
 0x334   :  { %918 = vmatprep.subr.mxu0 %v3221_v6  ;;  %1770 = vmatprep.subr.mxu1 %v3208_v49  ;;  %v2755_v6 = vld [vmem:[%s3183_s1 + $0xf0] sm:$0xff] }
 0x3d3   :  { %v652_v8 = vpop.f32.mrf.mxu0  ;;  %v723_v9 = vpop.f32.mrf.mxu1 }
 0x3d4   :  { %v653_v10 = vadd.f32 %v652_v8, %v2408_v53  ;;  %v724_v51 = vadd.f32 %v723_v9, %v2420_v56  ;;  %v2783_v8 = vld [vmem:[%s3183_s1 + $0xc0] sm:$0xff]  ;;  %v2797_v9 = vld [vmem:[%s3183_s1 + $0xa8] sm:$0xff] }
 0x3d5   :  { %v654_v11 = vpop.f32.mrf.mxu0  ;;  %v1734_v12 = vpop.f32.mrf.mxu1 }
 0x3d6   :  { %v727_v13 = vadd.f32 %v1434_v7, %v653_v10  ;;  %v655_v17 = vadd.f32 %v654_v11, %v2414_v58  ;;  %v2769_v7 = vld [vmem:[%s3183_s1 + $0xd8] sm:$0xff]  ;;  %v2811_v10 = vld [vmem:[%s3183_s1 + $0x90] sm:$0xff] }
 0x3d7   :  { %v2825_v11 = vld [vmem:[%s3183_s1 + $0x78] sm:$0xff] }
 0x3d8   :  { %v1437_v15 = vmul.f32 -1.442695, %v727_v13  ;;  %v734_v20 = vadd.f32 %v1435_v19, %v655_v17 }
 0x3da   :  { %1907 = vpow2.f32 %v1437_v15  ;;  %v1438_v22 = vmul.f32 -1.442695, %v734_v20  ;;  %v1441_v15 = vld [vmem:[%s3185_s0 + $0x70] sm:$0xff] }
 0x3dc   :  { %1909 = vpow2.f32 %v1438_v22 }
 0x3e7   :  { %v1908_v23 = vpop.eup %1907 }
 0x3e8   :  { %v731_v25 = vadd.f32 1.0, %v1908_v23 }
 0x3e9   :  { %v1910_v26 = vpop.eup %1909 }
 0x3ea   :  { %1911 = vrcp.f32 %v731_v25  ;;  %v738_v28 = vadd.f32 1.0, %v1910_v26 }
 0x3ec   :  { %1913 = vrcp.f32 %v738_v28 }
 0x3f7   :  { %v1912_v41 = vpop.eup %1911 }
 0x3f8   :  { %v741_v3 = vmul.f32 %v1912_v41, %v724_v51  ;;  %v2880_v51 = vld [vmem:[%s3183_s1 + $0x178] sm:$0xff]  ;;  %v2889_v41 = vld [vmem:[%s3183_s1 + $0x160] sm:$0xff] }
 0x3f9   :  { %v1914_v54 = vpop.eup %1913 }
 0x3fa   :  { %v742_v55 = vadd.f32 %v1436_v47, %v741_v3  ;;  %v744_v59 = vsub.f32 1.0, %v1914_v54  ;;  %v746_v57 = vmul.f32 %v1914_v54, %v2594_v52  ;;  %v2741_v52 = vld [vmem:[%s3183_s1 + $0x108] sm:$0xff]  ;;  %v2907_v3 = vld [vmem:[%s3183_s1 + $0x130] sm:$0xff]  ;;  %v2925_v54 = vld [vmem:[%s3183_s1 + $0x100] sm:$0xff] }
 0x3fb   :  { %v2898_v47 = vld [vmem:[%s3183_s1 + $0x148] sm:$0xff] }
 0x3fc   :  { %1915 = vtanh.f32 %v742_v55  ;;  %v2916_v55 = vld [vmem:[%s3183_s1 + $0x118] sm:$0xff] }
 0x409   :  { %v1916_v62 = vpop.eup %1915 }
 0x40a   :  { %v745_v50 = vmul.f32 %v1916_v62, %v744_v59  ;;  %v2934_v59 = vld [vmem:[%s3183_s1 + $0xe8] sm:$0xff]  ;;  %v2943_v62 = vld [vmem:[%s3183_s1 + $0xd0] sm:$0xff] }
 0x40c   :  { %v2678_v61 = vadd.f32 %v746_v57, %v745_v50  ;;  %v2952_v50 = vld [vmem:[%s3183_s1 + $0xb8] sm:$0xff]  ;;  %v2961_v57 = vld [vmem:[%s3183_s1 + $0xa0] sm:$0xff] }
 0x40e   :  { %817 = vmatmul.mubr.f32.vlgmr.msra.gmra.mxu0 %v2678_v61  ;;  %1768 = vmatmul.mubr.f32.vlgmr.msra.gmra.mxu1 %v2678_v61 }
 0x40f   :  { %919 = vmatpush1.msra.mxu0 %v2685_v0  ;;  %1771 = vmatpush3.msra.mxu1 %v2109_v14  ;;  %v2706_v14 = vld [vmem:[%s3183_s1 + $0x140] sm:$0xff] }
 0x410   :  { %920 = vmatprep.subr.mxu0 %v2692_v63  ;;  %1772 = vmatprep.subr.mxu1 %v3208_v49 }
 0x411   :  { %921 = vmatpush1.msra.mxu0 %v2699_v48  ;;  %1773 = vmatpush3.msra.mxu1 %v2121_v16  ;;  %v2720_v16 = vld [vmem:[%s3183_s1 + $0x128] sm:$0xff] }
 0x412   :  { %922 = vmatprep.subr.mxu0 %v2706_v14  ;;  %1774 = vmatprep.subr.mxu1 %v3208_v49 }
 0x413   :  { %923 = vmatpush1.msra.mxu0 %v2713_v43  ;;  %1775 = vmatpush3.msra.mxu1 %v2133_v18  ;;  %v2734_v18 = vld [vmem:[%s3183_s1 + $0x110] sm:$0xff] }
 0x414   :  { %924 = vmatprep.subr.mxu0 %v2720_v16  ;;  %1776 = vmatprep.subr.mxu1 %v3208_v49 }
 0x415   :  { %925 = vmatpush1.msra.mxu0 %v2727_v60  ;;  %1777 = vmatpush3.msra.mxu1 %v2152_v21  ;;  %v2748_v21 = vld [vmem:[%s3183_s1 + $0xf8] sm:$0xff] }
 0x416   :  { %926 = vmatprep.subr.mxu0 %v2734_v18  ;;  %1778 = vmatprep.subr.mxu1 %v3208_v49 }
 0x417   :  { %927 = vmatpush1.msra.mxu0 %v2741_v52  ;;  %1779 = vmatpush3.msra.mxu1 %v2171_v24  ;;  %v2762_v24 = vld [vmem:[%s3183_s1 + $0xe0] sm:$0xff] }
 0x418   :  { %928 = vmatprep.subr.mxu0 %v2748_v21  ;;  %1780 = vmatprep.subr.mxu1 %v3208_v49 }
 0x419   :  { %929 = vmatpush1.msra.mxu0 %v2755_v6  ;;  %1781 = vmatpush3.msra.mxu1 %v2190_v27  ;;  %v2776_v27 = vld [vmem:[%s3183_s1 + $0xc8] sm:$0xff] }
 0x41a   :  { %930 = vmatprep.subr.mxu0 %v2762_v24  ;;  %1782 = vmatprep.subr.mxu1 %v3208_v49 }
 0x41b   :  { %931 = vmatpush1.msra.mxu0 %v2769_v7  ;;  %1783 = vmatpush3.msra.mxu1 %v2209_v30  ;;  %v2790_v30 = vld [vmem:[%s3183_s1 + $0xb0] sm:$0xff] }
 0x41c   :  { %932 = vmatprep.subr.mxu0 %v2776_v27  ;;  %1784 = vmatprep.subr.mxu1 %v3208_v49 }
 0x41d   :  { %933 = vmatpush1.msra.mxu0 %v2783_v8  ;;  %1785 = vmatpush3.msra.mxu1 %v2228_v33  ;;  %v2804_v33 = vld [vmem:[%s3183_s1 + $0x98] sm:$0xff] }
 0x41e   :  { %934 = vmatprep.subr.mxu0 %v2790_v30  ;;  %1786 = vmatprep.subr.mxu1 %v3208_v49 }
 0x41f   :  { %935 = vmatpush1.msra.mxu0 %v2797_v9  ;;  %1787 = vmatpush3.msra.mxu1 %v2247_v36  ;;  %v2818_v36 = vld [vmem:[%s3183_s1 + $0x80] sm:$0xff] }
 0x420   :  { %936 = vmatprep.subr.mxu0 %v2804_v33  ;;  %1788 = vmatprep.subr.mxu1 %v3208_v49 }
 0x421   :  { %937 = vmatpush1.msra.mxu0 %v2811_v10  ;;  %1789 = vmatpush3.msra.mxu1 %v2266_v39 }
 0x422   :  { %938 = vmatprep.subr.mxu0 %v2818_v36  ;;  %1790 = vmatprep.subr.mxu1 %v3208_v49 }
 0x423   :  { %939 = vmatpush1.msra.mxu0 %v2825_v11  ;;  %1791 = vmatpush3.msra.mxu1 %v2285_v42 }
 0x424   :  { %940 = vmatprep.subr.mxu0 %v2203_v29  ;;  %1792 = vmatprep.subr.mxu1 %v3208_v49  ;;  %v2855_v29 = vld [vmem:[%s3183_s1 + $0x170] sm:$0xff] }
 0x425   :  { %941 = vmatpush1.msra.mxu0 %v2215_v31  ;;  %1793 = vmatpush3.msra.mxu1 %v2299_v44  ;;  %v1439_v31 = vld [vmem:[%s3185_s0 + $0x60] sm:$0xff]  ;;  %v1440_v44 = vld [vmem:[%s3185_s0 + $0x68] sm:$0xff] }
 0x426   :  { %942 = vmatprep.subr.mxu0 %v2222_v32  ;;  %1794 = vmatprep.subr.mxu1 %v3208_v49 }
 0x427   :  { %943 = vmatpush1.msra.mxu0 %v2234_v34  ;;  %1795 = vmatpush3.msra.mxu1 %v2308_v45 }
 0x428   :  { %944 = vmatprep.subr.mxu0 %v2241_v35  ;;  %1796 = vmatprep.subr.mxu1 %v3208_v49 }
 0x429   :  { %945 = vmatpush1.msra.mxu0 %v2253_v37  ;;  %1797 = vmatpush3.msra.mxu1 %v2316_v46 }
 0x42a   :  { %946 = vmatprep.subr.mxu0 %v2260_v38  ;;  %1798 = vmatprep.subr.mxu1 %v3208_v49 }
 0x42b   :  { %947 = vmatpush1.msra.mxu0 %v2272_v40  ;;  %1799 = vmatpush3.msra.mxu1 %v3217_v1 }
 0x42c   :  { %948 = vmatprep.subr.mxu0 %v3218_v2  ;;  %1800 = vmatprep.subr.mxu1 %v3208_v49 }
 0x42d   :  { %949 = vmatpush1.msra.mxu0 %v3219_v4  ;;  %982 = vmatprep.mubr.f32.mxu0 %v3208_v49 }
 0x42e   :  { %1801 = vmatpush3.msra.mxu1 %v3220_v5  ;;  %1802 = vmatprep.mubr.msk.f32.mxu1 %vm2006_vm0, %v3208_v49 }
 0x42f   :  { %1084 = vmatprep.subr.mxu0 %v2855_v29  ;;  %1805 = vmatprep.subr.mxu1 %v3208_v49 }
 0x4ce   :  { %v818_v32 = vpop.f32.mrf.mxu0  ;;  %v889_v34 = vpop.f32.mrf.mxu1 }
 0x4cf   :  { %v819_v35 = vadd.f32 %v818_v32, %v2408_v53  ;;  %v890_v12 = vadd.f32 %v889_v34, %v2420_v56  ;;  %v2983_v32 = vld [vmem:[%s3183_s1 + $0x60] sm:$0xff]  ;;  %v2989_v34 = vld [vmem:[%s3183_s1 + $0x70] sm:$0xff] }
 0x4d0   :  { %v820_v37 = vpop.f32.mrf.mxu0  ;;  %v1769_v38 = vpop.f32.mrf.mxu1 }
 0x4d1   :  { %v893_v39 = vadd.f32 %v1439_v31, %v819_v35  ;;  %v821_v42 = vadd.f32 %v820_v37, %v2414_v58  ;;  %v2976_v31 = vld [vmem:[%s3183_s1 + $0x68] sm:$0xff]  ;;  %v2995_v35 = vld [vmem:[%s3183_s1 + $0x50] sm:$0xff]  ;;  %v3008_v38 = vld [vmem:[%s3183_s1 + $0x58] sm:$0xff] }
 0x4d2   :  { %v3002_v37 = vld [vmem:[%s3183_s1 + $0x48] sm:$0xff] }
 0x4d3   :  { %v1442_v40 = vmul.f32 -1.442695, %v893_v39  ;;  %v900_v45 = vadd.f32 %v1440_v44, %v821_v42  ;;  %v3014_v39 = vld [vmem:[%s3183_s1 + $0x38] sm:$0xff]  ;;  %v3027_v42 = vld [vmem:[%s3183_s1 + $0x40] sm:$0xff] }
 0x4d4   :  { %v3033_v44 = vld [vmem:[%s3183_s1 + $0x20] sm:$0xff] }
 0x4d5   :  { %1917 = vpow2.f32 %v1442_v40  ;;  %v1443_v46 = vmul.f32 -1.442695, %v900_v45  ;;  %v3021_v40 = vld [vmem:[%s3183_s1 + $0x30] sm:$0xff]  ;;  %v3040_v45 = vld [vmem:[%s3183_s1 + $0x18] sm:$0xff] }
 0x4d7   :  { %1919 = vpow2.f32 %v1443_v46  ;;  %v3046_v46 = vld [vmem:[%s3183_s1 + $0x28] sm:$0xff] }
 0x4d8   :  { %3222 = vst [vmem:[#allocation6_spill] sm:$0xff] %v3046_v46 }
 0x4e2   :  { %v1918_v1 = vpop.eup %1917 }
 0x4e3   :  { %v897_v2 = vadd.f32 1.0, %v1918_v1  ;;  %v3052_v1 = vld [vmem:[%s3183_s1 + $0x8] sm:$0xff] }
 0x4e4   :  { %v1920_v4 = vpop.eup %1919  ;;  %3223 = vst [vmem:[#allocation4_spill] sm:$0xff] %v3052_v1 }
 0x4e5   :  { %1921 = vrcp.f32 %v897_v2  ;;  %v904_v5 = vadd.f32 1.0, %v1920_v4  ;;  %v3059_v2 = vld [vmem:[%s3183_s1] sm:$0xff]  ;;  %v3066_v4 = vld [vmem:[%s3183_s1 + $0x10] sm:$0xff] }
 0x4e6   :  { %3224 = vst [vmem:[#allocation5_spill] sm:$0xff] %v3059_v2  ;;  %3225 = vst [vmem:[#allocation7_spill] sm:$0xff] %v3066_v4 }
 0x4e7   :  { %1923 = vrcp.f32 %v904_v5  ;;  %v1444_v5 = vld [vmem:[%s3185_s0 + $0x78] sm:$0xff] }
 0x4f2   :  { %v1922_v13 = vpop.eup %1921 }
 0x4f3   :  { %v907_v17 = vmul.f32 %v1922_v13, %v890_v12 }
 0x4f4   :  { %v1924_v20 = vpop.eup %1923 }
 0x4f5   :  { %v908_v19 = vadd.f32 %v1441_v15, %v907_v17  ;;  %v910_v22 = vsub.f32 1.0, %v1924_v20  ;;  %v912_v26 = vmul.f32 %v1924_v20, %v2678_v61  ;;  %v2970_v61 = vld [vmem:[%s3183_s1 + $0x88] sm:$0xff] }
 0x4f7   :  { %1925 = vtanh.f32 %v908_v19 }
 0x504   :  { %v1926_v23 = vpop.eup %1925 }
 0x505   :  { %v911_v25 = vmul.f32 %v1926_v23, %v910_v22 }
 0x507   :  { %v2872_v28 = vadd.f32 %v912_v26, %v911_v25 }
 0x509   :  { %983 = vmatmul.mubr.f32.vlgmr.msra.gmra.mxu0 %v2872_v28  ;;  %1803 = vmatmul.mubr.f32.vlgmr.msra.gmra.mxu1 %v2872_v28 }
 0x50a   :  { %1085 = vmatpush1.msra.mxu0 %v2685_v0  ;;  %1806 = vmatpush3.msra.mxu1 %v2880_v51 }
 0x50b   :  { %1086 = vmatprep.subr.mxu0 %v2692_v63  ;;  %1807 = vmatprep.subr.mxu1 %v3208_v49 }
 0x50c   :  { %1087 = vmatpush1.msra.mxu0 %v2699_v48  ;;  %1808 = vmatpush3.msra.mxu1 %v2889_v41 }
 0x50d   :  { %1088 = vmatprep.subr.mxu0 %v2706_v14  ;;  %1809 = vmatprep.subr.mxu1 %v3208_v49 }
 0x50e   :  { %1089 = vmatpush1.msra.mxu0 %v2713_v43  ;;  %1810 = vmatpush3.msra.mxu1 %v2898_v47 }
 0x50f   :  { %1090 = vmatprep.subr.mxu0 %v2720_v16  ;;  %1811 = vmatprep.subr.mxu1 %v3208_v49 }
 0x510   :  { %1091 = vmatpush1.msra.mxu0 %v2727_v60  ;;  %1812 = vmatpush3.msra.mxu1 %v2907_v3 }
 0x511   :  { %1092 = vmatprep.subr.mxu0 %v2734_v18  ;;  %1813 = vmatprep.subr.mxu1 %v3208_v49 }
 0x512   :  { %1093 = vmatpush1.msra.mxu0 %v2741_v52  ;;  %1814 = vmatpush3.msra.mxu1 %v2916_v55 }
 0x513   :  { %1094 = vmatprep.subr.mxu0 %v2748_v21  ;;  %1815 = vmatprep.subr.mxu1 %v3208_v49 }
 0x514   :  { %1095 = vmatpush1.msra.mxu0 %v2755_v6  ;;  %1816 = vmatpush3.msra.mxu1 %v2925_v54 }
 0x515   :  { %1096 = vmatprep.subr.mxu0 %v2762_v24  ;;  %1817 = vmatprep.subr.mxu1 %v3208_v49 }
 0x516   :  { %1097 = vmatpush1.msra.mxu0 %v2769_v7  ;;  %1818 = vmatpush3.msra.mxu1 %v2934_v59 }
 0x517   :  { %1098 = vmatprep.subr.mxu0 %v2776_v27  ;;  %1819 = vmatprep.subr.mxu1 %v3208_v49 }
 0x518   :  { %1099 = vmatpush1.msra.mxu0 %v2783_v8  ;;  %1820 = vmatpush3.msra.mxu1 %v2943_v62 }
 0x519   :  { %1100 = vmatprep.subr.mxu0 %v2790_v30  ;;  %1821 = vmatprep.subr.mxu1 %v3208_v49 }
 0x51a   :  { %1101 = vmatpush1.msra.mxu0 %v2797_v9  ;;  %1822 = vmatpush3.msra.mxu1 %v2952_v50 }
 0x51b   :  { %1102 = vmatprep.subr.mxu0 %v2804_v33  ;;  %1823 = vmatprep.subr.mxu1 %v3208_v49 }
 0x51c   :  { %1103 = vmatpush1.msra.mxu0 %v2811_v10  ;;  %1824 = vmatpush3.msra.mxu1 %v2961_v57 }
 0x51d   :  { %1104 = vmatprep.subr.mxu0 %v2818_v36  ;;  %1825 = vmatprep.subr.mxu1 %v3208_v49 }
 0x51e   :  { %1105 = vmatpush1.msra.mxu0 %v2825_v11  ;;  %1826 = vmatpush3.msra.mxu1 %v2970_v61 }
 0x51f   :  { %1106 = vmatprep.subr.mxu0 %v2976_v31  ;;  %1827 = vmatprep.subr.mxu1 %v3208_v49 }
 0x520   :  { %1107 = vmatpush1.msra.mxu0 %v2983_v32  ;;  %1828 = vmatpush3.msra.mxu1 %v2989_v34 }
 0x521   :  { %1108 = vmatprep.subr.mxu0 %v2995_v35  ;;  %1829 = vmatprep.subr.mxu1 %v3208_v49 }
 0x522   :  { %1109 = vmatpush1.msra.mxu0 %v3002_v37  ;;  %1830 = vmatpush3.msra.mxu1 %v3008_v38 }
 0x523   :  { %1110 = vmatprep.subr.mxu0 %v3014_v39  ;;  %1831 = vmatprep.subr.mxu1 %v3208_v49 }
 0x524   :  { %1111 = vmatpush1.msra.mxu0 %v3021_v40  ;;  %1832 = vmatpush3.msra.mxu1 %v3027_v42 }
 0x525   :  { %1112 = vmatprep.subr.mxu0 %v3033_v44  ;;  %1833 = vmatprep.subr.mxu1 %v3208_v49 }
 0x526   :  { %1113 = vmatpush1.msra.mxu0 %v3040_v45  ;;  %1834 = vmatpush3.msra.mxu1 %v3046_v46 }
 0x527   :  { %1114 = vmatprep.subr.mxu0 %v3052_v1  ;;  %1835 = vmatprep.subr.mxu1 %v3208_v49 }
 0x528   :  { %1115 = vmatpush1.msra.mxu0 %v3059_v2  ;;  %1148 = vmatprep.mubr.f32.mxu0 %v3208_v49 }
 0x529   :  { %1836 = vmatpush3.msra.mxu1 %v3066_v4  ;;  %1837 = vmatprep.mubr.msk.f32.mxu1 %vm2006_vm0, %v3208_v49 }
 0x52a   :  { %1250 = vmatprep.subr.mxu0 %v2855_v29  ;;  %1840 = vmatprep.subr.mxu1 %v3208_v49  ;;  %v1445_v29 = vld [vmem:[%s3185_s0 + $0x80] sm:$0xff] }
 0x5c9   :  { %v984_v12 = vpop.f32.mrf.mxu0  ;;  %v1055_v13 = vpop.f32.mrf.mxu1 }
 0x5ca   :  { %v985_v15 = vadd.f32 %v984_v12, %v2408_v53  ;;  %v1056_v12 = vadd.f32 %v1055_v13, %v2420_v56 }
 0x5cb   :  { %v986_v17 = vpop.f32.mrf.mxu0  ;;  %v1804_v19 = vpop.f32.mrf.mxu1 }
 0x5cc   :  { %v1059_v20 = vadd.f32 %v1444_v5, %v985_v15  ;;  %v987_v23 = vadd.f32 %v986_v17, %v2414_v58  ;;  %v1446_v5 = vld [vmem:[%s3185_s0 + $0x88] sm:$0xff] }
 0x5ce   :  { %v1447_v22 = vmul.f32 -1.442695, %v1059_v20  ;;  %v1066_v25 = vadd.f32 %v1445_v29, %v987_v23 }
 0x5d0   :  { %1927 = vpow2.f32 %v1447_v22  ;;  %v1448_v26 = vmul.f32 -1.442695, %v1066_v25 }
 0x5d2   :  { %1929 = vpow2.f32 %v1448_v26 }
 0x5dd   :  { %v1928_v4 = vpop.eup %1927 }
 0x5de   :  { %v1063_v2 = vadd.f32 1.0, %v1928_v4 }
 0x5df   :  { %v1930_v1 = vpop.eup %1929 }
 0x5e0   :  { %1931 = vrcp.f32 %v1063_v2  ;;  %v1070_v46 = vadd.f32 1.0, %v1930_v1 }
 0x5e2   :  { %1933 = vrcp.f32 %v1070_v46 }
 0x5ed   :  { %v1932_v19 = vpop.eup %1931 }
 0x5ee   :  { %v1073_v15 = vmul.f32 %v1932_v19, %v1056_v12 }
 0x5ef   :  { %v1934_v20 = vpop.eup %1933 }
 0x5f0   :  { %v1074_v17 = vadd.f32 %v1446_v5, %v1073_v15  ;;  %v1076_v22 = vsub.f32 1.0, %v1934_v20  ;;  %v1078_v4 = vmul.f32 %v1934_v20, %v2872_v28  ;;  %v1451_v28 = vld [vmem:[%s3185_s0 + $0xa0] sm:$0xff] }
 0x5f2   :  { %1935 = vtanh.f32 %v1074_v17 }
 0x5ff   :  { %v1936_v23 = vpop.eup %1935 }
 0x600   :  { %v1077_v29 = vmul.f32 %v1936_v23, %v1076_v22 }
 0x602   :  { %v3086_v2 = vadd.f32 %v1078_v4, %v1077_v29 }
 0x604   :  { %1149 = vmatmul.mubr.f32.vlgmr.msra.gmra.mxu0 %v3086_v2  ;;  %1838 = vmatmul.mubr.f32.vlgmr.msra.gmra.mxu1 %v3086_v2 }
 0x605   :  { %1251 = vmatpush1.msra.mxu0 %v2685_v0  ;;  %1841 = vmatpush3.msra.mxu1 %v2880_v51  ;;  %v3226_v0 = vld [vmem:[#allocation6_spill] sm:$0xff] }
 0x606   :  { %1252 = vmatprep.subr.mxu0 %v2692_v63  ;;  %1842 = vmatprep.subr.mxu1 %v3208_v49  ;;  %v3227_v63 = vld [vmem:[#allocation4_spill] sm:$0xff] }
 0x607   :  { %1253 = vmatpush1.msra.mxu0 %v2699_v48  ;;  %1843 = vmatpush3.msra.mxu1 %v2889_v41  ;;  %v3228_v48 = vld [vmem:[#allocation5_spill] sm:$0xff] }
 0x608   :  { %1254 = vmatprep.subr.mxu0 %v2706_v14  ;;  %1844 = vmatprep.subr.mxu1 %v3208_v49  ;;  %v3229_v14 = vld [vmem:[#allocation7_spill] sm:$0xff] }
 0x609   :  { %1255 = vmatpush1.msra.mxu0 %v2713_v43  ;;  %1845 = vmatpush3.msra.mxu1 %v2898_v47  ;;  %v1449_v43 = vld [vmem:[%s3185_s0 + $0x90] sm:$0xff] }
 0x60a   :  { %1256 = vmatprep.subr.mxu0 %v2720_v16  ;;  %1846 = vmatprep.subr.mxu1 %v3208_v49 }
 0x60b   :  { %1257 = vmatpush1.msra.mxu0 %v2727_v60  ;;  %1847 = vmatpush3.msra.mxu1 %v2907_v3 }
 0x60c   :  { %1258 = vmatprep.subr.mxu0 %v2734_v18  ;;  %1848 = vmatprep.subr.mxu1 %v3208_v49 }
 0x60d   :  { %1259 = vmatpush1.msra.mxu0 %v2741_v52  ;;  %1849 = vmatpush3.msra.mxu1 %v2916_v55 }
 0x60e   :  { %1260 = vmatprep.subr.mxu0 %v2748_v21  ;;  %1850 = vmatprep.subr.mxu1 %v3208_v49 }
 0x60f   :  { %1261 = vmatpush1.msra.mxu0 %v2755_v6  ;;  %1851 = vmatpush3.msra.mxu1 %v2925_v54 }
 0x610   :  { %1262 = vmatprep.subr.mxu0 %v2762_v24  ;;  %1852 = vmatprep.subr.mxu1 %v3208_v49 }
 0x611   :  { %1263 = vmatpush1.msra.mxu0 %v2769_v7  ;;  %1853 = vmatpush3.msra.mxu1 %v2934_v59 }
 0x612   :  { %1264 = vmatprep.subr.mxu0 %v2776_v27  ;;  %1854 = vmatprep.subr.mxu1 %v3208_v49  ;;  %v1450_v27 = vld [vmem:[%s3185_s0 + $0x98] sm:$0xff] }
 0x613   :  { %1265 = vmatpush1.msra.mxu0 %v2783_v8  ;;  %1855 = vmatpush3.msra.mxu1 %v2943_v62 }
 0x614   :  { %1266 = vmatprep.subr.mxu0 %v2790_v30  ;;  %1856 = vmatprep.subr.mxu1 %v3208_v49 }
 0x615   :  { %1267 = vmatpush1.msra.mxu0 %v2797_v9  ;;  %1857 = vmatpush3.msra.mxu1 %v2952_v50  ;;  %v1454_v50 = vld [vmem:[%s3185_s0 + $0xa8] sm:$0xff] }
 0x616   :  { %1268 = vmatprep.subr.mxu0 %v2804_v33  ;;  %1858 = vmatprep.subr.mxu1 %v3208_v49 }
 0x617   :  { %1269 = vmatpush1.msra.mxu0 %v2811_v10  ;;  %1859 = vmatpush3.msra.mxu1 %v2961_v57 }
 0x618   :  { %1270 = vmatprep.subr.mxu0 %v2818_v36  ;;  %1860 = vmatprep.subr.mxu1 %v3208_v49 }
 0x619   :  { %1271 = vmatpush1.msra.mxu0 %v2825_v11  ;;  %1861 = vmatpush3.msra.mxu1 %v2970_v61 }
 0x61a   :  { %1272 = vmatprep.subr.mxu0 %v2976_v31  ;;  %1862 = vmatprep.subr.mxu1 %v3208_v49 }
 0x61b   :  { %1273 = vmatpush1.msra.mxu0 %v2983_v32  ;;  %1863 = vmatpush3.msra.mxu1 %v2989_v34 }
 0x61c   :  { %1274 = vmatprep.subr.mxu0 %v2995_v35  ;;  %1864 = vmatprep.subr.mxu1 %v3208_v49 }
 0x61d   :  { %1275 = vmatpush1.msra.mxu0 %v3002_v37  ;;  %1865 = vmatpush3.msra.mxu1 %v3008_v38 }
 0x61e   :  { %1276 = vmatprep.subr.mxu0 %v3014_v39  ;;  %1866 = vmatprep.subr.mxu1 %v3208_v49  ;;  %v1455_v39 = vld [vmem:[%s3185_s0 + $0xb0] sm:$0xff] }
 0x61f   :  { %1277 = vmatpush1.msra.mxu0 %v3021_v40  ;;  %1867 = vmatpush3.msra.mxu1 %v3027_v42 }
 0x620   :  { %1278 = vmatprep.subr.mxu0 %v3033_v44  ;;  %1868 = vmatprep.subr.mxu1 %v3208_v49 }
 0x621   :  { %1279 = vmatpush1.msra.mxu0 %v3040_v45  ;;  %1869 = vmatpush3.msra.mxu1 %v3226_v0 }
 0x622   :  { %1280 = vmatprep.subr.mxu0 %v3227_v63  ;;  %1870 = vmatprep.subr.mxu1 %v3208_v49 }
 0x623   :  { %1281 = vmatpush1.msra.mxu0 %v3228_v48  ;;  %1314 = vmatprep.mubr.f32.mxu0 %v3208_v49 }
 0x624   :  { %1871 = vmatpush3.msra.mxu1 %v3229_v14  ;;  %1872 = vmatprep.mubr.msk.f32.mxu1 %vm2006_vm0, %v3208_v49 }
 0x6c4   :  { %v1150_v16 = vpop.f32.mrf.mxu0  ;;  %v1221_v60 = vpop.f32.mrf.mxu1 }
 0x6c5   :  { %v1151_v18 = vadd.f32 %v1150_v16, %v2408_v53  ;;  %v1222_v36 = vadd.f32 %v1221_v60, %v2420_v56 }
 0x6c6   :  { %v1152_v52 = vpop.f32.mrf.mxu0  ;;  %v1839_v21 = vpop.f32.mrf.mxu1 }
 0x6c7   :  { %v1225_v6 = vadd.f32 %v1449_v43, %v1151_v18  ;;  %v1153_v7 = vadd.f32 %v1152_v52, %v2414_v58 }
 0x6c9   :  { %v1452_v24 = vmul.f32 -1.442695, %v1225_v6  ;;  %v1232_v49 = vadd.f32 %v1450_v27, %v1153_v7 }
 0x6cb   :  { %1937 = vpow2.f32 %v1452_v24  ;;  %v1453_v8 = vmul.f32 -1.442695, %v1232_v49 }
 0x6cd   :  { %1939 = vpow2.f32 %v1453_v8 }
 0x6d8   :  { %v1938_v30 = vpop.eup %1937 }
 0x6d9   :  { %v1229_v9 = vadd.f32 1.0, %v1938_v30 }
 0x6da   :  { %v1940_v33 = vpop.eup %1939 }
 0x6db   :  { %1941 = vrcp.f32 %v1229_v9  ;;  %v1236_v10 = vadd.f32 1.0, %v1940_v33 }
 0x6dd   :  { %1943 = vrcp.f32 %v1236_v10 }
 0x6e8   :  { %v1942_v11 = vpop.eup %1941 }
 0x6e9   :  { %v1239_v51 = vmul.f32 %v1942_v11, %v1222_v36 }
 0x6ea   :  { %v1944_v47 = vpop.eup %1943 }
 0x6eb   :  { %v1240_v41 = vadd.f32 %v1451_v28, %v1239_v51  ;;  %v1242_v3 = vsub.f32 1.0, %v1944_v47  ;;  %v1244_v59 = vmul.f32 %v1944_v47, %v3086_v2 }
 0x6ed   :  { %1945 = vtanh.f32 %v1240_v41 }
 0x6fa   :  { %v1946_v55 = vpop.eup %1945 }
 0x6fb   :  { %v1243_v54 = vmul.f32 %v1946_v55, %v1242_v3 }
 0x6fd   :  { %v1245_v62 = vadd.f32 %v1244_v59, %v1243_v54 }
 0x6ff   :  { %1315 = vmatmul.mubr.f32.vlgmr.msra.gmra.mxu0 %v1245_v62  ;;  %1873 = vmatmul.mubr.f32.vlgmr.msra.gmra.mxu1 %v1245_v62 }
 0x7bf   :  { %v1316_v57 = vpop.f32.mrf.mxu0  ;;  %v1387_v61 = vpop.f32.mrf.mxu1 }
 0x7c0   :  { %v1317_v31 = vadd.f32 %v1316_v57, %v2408_v53  ;;  %v1388_v53 = vadd.f32 %v1387_v61, %v2420_v56 }
 0x7c1   :  { %v1318_v32 = vpop.f32.mrf.mxu0  ;;  %v1874_v34 = vpop.f32.mrf.mxu1 }
 0x7c2   :  { %v1391_v35 = vadd.f32 %v1454_v50, %v1317_v31  ;;  %v1319_v38 = vadd.f32 %v1318_v32, %v2414_v58  ;;  %v1456_v58 = vld [vmem:[%s3185_s0 + $0xb8] sm:$0xff] }
 0x7c4   :  { %v1457_v37 = vmul.f32 -1.442695, %v1391_v35  ;;  %v1398_v40 = vadd.f32 %v1455_v39, %v1319_v38 }
 0x7c6   :  { %1947 = vpow2.f32 %v1457_v37  ;;  %v1458_v42 = vmul.f32 -1.442695, %v1398_v40 }
 0x7c8   :  { %1949 = vpow2.f32 %v1458_v42 }
 0x7d3   :  { %v1948_v44 = vpop.eup %1947 }
 0x7d4   :  { %v1395_v45 = vadd.f32 1.0, %v1948_v44 }
 0x7d5   :  { %v1950_v46 = vpop.eup %1949 }
 0x7d6   :  { %1951 = vrcp.f32 %v1395_v45  ;;  %v1402_v1 = vadd.f32 1.0, %v1950_v46 }
 0x7d8   :  { %1953 = vrcp.f32 %v1402_v1 }
 0x7e3   :  { %v1952_v13 = vpop.eup %1951 }
 0x7e4   :  { %v1405_v25 = vmul.f32 %v1952_v13, %v1388_v53 }
 0x7e5   :  { %v1954_v12 = vpop.eup %1953 }
 0x7e6   :  { %v1406_v26 = vadd.f32 %v1456_v58, %v1405_v25  ;;  %v1408_v19 = vsub.f32 1.0, %v1954_v12  ;;  %v1410_v17 = vmul.f32 %v1954_v12, %v1245_v62 }
 0x7e8   :  { %1955 = vtanh.f32 %v1406_v26 }
 0x7f5   :  { %v1956_v5 = vpop.eup %1955 }
 0x7f6   :  { %v1409_v15 = vmul.f32 %v1956_v5, %v1408_v19 }
 0x7f8   :  { %v1411_v20 = vadd.f32 %v1410_v17, %v1409_v15 }
 0x7fa   :  { %v1416_v22 = vmax.f32 %v1411_v20, 0.0 }
 0x7fc   :  { %1417 = vst [vmem:[%s3186_s3] sm:$0xff] %v1416_v22 }

</bundles_post_ra>
